<compile_context>
chip_gen: v7x
topology: tpu7x:2x2x1
jax: 0.10.0
libtpu: 0.0.40
codegen_flags: <defaults>
</compile_context>

<pallas_src>
import math
import numpy as np

import jax
import jax.numpy as jnp
from jax.experimental import pallas as pl
from jax.experimental.pallas import tpu as pltpu

# ---------------- hyper-parameters (small, consistent with MyViT) ----------------
N_BATCH = 2
C, H, W = 4, 16, 16                 # chw
N_PATCHES = 4                       # H % N_PATCHES == 0
PATCH = H // N_PATCHES              # 4
INPUT_D = C * PATCH * PATCH         # 64
HIDDEN_D = 32
N_HEADS = 2
D_HEAD = HIDDEN_D // N_HEADS        # 16
N_BLOCKS = 2
MLP_D = 4 * HIDDEN_D                # 128
OUT_D = 10
SEQ = N_PATCHES * N_PATCHES + 1     # 17
LN_EPS = 1e-5
INV_SQRT2 = 0.7071067811865476
INV_SQRT_DH = 1.0 / (D_HEAD ** 0.5)  # 0.25 (exact)

SLAB_W = 128                         # lane width of both parameter slabs

# ---- per-block parameter slab row layout (big matrices 8-row aligned) ----
R_LN1G = 0
R_LN1B = 1
R_BQKV = 2
R_B1   = 3
R_B2   = 4
R_LN2G = 5
R_LN2B = 6
R_WQKV = 8                            # 32 rows
R_W1   = R_WQKV + HIDDEN_D            # 40, 32 rows
R_W2   = R_W1 + HIDDEN_D              # 72, 128 rows
B_ROWS = R_W2 + MLP_D                 # 200


def _align8(x):
    return (x + 7) // 8 * 8


def g_offsets(nseq):
    """Global-slab row offsets as a function of the stacked token count."""
    g_wm = 0                          # (INPUT_D, HIDDEN_D)
    g_add0 = INPUT_D                  # (nseq, HIDDEN_D): bm+pos (row0/img: cls+pos0)
    g_wh = _align8(g_add0 + nseq)     # (HIDDEN_D, OUT_D) zero-padded to SLAB_W
    g_bh = g_wh + HIDDEN_D            # (OUT_D,) zero-padded
    g_rows = g_bh + 1
    return g_wm, g_add0, g_wh, g_bh, g_rows


# ---------------------------------- kernel ---------------------------------------
def _layer_norm(z, g, b):
    mu = jnp.mean(z, axis=-1, keepdims=True)
    var = jnp.mean((z - mu) ** 2, axis=-1, keepdims=True)
    return (z - mu) * jax.lax.rsqrt(var + LN_EPS) * g + b


def _softmax_attn(z):
    m = jnp.max(z, axis=-1, keepdims=True)
    e = jnp.exp(z - m)
    return e * pl.reciprocal(jnp.sum(e, axis=-1, keepdims=True), approx=True)


def _gelu_exact(z):  # torch nn.GELU default (erf-based)
    return 0.5 * z * (1.0 + jax.lax.erf(z * INV_SQRT2))


def vit_kernel(x_ref, g_ref, b_ref, out_ref):
    nseq = x_ref.shape[0]
    n = nseq // SEQ
    _, g_add0, g_wh, g_bh, _ = g_offsets(nseq)

    # ---- patch embedding + (bias + positional + class-token) additive term ----
    x = x_ref[...]                                          # (nseq, INPUT_D)
    wm = g_ref[0:INPUT_D, 0:HIDDEN_D]                       # (INPUT_D, HIDDEN_D)
    add0 = g_ref[g_add0:g_add0 + nseq, 0:HIDDEN_D]          # (nseq, HIDDEN_D)
    seq = jnp.dot(x, wm, preferred_element_type=jnp.float32) + add0

    for l in range(N_BLOCKS):
        ln1g = b_ref[l, R_LN1G:R_LN1G + 1, 0:HIDDEN_D]
        ln1b = b_ref[l, R_LN1B:R_LN1B + 1, 0:HIDDEN_D]
        ln2g = b_ref[l, R_LN2G:R_LN2G + 1, 0:HIDDEN_D]
        ln2b = b_ref[l, R_LN2B:R_LN2B + 1, 0:HIDDEN_D]
        wqkv = b_ref[l, R_WQKV:R_WQKV + HIDDEN_D, 0:3 * HIDDEN_D]   # (32, 96)
        bqkv = b_ref[l, R_BQKV:R_BQKV + 1, 0:3 * HIDDEN_D]          # (1, 96)
        w1 = b_ref[l, R_W1:R_W1 + HIDDEN_D, 0:MLP_D]
        b1 = b_ref[l, R_B1:R_B1 + 1, 0:MLP_D]
        w2 = b_ref[l, R_W2:R_W2 + MLP_D, 0:HIDDEN_D]
        b2 = b_ref[l, R_B2:R_B2 + 1, 0:HIDDEN_D]

        # ---- multi-head self attention (one fused QKV matmul for all rows) ----
        xn = _layer_norm(seq, ln1g, ln1b)
        qkv = jnp.dot(xn, wqkv, preferred_element_type=jnp.float32) + bqkv  # (nseq, 96)

        per_img = []
        for b in range(n):                       # static loop over images
            r0 = b * SEQ
            heads = []
            for h in range(N_HEADS):             # static loop over heads
                c = h * D_HEAD
                q = qkv[r0:r0 + SEQ, c:c + D_HEAD]
                k = qkv[r0:r0 + SEQ, HIDDEN_D + c:HIDDEN_D + c + D_HEAD]
                v = qkv[r0:r0 + SEQ, 2 * HIDDEN_D + c:2 * HIDDEN_D + c + D_HEAD]
                s = jax.lax.dot_general(q, k, (((1,), (1,)), ((), ())),
                                        preferred_element_type=jnp.float32)
                a = _softmax_attn(s * INV_SQRT_DH)
                heads.append(jnp.dot(a, v, preferred_element_type=jnp.float32))
            per_img.append(jnp.concatenate(heads, axis=-1))       # (SEQ, HIDDEN_D)
        seq = seq + jnp.concatenate(per_img, axis=0)              # (nseq, HIDDEN_D)

        # ---- MLP ----
        xn2 = _layer_norm(seq, ln2g, ln2b)
        h1 = jnp.dot(xn2, w1, preferred_element_type=jnp.float32) + b1
        h2 = jnp.dot(_gelu_exact(h1), w2, preferred_element_type=jnp.float32) + b2
        seq = seq + h2

    # ---- classification head on the CLS token of each image ----
    wh = g_ref[g_wh:g_wh + HIDDEN_D, :]                      # (HIDDEN_D, SLAB_W), zero-padded
    bh = g_ref[g_bh:g_bh + 1, :]                             # (1, SLAB_W)
    x0 = jnp.concatenate([seq[b * SEQ:b * SEQ + 1, :] for b in range(n)], axis=0)  # (n, HIDDEN_D)
    logits = (jnp.dot(x0, wh, preferred_element_type=jnp.float32) + bh)[:, 0:OUT_D]
    m = jnp.max(logits, axis=-1, keepdims=True)
    e = jnp.exp(logits - m)
    out_ref[...] = e / jnp.sum(e, axis=-1, keepdims=True)    # exact divide: sums to 1


# ---------------------------------- wrapper --------------------------------------
def patchify(images):
    n = images.shape[0]
    x = images.reshape(n, C, N_PATCHES, PATCH, N_PATCHES, PATCH)
    x = jnp.transpose(x, (0, 2, 4, 1, 3, 5))          # (n, i, j, c, ph, pw)
    return x.reshape(n, N_PATCHES * N_PATCHES, INPUT_D)


def pack_global_slab(params, n):
    """wm | (bm + pos, with row0/img = cls + pos0) | wh | bh  — one f32 slab."""
    nseq = n * SEQ
    g_wm, g_add0, g_wh, g_bh, g_rows = g_offsets(nseq)
    g = np.zeros((g_rows, SLAB_W), np.float32)
    g[g_wm:g_wm + INPUT_D, :HIDDEN_D] = np.asarray(params["wm"])
    add_img = np.asarray(params["bm"])[None, :] + np.asarray(params["pos"])
    add_img[0] = np.asarray(params["cls"])[0] + np.asarray(params["pos"])[0]
    g[g_add0:g_add0 + nseq, :HIDDEN_D] = np.tile(add_img, (n, 1))
    g[g_wh:g_wh + HIDDEN_D, :OUT_D] = np.asarray(params["wh"])
    g[g_bh, :OUT_D] = np.asarray(params["bh"])
    return jnp.asarray(g)


def pack_block_slab(params):
    """Per-block slab: LN params, fused block-diagonal QKV, MLP weights."""
    bs = np.zeros((N_BLOCKS, B_ROWS, SLAB_W), np.float32)
    wq, wk, wv = (np.asarray(params[k]) for k in ("wq", "wk", "wv"))
    bq, bk, bv = (np.asarray(params[k]) for k in ("bq", "bk", "bv"))
    for l in range(N_BLOCKS):
        bs[l, R_LN1G, :HIDDEN_D] = np.asarray(params["ln1g"][l])
        bs[l, R_LN1B, :HIDDEN_D] = np.asarray(params["ln1b"][l])
        bs[l, R_LN2G, :HIDDEN_D] = np.asarray(params["ln2g"][l])
        bs[l, R_LN2B, :HIDDEN_D] = np.asarray(params["ln2b"][l])
        for h in range(N_HEADS):
            rr = slice(R_WQKV + h * D_HEAD, R_WQKV + (h + 1) * D_HEAD)
            c0, c1 = h * D_HEAD, (h + 1) * D_HEAD
            bs[l, rr, c0:c1] = wq[l, h]                                   # Q block-diag
            bs[l, rr, HIDDEN_D + c0:HIDDEN_D + c1] = wk[l, h]             # K block-diag
            bs[l, rr, 2 * HIDDEN_D + c0:2 * HIDDEN_D + c1] = wv[l, h]     # V block-diag
            bs[l, R_BQKV, c0:c1] = bq[l, h]
            bs[l, R_BQKV, HIDDEN_D + c0:HIDDEN_D + c1] = bk[l, h]
            bs[l, R_BQKV, 2 * HIDDEN_D + c0:2 * HIDDEN_D + c1] = bv[l, h]
        bs[l, R_W1:R_W1 + HIDDEN_D, :MLP_D] = np.asarray(params["w1"][l])
        bs[l, R_B1, :MLP_D] = np.asarray(params["b1"][l])
        bs[l, R_W2:R_W2 + MLP_D, :HIDDEN_D] = np.asarray(params["w2"][l])
        bs[l, R_B2, :HIDDEN_D] = np.asarray(params["b2"][l])
    return jnp.asarray(bs)


def vit_forward(images, params):
    n = images.shape[0]
    nseq = n * SEQ

    # patch tokens, with a zero placeholder row per image for the class token
    patches = patchify(images)                                        # (n, 16, 64)
    x_ext = jnp.concatenate(
        [jnp.zeros((n, 1, INPUT_D), jnp.float32), patches], axis=1)   # (n, SEQ, 64)
    x_ext = x_ext.reshape(nseq, INPUT_D)                              # stacked batch

    gslab = pack_global_slab(params, n)                               # (g_rows, 128)
    bslab = pack_block_slab(params)                                   # (N_BLOCKS, 200, 128)

    out = pl.pallas_call(
        vit_kernel,
        out_shape=jax.ShapeDtypeStruct((n, OUT_D), jnp.float32),
        grid=(1,),
        in_specs=[
            pl.BlockSpec((nseq, INPUT_D), lambda i: (0, 0)),
            pl.BlockSpec(gslab.shape, lambda i: (0, 0)),
            pl.BlockSpec(bslab.shape, lambda i: (0, 0, 0)),
        ],
        out_specs=pl.BlockSpec((n, OUT_D), lambda i: (0, 0)),
        compiler_params=pltpu.CompilerParams(dimension_semantics=("arbitrary",)),
    )(x_ext, gslab, bslab)
    return out


# ------------------------------ parameter init ------------------------------------
def get_pos_embed(seq_len, d):
    pe = np.ones((seq_len, d), dtype=np.float32)
    for i in range(seq_len):
        for j in range(d):
            pe[i, j] = (np.sin(i / 10000 ** (j / d)) if j % 2 == 0
                        else np.cos(i / 10000 ** ((j - 1) / d)))
    return jnp.asarray(pe)


def init_params(key):
    it = iter(jax.random.split(key, 64))

    def linear(in_d, out_d):
        bound = 1.0 / math.sqrt(in_d)
        w = jax.random.uniform(next(it), (out_d, in_d), jnp.float32, -bound, bound)
        b = jax.random.uniform(next(it), (out_d,), jnp.float32, -bound, bound)
        return np.asarray(w).T, np.asarray(b)     # (in_d, out_d) for x @ W

    p = {}
    wm, bm = linear(INPUT_D, HIDDEN_D)
    p["wm"], p["bm"] = jnp.asarray(wm), jnp.asarray(bm)
    p["cls"] = jax.random.uniform(next(it), (1, HIDDEN_D), jnp.float32)  # torch.rand
    p["pos"] = get_pos_embed(SEQ, HIDDEN_D)

    p["ln1g"] = jnp.ones((N_BLOCKS, HIDDEN_D), jnp.float32)
    p["ln1b"] = jnp.zeros((N_BLOCKS, HIDDEN_D), jnp.float32)
    p["ln2g"] = jnp.ones((N_BLOCKS, HIDDEN_D), jnp.float32)
    p["ln2b"] = jnp.zeros((N_BLOCKS, HIDDEN_D), jnp.float32)

    wq = np.zeros((N_BLOCKS, N_HEADS, D_HEAD, D_HEAD), np.float32)
    bq = np.zeros((N_BLOCKS, N_HEADS, D_HEAD), np.float32)
    wk = np.zeros_like(wq); bk = np.zeros_like(bq)
    wv = np.zeros_like(wq); bv = np.zeros_like(bq)
    w1 = np.zeros((N_BLOCKS, HIDDEN_D, MLP_D), np.float32)
    b1 = np.zeros((N_BLOCKS, MLP_D), np.float32)
    w2 = np.zeros((N_BLOCKS, MLP_D, HIDDEN_D), np.float32)
    b2 = np.zeros((N_BLOCKS, HIDDEN_D), np.float32)

    for l in range(N_BLOCKS):
        for h in range(N_HEADS):
            for Wp, Bp in ((wq, bq), (wk, bk), (wv, bv)):
                w, b = linear(D_HEAD, D_HEAD)
                Wp[l, h] = w; Bp[l, h] = b
        w, b = linear(HIDDEN_D, MLP_D); w1[l] = w; b1[l] = b
        w, b = linear(MLP_D, HIDDEN_D); w2[l] = w; b2[l] = b

    wh, bh = linear(HIDDEN_D, OUT_D)
    p.update(wq=jnp.asarray(wq), bq=jnp.asarray(bq),
             wk=jnp.asarray(wk), bk=jnp.asarray(bk),
             wv=jnp.asarray(wv), bv=jnp.asarray(bv),
             w1=jnp.asarray(w1), b1=jnp.asarray(b1),
             w2=jnp.asarray(w2), b2=jnp.asarray(b2),
             wh=jnp.asarray(wh), bh=jnp.asarray(bh))
    return p


# ------------------------------ pure-JAX reference --------------------------------
def _ln_ref(z, g, b):
    mu = jnp.mean(z, axis=-1, keepdims=True)
    var = jnp.mean((z - mu) ** 2, axis=-1, keepdims=True)
    return (z - mu) / jnp.sqrt(var + LN_EPS) * g + b


def vit_reference(images, params):
    P = jax.lax.Precision.HIGHEST
    n = images.shape[0]
    patches = patchify(images)
    tok = jnp.einsum("npd,dh->nph", patches, params["wm"], precision=P) + params["bm"]
    cls = jnp.broadcast_to(params["cls"][None], (n, 1, HIDDEN_D))
    seq = jnp.concatenate([cls, tok], axis=1) + params["pos"][None]
    for l in range(N_BLOCKS):
        xn = _ln_ref(seq, params["ln1g"][l], params["ln1b"][l])
        heads = []
        for h in range(N_HEADS):
            sl = slice(h * D_HEAD, (h + 1) * D_HEAD)
            xh = xn[:, :, sl]
            q = jnp.einsum("nsd,de->nse", xh, params["wq"][l, h], precision=P) + params["bq"][l, h]
            k = jnp.einsum("nsd,de->nse", xh, params["wk"][l, h], precision=P) + params["bk"][l, h]
            v = jnp.einsum("nsd,de->nse", xh, params["wv"][l, h], precision=P) + params["bv"][l, h]
            s = jnp.einsum("nqe,nke->nqk", q, k, precision=P) / (D_HEAD ** 0.5)
            a = jax.nn.softmax(s, axis=-1)
            heads.append(jnp.einsum("nqk,nke->nqe", a, v, precision=P))
        seq = seq + jnp.concatenate(heads, axis=-1)
        xn2 = _ln_ref(seq, params["ln2g"][l], params["ln2b"][l])
        h1 = jnp.einsum("nsd,dm->nsm", xn2, params["w1"][l], precision=P) + params["b1"][l]
        g = 0.5 * h1 * (1.0 + jax.lax.erf(h1 * INV_SQRT2))
        h2 = jnp.einsum("nsm,md->nsd", g, params["w2"][l], precision=P) + params["b2"][l]
        seq = seq + h2
    x0 = seq[:, 0]
    logits = jnp.matmul(x0, params["wh"], precision=P) + params["bh"]
    return jax.nn.softmax(logits, axis=-1)


# ------------------------------------ main -----------------------------------------
if __name__ == "__main__":
    key = jax.random.PRNGKey(0)
    k_img, k_par = jax.random.split(key)
    images = jax.random.normal(k_img, (N_BATCH, C, H, W), jnp.float32)   # NCHW
    params = init_params(k_par)

    out = vit_forward(images, params)
    out = jax.block_until_ready(out)

    ref = vit_reference(images, params)
    assert out.shape == (N_BATCH, OUT_D)
    assert bool(jnp.all(jnp.isfinite(out)))
    assert bool(jnp.allclose(jnp.sum(out, axis=-1), 1.0, atol=1e-4))
    assert bool(jnp.allclose(out, ref, atol=1e-3, rtol=1e-3))
    print("KERNEL_OK")
</pallas_src>

<mosaic_0001>
module attributes {stable_mosaic.version = 11 : i64} {
  func.func @vit_kernel(%arg0: i32, %arg1: memref<34x64xf32, #tpu.memory_space<vmem>>, %arg2: memref<137x128xf32, #tpu.memory_space<vmem>>, %arg3: memref<2x200x128xf32, #tpu.memory_space<vmem>>, %arg4: memref<2x10xf32, #tpu.memory_space<vmem>>) attributes {dimension_semantics = [#tpu.dimension_semantics<arbitrary>], iteration_bounds = array<i64: 1>, scalar_prefetch = 0 : i64, scratch_operands = 0 : i64, tpu.core_type = #tpu.core_type<tc>, window_params = [{pipeline_mode = #tpu.pipeline_mode<synchronous>, transform_indices = @transform_0, window_bounds = array<i64: 34, 64>}, {pipeline_mode = #tpu.pipeline_mode<synchronous>, transform_indices = @transform_1, window_bounds = array<i64: 137, 128>}, {pipeline_mode = #tpu.pipeline_mode<synchronous>, transform_indices = @transform_2, window_bounds = array<i64: 2, 200, 128>}, {pipeline_mode = #tpu.pipeline_mode<synchronous>, transform_indices = @transform_3, window_bounds = array<i64: 2, 10>}]} {
    %c0 = arith.constant 0 : index
    %c0_0 = arith.constant 0 : index
    %0 = vector.load %arg1[%c0, %c0_0] : memref<34x64xf32, #tpu.memory_space<vmem>>, vector<34x64xf32>
    %c0_1 = arith.constant 0 : index
    %c0_2 = arith.constant 0 : index
    %1 = vector.load %arg2[%c0_1, %c0_2] : memref<137x128xf32, #tpu.memory_space<vmem>>, vector<64x32xf32>
    %c64 = arith.constant 64 : index
    %c0_3 = arith.constant 0 : index
    %2 = vector.load %arg2[%c64, %c0_3] : memref<137x128xf32, #tpu.memory_space<vmem>>, vector<34x32xf32>
    %cst = arith.constant dense<0.000000e+00> : vector<34x32xf32>
    %3 = tpu.matmul %0, %1, %cst {dimension_numbers = #tpu.dot_dimension_numbers<[1], [0], [0], [1], [0, 0, 1, 1], [], []>} : vector<34x64xf32>, vector<64x32xf32>, vector<34x32xf32> -> vector<34x32xf32>
    %4 = arith.addf %3, %2 : vector<34x32xf32>
    %c0_4 = arith.constant 0 : index
    %c0_5 = arith.constant 0 : index
    %c0_6 = arith.constant 0 : index
    %5 = vector.load %arg3[%c0_4, %c0_5, %c0_6] : memref<2x200x128xf32, #tpu.memory_space<vmem>>, vector<1x1x32xf32>
    %6 = vector.shape_cast %5 : vector<1x1x32xf32> to vector<1x32xf32>
    %c0_7 = arith.constant 0 : index
    %c1 = arith.constant 1 : index
    %c0_8 = arith.constant 0 : index
    %7 = vector.load %arg3[%c0_7, %c1, %c0_8] : memref<2x200x128xf32, #tpu.memory_space<vmem>>, vector<1x1x32xf32>
    %8 = vector.shape_cast %7 : vector<1x1x32xf32> to vector<1x32xf32>
    %c0_9 = arith.constant 0 : index
    %c5 = arith.constant 5 : index
    %c0_10 = arith.constant 0 : index
    %9 = vector.load %arg3[%c0_9, %c5, %c0_10] : memref<2x200x128xf32, #tpu.memory_space<vmem>>, vector<1x1x32xf32>
    %10 = vector.shape_cast %9 : vector<1x1x32xf32> to vector<1x32xf32>
    %c0_11 = arith.constant 0 : index
    %c6 = arith.constant 6 : index
    %c0_12 = arith.constant 0 : index
    %11 = vector.load %arg3[%c0_11, %c6, %c0_12] : memref<2x200x128xf32, #tpu.memory_space<vmem>>, vector<1x1x32xf32>
    %12 = vector.shape_cast %11 : vector<1x1x32xf32> to vector<1x32xf32>
    %c0_13 = arith.constant 0 : index
    %c8 = arith.constant 8 : index
    %c0_14 = arith.constant 0 : index
    %13 = vector.load %arg3[%c0_13, %c8, %c0_14] : memref<2x200x128xf32, #tpu.memory_space<vmem>>, vector<1x32x96xf32>
    %14 = vector.shape_cast %13 : vector<1x32x96xf32> to vector<32x96xf32>
    %c0_15 = arith.constant 0 : index
    %c2 = arith.constant 2 : index
    %c0_16 = arith.constant 0 : index
    %15 = vector.load %arg3[%c0_15, %c2, %c0_16] : memref<2x200x128xf32, #tpu.memory_space<vmem>>, vector<1x1x96xf32>
    %16 = vector.shape_cast %15 : vector<1x1x96xf32> to vector<1x96xf32>
    %c0_17 = arith.constant 0 : index
    %c40 = arith.constant 40 : index
    %c0_18 = arith.constant 0 : index
    %17 = vector.load %arg3[%c0_17, %c40, %c0_18] : memref<2x200x128xf32, #tpu.memory_space<vmem>>, vector<1x32x128xf32>
    %18 = vector.shape_cast %17 : vector<1x32x128xf32> to vector<32x128xf32>
    %c0_19 = arith.constant 0 : index
    %c3 = arith.constant 3 : index
    %c0_20 = arith.constant 0 : index
    %19 = vector.load %arg3[%c0_19, %c3, %c0_20] : memref<2x200x128xf32, #tpu.memory_space<vmem>>, vector<1x1x128xf32>
    %20 = vector.shape_cast %19 : vector<1x1x128xf32> to vector<1x128xf32>
    %c0_21 = arith.constant 0 : index
    %c72 = arith.constant 72 : index
    %c0_22 = arith.constant 0 : index
    %21 = vector.load %arg3[%c0_21, %c72, %c0_22] : memref<2x200x128xf32, #tpu.memory_space<vmem>>, vector<1x128x32xf32>
    %22 = vector.shape_cast %21 : vector<1x128x32xf32> to vector<128x32xf32>
    %c0_23 = arith.constant 0 : index
    %c4 = arith.constant 4 : index
    %c0_24 = arith.constant 0 : index
    %23 = vector.load %arg3[%c0_23, %c4, %c0_24] : memref<2x200x128xf32, #tpu.memory_space<vmem>>, vector<1x1x32xf32>
    %24 = vector.shape_cast %23 : vector<1x1x32xf32> to vector<1x32xf32>
    %cst_25 = arith.constant dense<0.000000e+00> : vector<34xf32>
    %25 = vector.multi_reduction <add>, %4, %cst_25 [1] : vector<34x32xf32> to vector<34xf32>
    %26 = vector.shape_cast %25 : vector<34xf32> to vector<34x1xf32>
    %cst_26 = arith.constant 3.200000e+01 : f32
    %27 = vector.broadcast %cst_26 : f32 to vector<34x1xf32>
    %28 = arith.divf %26, %27 : vector<34x1xf32>
    %29 = vector.broadcast %28 : vector<34x1xf32> to vector<34x32xf32>
    %30 = arith.subf %4, %29 : vector<34x32xf32>
    %31 = arith.mulf %30, %30 : vector<34x32xf32>
    %cst_27 = arith.constant dense<0.000000e+00> : vector<34xf32>
    %32 = vector.multi_reduction <add>, %31, %cst_27 [1] : vector<34x32xf32> to vector<34xf32>
    %33 = vector.shape_cast %32 : vector<34xf32> to vector<34x1xf32>
    %cst_28 = arith.constant 3.200000e+01 : f32
    %34 = vector.broadcast %cst_28 : f32 to vector<34x1xf32>
    %35 = arith.divf %33, %34 : vector<34x1xf32>
    %36 = vector.broadcast %28 : vector<34x1xf32> to vector<34x32xf32>
    %37 = arith.subf %4, %36 : vector<34x32xf32>
    %cst_29 = arith.constant 9.99999974E-6 : f32
    %38 = vector.broadcast %cst_29 : f32 to vector<34x1xf32>
    %39 = arith.addf %35, %38 : vector<34x1xf32>
    %40 = math.rsqrt %39 : vector<34x1xf32>
    %41 = vector.broadcast %40 : vector<34x1xf32> to vector<34x32xf32>
    %42 = arith.mulf %37, %41 : vector<34x32xf32>
    %43 = vector.broadcast %6 : vector<1x32xf32> to vector<34x32xf32>
    %44 = arith.mulf %42, %43 : vector<34x32xf32>
    %45 = vector.broadcast %8 : vector<1x32xf32> to vector<34x32xf32>
    %46 = arith.addf %44, %45 : vector<34x32xf32>
    %cst_30 = arith.constant dense<0.000000e+00> : vector<34x96xf32>
    %47 = tpu.matmul %46, %14, %cst_30 {dimension_numbers = #tpu.dot_dimension_numbers<[1], [0], [0], [1], [0, 0, 1, 1], [], []>} : vector<34x32xf32>, vector<32x96xf32>, vector<34x96xf32> -> vector<34x96xf32>
    %48 = vector.broadcast %16 : vector<1x96xf32> to vector<34x96xf32>
    %49 = arith.addf %47, %48 : vector<34x96xf32>
    %50 = vector.extract_strided_slice %49 {offsets = [0, 0], sizes = [17, 16], strides = [1, 1]} : vector<34x96xf32> to vector<17x16xf32>
    %51 = vector.extract_strided_slice %49 {offsets = [0, 32], sizes = [17, 16], strides = [1, 1]} : vector<34x96xf32> to vector<17x16xf32>
    %52 = vector.extract_strided_slice %49 {offsets = [0, 64], sizes = [17, 16], strides = [1, 1]} : vector<34x96xf32> to vector<17x16xf32>
    %cst_31 = arith.constant dense<0.000000e+00> : vector<17x17xf32>
    %53 = tpu.matmul %50, %51, %cst_31 {dimension_numbers = #tpu.dot_dimension_numbers<[1], [1], [0], [0], [0, 0, 1, 0], [], []>} : vector<17x16xf32>, vector<17x16xf32>, vector<17x17xf32> -> vector<17x17xf32>
    %cst_32 = arith.constant 2.500000e-01 : f32
    %54 = vector.broadcast %cst_32 : f32 to vector<17x17xf32>
    %55 = arith.mulf %53, %54 : vector<17x17xf32>
    %cst_33 = arith.constant dense<0xFF800000> : vector<17xf32>
    %56 = vector.multi_reduction <maximumf>, %55, %cst_33 [1] : vector<17x17xf32> to vector<17xf32>
    %57 = vector.shape_cast %56 : vector<17xf32> to vector<17x1xf32>
    %58 = vector.broadcast %57 : vector<17x1xf32> to vector<17x17xf32>
    %59 = arith.subf %55, %58 : vector<17x17xf32>
    %60 = math.exp %59 : vector<17x17xf32>
    %cst_34 = arith.constant dense<0.000000e+00> : vector<17xf32>
    %61 = vector.multi_reduction <add>, %60, %cst_34 [1] : vector<17x17xf32> to vector<17xf32>
    %62 = vector.shape_cast %61 : vector<17xf32> to vector<17x1xf32>
    %63 = tpu.reciprocal %62 {approx = true} : vector<17x1xf32> -> vector<17x1xf32>
    %64 = vector.broadcast %63 : vector<17x1xf32> to vector<17x17xf32>
    %65 = arith.mulf %60, %64 : vector<17x17xf32>
    %cst_35 = arith.constant dense<0.000000e+00> : vector<17x16xf32>
    %66 = tpu.matmul %65, %52, %cst_35 {dimension_numbers = #tpu.dot_dimension_numbers<[1], [0], [0], [1], [0, 0, 1, 1], [], []>} : vector<17x17xf32>, vector<17x16xf32>, vector<17x16xf32> -> vector<17x16xf32>
    %67 = vector.extract_strided_slice %49 {offsets = [0, 16], sizes = [17, 16], strides = [1, 1]} : vector<34x96xf32> to vector<17x16xf32>
    %68 = vector.extract_strided_slice %49 {offsets = [0, 48], sizes = [17, 16], strides = [1, 1]} : vector<34x96xf32> to vector<17x16xf32>
    %69 = vector.extract_strided_slice %49 {offsets = [0, 80], sizes = [17, 16], strides = [1, 1]} : vector<34x96xf32> to vector<17x16xf32>
    %cst_36 = arith.constant dense<0.000000e+00> : vector<17x17xf32>
    %70 = tpu.matmul %67, %68, %cst_36 {dimension_numbers = #tpu.dot_dimension_numbers<[1], [1], [0], [0], [0, 0, 1, 0], [], []>} : vector<17x16xf32>, vector<17x16xf32>, vector<17x17xf32> -> vector<17x17xf32>
    %cst_37 = arith.constant 2.500000e-01 : f32
    %71 = vector.broadcast %cst_37 : f32 to vector<17x17xf32>
    %72 = arith.mulf %70, %71 : vector<17x17xf32>
    %cst_38 = arith.constant dense<0xFF800000> : vector<17xf32>
    %73 = vector.multi_reduction <maximumf>, %72, %cst_38 [1] : vector<17x17xf32> to vector<17xf32>
    %74 = vector.shape_cast %73 : vector<17xf32> to vector<17x1xf32>
    %75 = vector.broadcast %74 : vector<17x1xf32> to vector<17x17xf32>
    %76 = arith.subf %72, %75 : vector<17x17xf32>
    %77 = math.exp %76 : vector<17x17xf32>
    %cst_39 = arith.constant dense<0.000000e+00> : vector<17xf32>
    %78 = vector.multi_reduction <add>, %77, %cst_39 [1] : vector<17x17xf32> to vector<17xf32>
    %79 = vector.shape_cast %78 : vector<17xf32> to vector<17x1xf32>
    %80 = tpu.reciprocal %79 {approx = true} : vector<17x1xf32> -> vector<17x1xf32>
    %81 = vector.broadcast %80 : vector<17x1xf32> to vector<17x17xf32>
    %82 = arith.mulf %77, %81 : vector<17x17xf32>
    %cst_40 = arith.constant dense<0.000000e+00> : vector<17x16xf32>
    %83 = tpu.matmul %82, %69, %cst_40 {dimension_numbers = #tpu.dot_dimension_numbers<[1], [0], [0], [1], [0, 0, 1, 1], [], []>} : vector<17x17xf32>, vector<17x16xf32>, vector<17x16xf32> -> vector<17x16xf32>
    %84 = tpu.concatenate %66, %83 in 1 : vector<17x16xf32>, vector<17x16xf32> -> vector<17x32xf32>
    %85 = vector.extract_strided_slice %49 {offsets = [17, 0], sizes = [17, 16], strides = [1, 1]} : vector<34x96xf32> to vector<17x16xf32>
    %86 = vector.extract_strided_slice %49 {offsets = [17, 32], sizes = [17, 16], strides = [1, 1]} : vector<34x96xf32> to vector<17x16xf32>
    %87 = vector.extract_strided_slice %49 {offsets = [17, 64], sizes = [17, 16], strides = [1, 1]} : vector<34x96xf32> to vector<17x16xf32>
    %cst_41 = arith.constant dense<0.000000e+00> : vector<17x17xf32>
    %88 = tpu.matmul %85, %86, %cst_41 {dimension_numbers = #tpu.dot_dimension_numbers<[1], [1], [0], [0], [0, 0, 1, 0], [], []>} : vector<17x16xf32>, vector<17x16xf32>, vector<17x17xf32> -> vector<17x17xf32>
    %cst_42 = arith.constant 2.500000e-01 : f32
    %89 = vector.broadcast %cst_42 : f32 to vector<17x17xf32>
    %90 = arith.mulf %88, %89 : vector<17x17xf32>
    %cst_43 = arith.constant dense<0xFF800000> : vector<17xf32>
    %91 = vector.multi_reduction <maximumf>, %90, %cst_43 [1] : vector<17x17xf32> to vector<17xf32>
    %92 = vector.shape_cast %91 : vector<17xf32> to vector<17x1xf32>
    %93 = vector.broadcast %92 : vector<17x1xf32> to vector<17x17xf32>
    %94 = arith.subf %90, %93 : vector<17x17xf32>
    %95 = math.exp %94 : vector<17x17xf32>
    %cst_44 = arith.constant dense<0.000000e+00> : vector<17xf32>
    %96 = vector.multi_reduction <add>, %95, %cst_44 [1] : vector<17x17xf32> to vector<17xf32>
    %97 = vector.shape_cast %96 : vector<17xf32> to vector<17x1xf32>
    %98 = tpu.reciprocal %97 {approx = true} : vector<17x1xf32> -> vector<17x1xf32>
    %99 = vector.broadcast %98 : vector<17x1xf32> to vector<17x17xf32>
    %100 = arith.mulf %95, %99 : vector<17x17xf32>
    %cst_45 = arith.constant dense<0.000000e+00> : vector<17x16xf32>
    %101 = tpu.matmul %100, %87, %cst_45 {dimension_numbers = #tpu.dot_dimension_numbers<[1], [0], [0], [1], [0, 0, 1, 1], [], []>} : vector<17x17xf32>, vector<17x16xf32>, vector<17x16xf32> -> vector<17x16xf32>
    %102 = vector.extract_strided_slice %49 {offsets = [17, 16], sizes = [17, 16], strides = [1, 1]} : vector<34x96xf32> to vector<17x16xf32>
    %103 = vector.extract_strided_slice %49 {offsets = [17, 48], sizes = [17, 16], strides = [1, 1]} : vector<34x96xf32> to vector<17x16xf32>
    %104 = vector.extract_strided_slice %49 {offsets = [17, 80], sizes = [17, 16], strides = [1, 1]} : vector<34x96xf32> to vector<17x16xf32>
    %cst_46 = arith.constant dense<0.000000e+00> : vector<17x17xf32>
    %105 = tpu.matmul %102, %103, %cst_46 {dimension_numbers = #tpu.dot_dimension_numbers<[1], [1], [0], [0], [0, 0, 1, 0], [], []>} : vector<17x16xf32>, vector<17x16xf32>, vector<17x17xf32> -> vector<17x17xf32>
    %cst_47 = arith.constant 2.500000e-01 : f32
    %106 = vector.broadcast %cst_47 : f32 to vector<17x17xf32>
    %107 = arith.mulf %105, %106 : vector<17x17xf32>
    %cst_48 = arith.constant dense<0xFF800000> : vector<17xf32>
    %108 = vector.multi_reduction <maximumf>, %107, %cst_48 [1] : vector<17x17xf32> to vector<17xf32>
    %109 = vector.shape_cast %108 : vector<17xf32> to vector<17x1xf32>
    %110 = vector.broadcast %109 : vector<17x1xf32> to vector<17x17xf32>
    %111 = arith.subf %107, %110 : vector<17x17xf32>
    %112 = math.exp %111 : vector<17x17xf32>
    %cst_49 = arith.constant dense<0.000000e+00> : vector<17xf32>
    %113 = vector.multi_reduction <add>, %112, %cst_49 [1] : vector<17x17xf32> to vector<17xf32>
    %114 = vector.shape_cast %113 : vector<17xf32> to vector<17x1xf32>
    %115 = tpu.reciprocal %114 {approx = true} : vector<17x1xf32> -> vector<17x1xf32>
    %116 = vector.broadcast %115 : vector<17x1xf32> to vector<17x17xf32>
    %117 = arith.mulf %112, %116 : vector<17x17xf32>
    %cst_50 = arith.constant dense<0.000000e+00> : vector<17x16xf32>
    %118 = tpu.matmul %117, %104, %cst_50 {dimension_numbers = #tpu.dot_dimension_numbers<[1], [0], [0], [1], [0, 0, 1, 1], [], []>} : vector<17x17xf32>, vector<17x16xf32>, vector<17x16xf32> -> vector<17x16xf32>
    %119 = tpu.concatenate %101, %118 in 1 : vector<17x16xf32>, vector<17x16xf32> -> vector<17x32xf32>
    %120 = tpu.concatenate %84, %119 in 0 : vector<17x32xf32>, vector<17x32xf32> -> vector<34x32xf32>
    %121 = arith.addf %4, %120 : vector<34x32xf32>
    %cst_51 = arith.constant dense<0.000000e+00> : vector<34xf32>
    %122 = vector.multi_reduction <add>, %121, %cst_51 [1] : vector<34x32xf32> to vector<34xf32>
    %123 = vector.shape_cast %122 : vector<34xf32> to vector<34x1xf32>
    %cst_52 = arith.constant 3.200000e+01 : f32
    %124 = vector.broadcast %cst_52 : f32 to vector<34x1xf32>
    %125 = arith.divf %123, %124 : vector<34x1xf32>
    %126 = vector.broadcast %125 : vector<34x1xf32> to vector<34x32xf32>
    %127 = arith.subf %121, %126 : vector<34x32xf32>
    %128 = arith.mulf %127, %127 : vector<34x32xf32>
    %cst_53 = arith.constant dense<0.000000e+00> : vector<34xf32>
    %129 = vector.multi_reduction <add>, %128, %cst_53 [1] : vector<34x32xf32> to vector<34xf32>
    %130 = vector.shape_cast %129 : vector<34xf32> to vector<34x1xf32>
    %cst_54 = arith.constant 3.200000e+01 : f32
    %131 = vector.broadcast %cst_54 : f32 to vector<34x1xf32>
    %132 = arith.divf %130, %131 : vector<34x1xf32>
    %133 = vector.broadcast %125 : vector<34x1xf32> to vector<34x32xf32>
    %134 = arith.subf %121, %133 : vector<34x32xf32>
    %cst_55 = arith.constant 9.99999974E-6 : f32
    %135 = vector.broadcast %cst_55 : f32 to vector<34x1xf32>
    %136 = arith.addf %132, %135 : vector<34x1xf32>
    %137 = math.rsqrt %136 : vector<34x1xf32>
    %138 = vector.broadcast %137 : vector<34x1xf32> to vector<34x32xf32>
    %139 = arith.mulf %134, %138 : vector<34x32xf32>
    %140 = vector.broadcast %10 : vector<1x32xf32> to vector<34x32xf32>
    %141 = arith.mulf %139, %140 : vector<34x32xf32>
    %142 = vector.broadcast %12 : vector<1x32xf32> to vector<34x32xf32>
    %143 = arith.addf %141, %142 : vector<34x32xf32>
    %cst_56 = arith.constant dense<0.000000e+00> : vector<34x128xf32>
    %144 = tpu.matmul %143, %18, %cst_56 {dimension_numbers = #tpu.dot_dimension_numbers<[1], [0], [0], [1], [0, 0, 1, 1], [], []>} : vector<34x32xf32>, vector<32x128xf32>, vector<34x128xf32> -> vector<34x128xf32>
    %145 = vector.broadcast %20 : vector<1x128xf32> to vector<34x128xf32>
    %146 = arith.addf %144, %145 : vector<34x128xf32>
    %cst_57 = arith.constant 5.000000e-01 : f32
    %147 = vector.broadcast %cst_57 : f32 to vector<34x128xf32>
    %148 = arith.mulf %147, %146 : vector<34x128xf32>
    %cst_58 = arith.constant 0.707106769 : f32
    %149 = vector.broadcast %cst_58 : f32 to vector<34x128xf32>
    %150 = arith.mulf %146, %149 : vector<34x128xf32>
    %151 = math.erf %150 : vector<34x128xf32>
    %cst_59 = arith.constant 1.000000e+00 : f32
    %152 = vector.broadcast %cst_59 : f32 to vector<34x128xf32>
    %153 = arith.addf %152, %151 : vector<34x128xf32>
    %154 = arith.mulf %148, %153 : vector<34x128xf32>
    %cst_60 = arith.constant dense<0.000000e+00> : vector<34x32xf32>
    %155 = tpu.matmul %154, %22, %cst_60 {dimension_numbers = #tpu.dot_dimension_numbers<[1], [0], [0], [1], [0, 0, 1, 1], [], []>} : vector<34x128xf32>, vector<128x32xf32>, vector<34x32xf32> -> vector<34x32xf32>
    %156 = vector.broadcast %24 : vector<1x32xf32> to vector<34x32xf32>
    %157 = arith.addf %155, %156 : vector<34x32xf32>
    %158 = arith.addf %121, %157 : vector<34x32xf32>
    %c1_61 = arith.constant 1 : index
    %c0_62 = arith.constant 0 : index
    %c0_63 = arith.constant 0 : index
    %159 = vector.load %arg3[%c1_61, %c0_62, %c0_63] : memref<2x200x128xf32, #tpu.memory_space<vmem>>, vector<1x1x32xf32>
    %160 = vector.shape_cast %159 : vector<1x1x32xf32> to vector<1x32xf32>
    %c1_64 = arith.constant 1 : index
    %c1_65 = arith.constant 1 : index
    %c0_66 = arith.constant 0 : index
    %161 = vector.load %arg3[%c1_64, %c1_65, %c0_66] : memref<2x200x128xf32, #tpu.memory_space<vmem>>, vector<1x1x32xf32>
    %162 = vector.shape_cast %161 : vector<1x1x32xf32> to vector<1x32xf32>
    %c1_67 = arith.constant 1 : index
    %c5_68 = arith.constant 5 : index
    %c0_69 = arith.constant 0 : index
    %163 = vector.load %arg3[%c1_67, %c5_68, %c0_69] : memref<2x200x128xf32, #tpu.memory_space<vmem>>, vector<1x1x32xf32>
    %164 = vector.shape_cast %163 : vector<1x1x32xf32> to vector<1x32xf32>
    %c1_70 = arith.constant 1 : index
    %c6_71 = arith.constant 6 : index
    %c0_72 = arith.constant 0 : index
    %165 = vector.load %arg3[%c1_70, %c6_71, %c0_72] : memref<2x200x128xf32, #tpu.memory_space<vmem>>, vector<1x1x32xf32>
    %166 = vector.shape_cast %165 : vector<1x1x32xf32> to vector<1x32xf32>
    %c1_73 = arith.constant 1 : index
    %c8_74 = arith.constant 8 : index
    %c0_75 = arith.constant 0 : index
    %167 = vector.load %arg3[%c1_73, %c8_74, %c0_75] : memref<2x200x128xf32, #tpu.memory_space<vmem>>, vector<1x32x96xf32>
    %168 = vector.shape_cast %167 : vector<1x32x96xf32> to vector<32x96xf32>
    %c1_76 = arith.constant 1 : index
    %c2_77 = arith.constant 2 : index
    %c0_78 = arith.constant 0 : index
    %169 = vector.load %arg3[%c1_76, %c2_77, %c0_78] : memref<2x200x128xf32, #tpu.memory_space<vmem>>, vector<1x1x96xf32>
    %170 = vector.shape_cast %169 : vector<1x1x96xf32> to vector<1x96xf32>
    %c1_79 = arith.constant 1 : index
    %c40_80 = arith.constant 40 : index
    %c0_81 = arith.constant 0 : index
    %171 = vector.load %arg3[%c1_79, %c40_80, %c0_81] : memref<2x200x128xf32, #tpu.memory_space<vmem>>, vector<1x32x128xf32>
    %172 = vector.shape_cast %171 : vector<1x32x128xf32> to vector<32x128xf32>
    %c1_82 = arith.constant 1 : index
    %c3_83 = arith.constant 3 : index
    %c0_84 = arith.constant 0 : index
    %173 = vector.load %arg3[%c1_82, %c3_83, %c0_84] : memref<2x200x128xf32, #tpu.memory_space<vmem>>, vector<1x1x128xf32>
    %174 = vector.shape_cast %173 : vector<1x1x128xf32> to vector<1x128xf32>
    %c1_85 = arith.constant 1 : index
    %c72_86 = arith.constant 72 : index
    %c0_87 = arith.constant 0 : index
    %175 = vector.load %arg3[%c1_85, %c72_86, %c0_87] : memref<2x200x128xf32, #tpu.memory_space<vmem>>, vector<1x128x32xf32>
    %176 = vector.shape_cast %175 : vector<1x128x32xf32> to vector<128x32xf32>
    %c1_88 = arith.constant 1 : index
    %c4_89 = arith.constant 4 : index
    %c0_90 = arith.constant 0 : index
    %177 = vector.load %arg3[%c1_88, %c4_89, %c0_90] : memref<2x200x128xf32, #tpu.memory_space<vmem>>, vector<1x1x32xf32>
    %178 = vector.shape_cast %177 : vector<1x1x32xf32> to vector<1x32xf32>
    %cst_91 = arith.constant dense<0.000000e+00> : vector<34xf32>
    %179 = vector.multi_reduction <add>, %158, %cst_91 [1] : vector<34x32xf32> to vector<34xf32>
    %180 = vector.shape_cast %179 : vector<34xf32> to vector<34x1xf32>
    %cst_92 = arith.constant 3.200000e+01 : f32
    %181 = vector.broadcast %cst_92 : f32 to vector<34x1xf32>
    %182 = arith.divf %180, %181 : vector<34x1xf32>
    %183 = vector.broadcast %182 : vector<34x1xf32> to vector<34x32xf32>
    %184 = arith.subf %158, %183 : vector<34x32xf32>
    %185 = arith.mulf %184, %184 : vector<34x32xf32>
    %cst_93 = arith.constant dense<0.000000e+00> : vector<34xf32>
    %186 = vector.multi_reduction <add>, %185, %cst_93 [1] : vector<34x32xf32> to vector<34xf32>
    %187 = vector.shape_cast %186 : vector<34xf32> to vector<34x1xf32>
    %cst_94 = arith.constant 3.200000e+01 : f32
    %188 = vector.broadcast %cst_94 : f32 to vector<34x1xf32>
    %189 = arith.divf %187, %188 : vector<34x1xf32>
    %190 = vector.broadcast %182 : vector<34x1xf32> to vector<34x32xf32>
    %191 = arith.subf %158, %190 : vector<34x32xf32>
    %cst_95 = arith.constant 9.99999974E-6 : f32
    %192 = vector.broadcast %cst_95 : f32 to vector<34x1xf32>
    %193 = arith.addf %189, %192 : vector<34x1xf32>
    %194 = math.rsqrt %193 : vector<34x1xf32>
    %195 = vector.broadcast %194 : vector<34x1xf32> to vector<34x32xf32>
    %196 = arith.mulf %191, %195 : vector<34x32xf32>
    %197 = vector.broadcast %160 : vector<1x32xf32> to vector<34x32xf32>
    %198 = arith.mulf %196, %197 : vector<34x32xf32>
    %199 = vector.broadcast %162 : vector<1x32xf32> to vector<34x32xf32>
    %200 = arith.addf %198, %199 : vector<34x32xf32>
    %cst_96 = arith.constant dense<0.000000e+00> : vector<34x96xf32>
    %201 = tpu.matmul %200, %168, %cst_96 {dimension_numbers = #tpu.dot_dimension_numbers<[1], [0], [0], [1], [0, 0, 1, 1], [], []>} : vector<34x32xf32>, vector<32x96xf32>, vector<34x96xf32> -> vector<34x96xf32>
    %202 = vector.broadcast %170 : vector<1x96xf32> to vector<34x96xf32>
    %203 = arith.addf %201, %202 : vector<34x96xf32>
    %204 = vector.extract_strided_slice %203 {offsets = [0, 0], sizes = [17, 16], strides = [1, 1]} : vector<34x96xf32> to vector<17x16xf32>
    %205 = vector.extract_strided_slice %203 {offsets = [0, 32], sizes = [17, 16], strides = [1, 1]} : vector<34x96xf32> to vector<17x16xf32>
    %206 = vector.extract_strided_slice %203 {offsets = [0, 64], sizes = [17, 16], strides = [1, 1]} : vector<34x96xf32> to vector<17x16xf32>
    %cst_97 = arith.constant dense<0.000000e+00> : vector<17x17xf32>
    %207 = tpu.matmul %204, %205, %cst_97 {dimension_numbers = #tpu.dot_dimension_numbers<[1], [1], [0], [0], [0, 0, 1, 0], [], []>} : vector<17x16xf32>, vector<17x16xf32>, vector<17x17xf32> -> vector<17x17xf32>
    %cst_98 = arith.constant 2.500000e-01 : f32
    %208 = vector.broadcast %cst_98 : f32 to vector<17x17xf32>
    %209 = arith.mulf %207, %208 : vector<17x17xf32>
    %cst_99 = arith.constant dense<0xFF800000> : vector<17xf32>
    %210 = vector.multi_reduction <maximumf>, %209, %cst_99 [1] : vector<17x17xf32> to vector<17xf32>
    %211 = vector.shape_cast %210 : vector<17xf32> to vector<17x1xf32>
    %212 = vector.broadcast %211 : vector<17x1xf32> to vector<17x17xf32>
    %213 = arith.subf %209, %212 : vector<17x17xf32>
    %214 = math.exp %213 : vector<17x17xf32>
    %cst_100 = arith.constant dense<0.000000e+00> : vector<17xf32>
    %215 = vector.multi_reduction <add>, %214, %cst_100 [1] : vector<17x17xf32> to vector<17xf32>
    %216 = vector.shape_cast %215 : vector<17xf32> to vector<17x1xf32>
    %217 = tpu.reciprocal %216 {approx = true} : vector<17x1xf32> -> vector<17x1xf32>
    %218 = vector.broadcast %217 : vector<17x1xf32> to vector<17x17xf32>
    %219 = arith.mulf %214, %218 : vector<17x17xf32>
    %cst_101 = arith.constant dense<0.000000e+00> : vector<17x16xf32>
    %220 = tpu.matmul %219, %206, %cst_101 {dimension_numbers = #tpu.dot_dimension_numbers<[1], [0], [0], [1], [0, 0, 1, 1], [], []>} : vector<17x17xf32>, vector<17x16xf32>, vector<17x16xf32> -> vector<17x16xf32>
    %221 = vector.extract_strided_slice %203 {offsets = [0, 16], sizes = [17, 16], strides = [1, 1]} : vector<34x96xf32> to vector<17x16xf32>
    %222 = vector.extract_strided_slice %203 {offsets = [0, 48], sizes = [17, 16], strides = [1, 1]} : vector<34x96xf32> to vector<17x16xf32>
    %223 = vector.extract_strided_slice %203 {offsets = [0, 80], sizes = [17, 16], strides = [1, 1]} : vector<34x96xf32> to vector<17x16xf32>
    %cst_102 = arith.constant dense<0.000000e+00> : vector<17x17xf32>
    %224 = tpu.matmul %221, %222, %cst_102 {dimension_numbers = #tpu.dot_dimension_numbers<[1], [1], [0], [0], [0, 0, 1, 0], [], []>} : vector<17x16xf32>, vector<17x16xf32>, vector<17x17xf32> -> vector<17x17xf32>
    %cst_103 = arith.constant 2.500000e-01 : f32
    %225 = vector.broadcast %cst_103 : f32 to vector<17x17xf32>
    %226 = arith.mulf %224, %225 : vector<17x17xf32>
    %cst_104 = arith.constant dense<0xFF800000> : vector<17xf32>
    %227 = vector.multi_reduction <maximumf>, %226, %cst_104 [1] : vector<17x17xf32> to vector<17xf32>
    %228 = vector.shape_cast %227 : vector<17xf32> to vector<17x1xf32>
    %229 = vector.broadcast %228 : vector<17x1xf32> to vector<17x17xf32>
    %230 = arith.subf %226, %229 : vector<17x17xf32>
    %231 = math.exp %230 : vector<17x17xf32>
    %cst_105 = arith.constant dense<0.000000e+00> : vector<17xf32>
    %232 = vector.multi_reduction <add>, %231, %cst_105 [1] : vector<17x17xf32> to vector<17xf32>
    %233 = vector.shape_cast %232 : vector<17xf32> to vector<17x1xf32>
    %234 = tpu.reciprocal %233 {approx = true} : vector<17x1xf32> -> vector<17x1xf32>
    %235 = vector.broadcast %234 : vector<17x1xf32> to vector<17x17xf32>
    %236 = arith.mulf %231, %235 : vector<17x17xf32>
    %cst_106 = arith.constant dense<0.000000e+00> : vector<17x16xf32>
    %237 = tpu.matmul %236, %223, %cst_106 {dimension_numbers = #tpu.dot_dimension_numbers<[1], [0], [0], [1], [0, 0, 1, 1], [], []>} : vector<17x17xf32>, vector<17x16xf32>, vector<17x16xf32> -> vector<17x16xf32>
    %238 = tpu.concatenate %220, %237 in 1 : vector<17x16xf32>, vector<17x16xf32> -> vector<17x32xf32>
    %239 = vector.extract_strided_slice %203 {offsets = [17, 0], sizes = [17, 16], strides = [1, 1]} : vector<34x96xf32> to vector<17x16xf32>
    %240 = vector.extract_strided_slice %203 {offsets = [17, 32], sizes = [17, 16], strides = [1, 1]} : vector<34x96xf32> to vector<17x16xf32>
    %241 = vector.extract_strided_slice %203 {offsets = [17, 64], sizes = [17, 16], strides = [1, 1]} : vector<34x96xf32> to vector<17x16xf32>
    %cst_107 = arith.constant dense<0.000000e+00> : vector<17x17xf32>
    %242 = tpu.matmul %239, %240, %cst_107 {dimension_numbers = #tpu.dot_dimension_numbers<[1], [1], [0], [0], [0, 0, 1, 0], [], []>} : vector<17x16xf32>, vector<17x16xf32>, vector<17x17xf32> -> vector<17x17xf32>
    %cst_108 = arith.constant 2.500000e-01 : f32
    %243 = vector.broadcast %cst_108 : f32 to vector<17x17xf32>
    %244 = arith.mulf %242, %243 : vector<17x17xf32>
    %cst_109 = arith.constant dense<0xFF800000> : vector<17xf32>
    %245 = vector.multi_reduction <maximumf>, %244, %cst_109 [1] : vector<17x17xf32> to vector<17xf32>
    %246 = vector.shape_cast %245 : vector<17xf32> to vector<17x1xf32>
    %247 = vector.broadcast %246 : vector<17x1xf32> to vector<17x17xf32>
    %248 = arith.subf %244, %247 : vector<17x17xf32>
    %249 = math.exp %248 : vector<17x17xf32>
    %cst_110 = arith.constant dense<0.000000e+00> : vector<17xf32>
    %250 = vector.multi_reduction <add>, %249, %cst_110 [1] : vector<17x17xf32> to vector<17xf32>
    %251 = vector.shape_cast %250 : vector<17xf32> to vector<17x1xf32>
    %252 = tpu.reciprocal %251 {approx = true} : vector<17x1xf32> -> vector<17x1xf32>
    %253 = vector.broadcast %252 : vector<17x1xf32> to vector<17x17xf32>
    %254 = arith.mulf %249, %253 : vector<17x17xf32>
    %cst_111 = arith.constant dense<0.000000e+00> : vector<17x16xf32>
    %255 = tpu.matmul %254, %241, %cst_111 {dimension_numbers = #tpu.dot_dimension_numbers<[1], [0], [0], [1], [0, 0, 1, 1], [], []>} : vector<17x17xf32>, vector<17x16xf32>, vector<17x16xf32> -> vector<17x16xf32>
    %256 = vector.extract_strided_slice %203 {offsets = [17, 16], sizes = [17, 16], strides = [1, 1]} : vector<34x96xf32> to vector<17x16xf32>
    %257 = vector.extract_strided_slice %203 {offsets = [17, 48], sizes = [17, 16], strides = [1, 1]} : vector<34x96xf32> to vector<17x16xf32>
    %258 = vector.extract_strided_slice %203 {offsets = [17, 80], sizes = [17, 16], strides = [1, 1]} : vector<34x96xf32> to vector<17x16xf32>
    %cst_112 = arith.constant dense<0.000000e+00> : vector<17x17xf32>
    %259 = tpu.matmul %256, %257, %cst_112 {dimension_numbers = #tpu.dot_dimension_numbers<[1], [1], [0], [0], [0, 0, 1, 0], [], []>} : vector<17x16xf32>, vector<17x16xf32>, vector<17x17xf32> -> vector<17x17xf32>
    %cst_113 = arith.constant 2.500000e-01 : f32
    %260 = vector.broadcast %cst_113 : f32 to vector<17x17xf32>
    %261 = arith.mulf %259, %260 : vector<17x17xf32>
    %cst_114 = arith.constant dense<0xFF800000> : vector<17xf32>
    %262 = vector.multi_reduction <maximumf>, %261, %cst_114 [1] : vector<17x17xf32> to vector<17xf32>
    %263 = vector.shape_cast %262 : vector<17xf32> to vector<17x1xf32>
    %264 = vector.broadcast %263 : vector<17x1xf32> to vector<17x17xf32>
    %265 = arith.subf %261, %264 : vector<17x17xf32>
    %266 = math.exp %265 : vector<17x17xf32>
    %cst_115 = arith.constant dense<0.000000e+00> : vector<17xf32>
    %267 = vector.multi_reduction <add>, %266, %cst_115 [1] : vector<17x17xf32> to vector<17xf32>
    %268 = vector.shape_cast %267 : vector<17xf32> to vector<17x1xf32>
    %269 = tpu.reciprocal %268 {approx = true} : vector<17x1xf32> -> vector<17x1xf32>
    %270 = vector.broadcast %269 : vector<17x1xf32> to vector<17x17xf32>
    %271 = arith.mulf %266, %270 : vector<17x17xf32>
    %cst_116 = arith.constant dense<0.000000e+00> : vector<17x16xf32>
    %272 = tpu.matmul %271, %258, %cst_116 {dimension_numbers = #tpu.dot_dimension_numbers<[1], [0], [0], [1], [0, 0, 1, 1], [], []>} : vector<17x17xf32>, vector<17x16xf32>, vector<17x16xf32> -> vector<17x16xf32>
    %273 = tpu.concatenate %255, %272 in 1 : vector<17x16xf32>, vector<17x16xf32> -> vector<17x32xf32>
    %274 = tpu.concatenate %238, %273 in 0 : vector<17x32xf32>, vector<17x32xf32> -> vector<34x32xf32>
    %275 = arith.addf %158, %274 : vector<34x32xf32>
    %cst_117 = arith.constant dense<0.000000e+00> : vector<34xf32>
    %276 = vector.multi_reduction <add>, %275, %cst_117 [1] : vector<34x32xf32> to vector<34xf32>
    %277 = vector.shape_cast %276 : vector<34xf32> to vector<34x1xf32>
    %cst_118 = arith.constant 3.200000e+01 : f32
    %278 = vector.broadcast %cst_118 : f32 to vector<34x1xf32>
    %279 = arith.divf %277, %278 : vector<34x1xf32>
    %280 = vector.broadcast %279 : vector<34x1xf32> to vector<34x32xf32>
    %281 = arith.subf %275, %280 : vector<34x32xf32>
    %282 = arith.mulf %281, %281 : vector<34x32xf32>
    %cst_119 = arith.constant dense<0.000000e+00> : vector<34xf32>
    %283 = vector.multi_reduction <add>, %282, %cst_119 [1] : vector<34x32xf32> to vector<34xf32>
    %284 = vector.shape_cast %283 : vector<34xf32> to vector<34x1xf32>
    %cst_120 = arith.constant 3.200000e+01 : f32
    %285 = vector.broadcast %cst_120 : f32 to vector<34x1xf32>
    %286 = arith.divf %284, %285 : vector<34x1xf32>
    %287 = vector.broadcast %279 : vector<34x1xf32> to vector<34x32xf32>
    %288 = arith.subf %275, %287 : vector<34x32xf32>
    %cst_121 = arith.constant 9.99999974E-6 : f32
    %289 = vector.broadcast %cst_121 : f32 to vector<34x1xf32>
    %290 = arith.addf %286, %289 : vector<34x1xf32>
    %291 = math.rsqrt %290 : vector<34x1xf32>
    %292 = vector.broadcast %291 : vector<34x1xf32> to vector<34x32xf32>
    %293 = arith.mulf %288, %292 : vector<34x32xf32>
    %294 = vector.broadcast %164 : vector<1x32xf32> to vector<34x32xf32>
    %295 = arith.mulf %293, %294 : vector<34x32xf32>
    %296 = vector.broadcast %166 : vector<1x32xf32> to vector<34x32xf32>
    %297 = arith.addf %295, %296 : vector<34x32xf32>
    %cst_122 = arith.constant dense<0.000000e+00> : vector<34x128xf32>
    %298 = tpu.matmul %297, %172, %cst_122 {dimension_numbers = #tpu.dot_dimension_numbers<[1], [0], [0], [1], [0, 0, 1, 1], [], []>} : vector<34x32xf32>, vector<32x128xf32>, vector<34x128xf32> -> vector<34x128xf32>
    %299 = vector.broadcast %174 : vector<1x128xf32> to vector<34x128xf32>
    %300 = arith.addf %298, %299 : vector<34x128xf32>
    %cst_123 = arith.constant 5.000000e-01 : f32
    %301 = vector.broadcast %cst_123 : f32 to vector<34x128xf32>
    %302 = arith.mulf %301, %300 : vector<34x128xf32>
    %cst_124 = arith.constant 0.707106769 : f32
    %303 = vector.broadcast %cst_124 : f32 to vector<34x128xf32>
    %304 = arith.mulf %300, %303 : vector<34x128xf32>
    %305 = math.erf %304 : vector<34x128xf32>
    %cst_125 = arith.constant 1.000000e+00 : f32
    %306 = vector.broadcast %cst_125 : f32 to vector<34x128xf32>
    %307 = arith.addf %306, %305 : vector<34x128xf32>
    %308 = arith.mulf %302, %307 : vector<34x128xf32>
    %cst_126 = arith.constant dense<0.000000e+00> : vector<34x32xf32>
    %309 = tpu.matmul %308, %176, %cst_126 {dimension_numbers = #tpu.dot_dimension_numbers<[1], [0], [0], [1], [0, 0, 1, 1], [], []>} : vector<34x128xf32>, vector<128x32xf32>, vector<34x32xf32> -> vector<34x32xf32>
    %310 = vector.broadcast %178 : vector<1x32xf32> to vector<34x32xf32>
    %311 = arith.addf %309, %310 : vector<34x32xf32>
    %312 = arith.addf %275, %311 : vector<34x32xf32>
    %c104 = arith.constant 104 : index
    %c0_127 = arith.constant 0 : index
    %313 = vector.load %arg2[%c104, %c0_127] : memref<137x128xf32, #tpu.memory_space<vmem>>, vector<32x128xf32>
    %c136 = arith.constant 136 : index
    %c0_128 = arith.constant 0 : index
    %314 = vector.load %arg2[%c136, %c0_128] : memref<137x128xf32, #tpu.memory_space<vmem>>, vector<1x128xf32>
    %315 = vector.extract_strided_slice %312 {offsets = [0, 0], sizes = [1, 32], strides = [1, 1]} : vector<34x32xf32> to vector<1x32xf32>
    %316 = vector.extract_strided_slice %312 {offsets = [17, 0], sizes = [1, 32], strides = [1, 1]} : vector<34x32xf32> to vector<1x32xf32>
    %317 = tpu.concatenate %315, %316 in 0 : vector<1x32xf32>, vector<1x32xf32> -> vector<2x32xf32>
    %cst_129 = arith.constant dense<0.000000e+00> : vector<2x128xf32>
    %318 = tpu.matmul %317, %313, %cst_129 {dimension_numbers = #tpu.dot_dimension_numbers<[1], [0], [0], [1], [0, 0, 1, 1], [], []>} : vector<2x32xf32>, vector<32x128xf32>, vector<2x128xf32> -> vector<2x128xf32>
    %319 = vector.broadcast %314 : vector<1x128xf32> to vector<2x128xf32>
    %320 = arith.addf %318, %319 : vector<2x128xf32>
    %321 = vector.extract_strided_slice %320 {offsets = [0, 0], sizes = [2, 10], strides = [1, 1]} : vector<2x128xf32> to vector<2x10xf32>
    %cst_130 = arith.constant dense<0xFF800000> : vector<2xf32>
    %322 = vector.multi_reduction <maximumf>, %321, %cst_130 [1] : vector<2x10xf32> to vector<2xf32>
    %323 = vector.shape_cast %322 : vector<2xf32> to vector<2x1xf32>
    %324 = vector.broadcast %323 : vector<2x1xf32> to vector<2x10xf32>
    %325 = arith.subf %321, %324 : vector<2x10xf32>
    %326 = math.exp %325 : vector<2x10xf32>
    %cst_131 = arith.constant dense<0.000000e+00> : vector<2xf32>
    %327 = vector.multi_reduction <add>, %326, %cst_131 [1] : vector<2x10xf32> to vector<2xf32>
    %328 = vector.shape_cast %327 : vector<2xf32> to vector<2x1xf32>
    %329 = vector.broadcast %328 : vector<2x1xf32> to vector<2x10xf32>
    %330 = arith.divf %326, %329 : vector<2x10xf32>
    %c0_132 = arith.constant 0 : index
    %c0_133 = arith.constant 0 : index
    %331 = vector.load %arg4[%c0_132, %c0_133] : memref<2x10xf32, #tpu.memory_space<vmem>>, vector<2x10xf32>
    tpu.vector_store %arg4[%c0_132, %c0_133], %330 {strides = array<i32>} : memref<2x10xf32, #tpu.memory_space<vmem>>, vector<2x10xf32>,
    return
  }
  func.func @transform_0(%arg0: i32) -> (i32, i32) {
    %c0_i32 = arith.constant 0 : i32
    %c0_i32_0 = arith.constant 0 : i32
    %c0_i32_1 = arith.constant 0 : i32
    return %c0_i32, %c0_i32_0 : i32, i32
  }
  func.func @transform_1(%arg0: i32) -> (i32, i32) {
    %c0_i32 = arith.constant 0 : i32
    %c0_i32_0 = arith.constant 0 : i32
    %c0_i32_1 = arith.constant 0 : i32
    return %c0_i32, %c0_i32_0 : i32, i32
  }
  func.func @transform_2(%arg0: i32) -> (i32, i32, i32) {
    %c0_i32 = arith.constant 0 : i32
    %c0_i32_0 = arith.constant 0 : i32
    %c0_i32_1 = arith.constant 0 : i32
    %c0_i32_2 = arith.constant 0 : i32
    return %c0_i32, %c0_i32_0, %c0_i32_1 : i32, i32, i32
  }
  func.func @transform_3(%arg0: i32) -> (i32, i32) {
    %c0_i32 = arith.constant 0 : i32
    %c0_i32_0 = arith.constant 0 : i32
    %c0_i32_1 = arith.constant 0 : i32
    return %c0_i32, %c0_i32_0 : i32, i32
  }
}

</mosaic_0001>

<bundles_post_ra>
// kernel: tpu_custom_call.1
= control target key start
LH: loop header
LB: loop body
LE: loop exit
PB: predicated region body
PF: predicated region fallthrough
CT: control target
= control target key end

     0   :  { %8 = vsyncpa [#allocation3], 0  ;;  %s5599_s0 = inlined_call_operand.hbm [shape: f32[34,64], index: 0, kind: input, shape index: {}]   ;;  %s5600_s1 = inlined_call_operand.hbm [shape: f32[137,128], index: 1, kind: input, shape index: {}]   ;;  %s5601_s2 = inlined_call_operand.hbm [shape: f32[2,200,128], index: 2, kind: input, shape index: {}]   ;;  %s5602_s3 = inlined_call_operand.hbm [shape: f32[2,10], index: 3, kind: output, shape index: {}]  }
   0x1   :  { %9 = vsyncpa [#allocation6], 0 }
   0x2   :  { %10 = vsyncpa [#allocation4], 0  ;;  %s4651_s12 = smov [#allocation5]   ;;  %s4652_s14 = smov [#allocation2]  }
   0x3   :  { %s28_s13 = sshll.u32 %s4651_s12, 4  ;;  %s16_s15 = sshll.u32 %s4652_s14, 4  ;;  %s29_s13 = int_to_ptr.vmem [resolvable:$true] %s28_s13  ;;  %s4686_s15 = int_to_ptr.vmem [resolvable:$true] %s16_s15 }
   0x4   :  { %s4557_s18 = scalar_lea.hbm %s5600_s1, 2304 }
   0x5   :  { %p4558_p0 = scmp.ne.s32.totalorder %s5600_s1, %s4557_s18  ;;  %p4561_p1 = scmp.lt.u32.totalorder %s4557_s18, %s5600_s1 }
   0x7   :  { %p4563_p2 = pnand %p4561_p1, %p4558_p0 }
   0x9   :  { %4566 = shalt.err (!%p4563_p2)
}
   0xa   :  { %s4567_s23 = scalar_lea.vmem %s29_s13, 2304  ;;  %p4572_p4 = scmp.lt.s32.totalorder %s29_s13, %s29_s13 }
   0xb   :  { %p4568_p3 = scmp.ne.s32.totalorder %s29_s13, %s4567_s23  ;;  %p4573_p5 = scmp.lt.s32.totalorder %s4567_s23, %s4567_s23 }
   0xd   :  { %p4574_p6 = por %p4573_p5, %p4572_p4 }
   0xf   :  { %p4575_p7 = pnand %p4574_p6, %p4568_p3 }
  0x11   :  { %4578 = shalt.err (!%p4575_p7)
}
  0x12   :  { %s4653_s24 = smov 128   ;;  %s4654_s25 = smov 8  }
  0x13   :  { %34 = dma.hbm_to_vmem [thread:$0]  %s5600_s1, 2304, %s29_s13, [#allocation6], %s4653_s24, %s4653_s24, %s4654_s25  }
  0x14   :  { %s4579_s30 = scalar_lea.hbm %s5599_s0, 640 }
  0x15   :  { %p4580_p8 = scmp.ne.s32.totalorder %s5599_s0, %s4579_s30  ;;  %p4583_p9 = scmp.lt.u32.totalorder %s4579_s30, %s5599_s0 }
  0x17   :  { %p4585_p10 = pnand %p4583_p9, %p4580_p8 }
  0x19   :  { %4588 = shalt.err (!%p4585_p10)
}
  0x1a   :  { %s4589_s8 = scalar_lea.vmem %s4686_s15, 640  ;;  %p4594_p12 = scmp.lt.s32.totalorder %s4686_s15, %s4686_s15 }
  0x1b   :  { %p4590_p11 = scmp.ne.s32.totalorder %s4686_s15, %s4589_s8  ;;  %p4595_p13 = scmp.lt.s32.totalorder %s4589_s8, %s4589_s8 }
  0x1d   :  { %p4596_p0 = por %p4595_p13, %p4594_p12 }
  0x1f   :  { %p4597_p1 = pnand %p4596_p0, %p4590_p11 }
  0x21   :  { %4600 = shalt.err (!%p4597_p1)
}
  0x22   :  { %22 = dma.hbm_to_vmem [thread:$0]  %s5599_s0, 640, %s4686_s15, [#allocation3], %s4653_s24, %s4653_s24, %s4654_s25  }
  0x23   :  { %s4655_s10 = smov [#allocation7]   ;;  %s4601_s14 = scalar_lea.hbm %s5601_s2, 6400 }
  0x24   :  { %s40_s11 = sshll.u32 %s4655_s10, 4  ;;  %p4602_p2 = scmp.ne.s32.totalorder %s5601_s2, %s4601_s14  ;;  %s41_s11 = int_to_ptr.vmem [resolvable:$true] %s40_s11 }
  0x25   :  { %p4605_p3 = scmp.lt.u32.totalorder %s4601_s14, %s5601_s2 }
  0x27   :  { %p4607_p4 = pnand %p4605_p3, %p4602_p2 }
  0x29   :  { %4610 = shalt.err (!%p4607_p4)
}
  0x2a   :  { %s4611_s20 = scalar_lea.vmem %s41_s11, 6400  ;;  %p4616_p6 = scmp.lt.s32.totalorder %s41_s11, %s41_s11 }
  0x2b   :  { %p4612_p5 = scmp.ne.s32.totalorder %s41_s11, %s4611_s20  ;;  %p4617_p7 = scmp.lt.s32.totalorder %s4611_s20, %s4611_s20 }
  0x2d   :  { %p4618_p8 = por %p4617_p7, %p4616_p6 }
  0x2f   :  { %p4619_p9 = pnand %p4618_p8, %p4612_p5 }
  0x31   :  { %4622 = shalt.err (!%p4619_p9)
}
  0x32   :  { %46 = dma.hbm_to_vmem [thread:$0]  %s5601_s2, 6400, %s41_s11, [#allocation6], %s4653_s24, %s4653_s24, %s4654_s25  }
  0x33   :  { %4645 = dma.done.wait [#allocation3], 640  }
  0x34   :  { %4646 = vsyncadd [#allocation3], 4294966656 }
  0x35   :  { %4647 = dma.done.wait [#allocation6], 8704  }
  0x36   :  { %4648 = vsyncadd [#allocation6], 4294958592  ;;  %v4656_v0 = vmov 0.0|0.0   ;;  %vm4657_vm0 = vmmov 0   ;;  %v4658_v1 = vmov 0.0   ;;  %v61_v2 = vld [vmem:[#allocation5] sm:$0xff] }
  0x37   :  { %4156 = vmatprep.subr.bf16.mxu0 %v4656_v0  ;;  %3704 = vmatprep.mubr.msk.f32.mxu0 %vm4657_vm0, %v4658_v1  ;;  %v62_v3 = vld [vmem:[#allocation5 + $0x8] sm:$0xff]  ;;  %v63_v4 = vld [vmem:[#allocation5 + $0x10] sm:$0xff]  ;;  %v64_v6 = vld [vmem:[#allocation5 + $0x18] sm:$0xff]  ;;  %vm74_vm1 = vcmask 523264   ;;  %vm211_vm2 = vcmask 261120   ;;  %vm224_vm3 = vcmask 254976  }
  0x38   :  { %4168 = vmatprep.subr.bf16.mxu1 %v4656_v0  ;;  %3727 = vmatprep.mubr.msk.f32.mxu1 %vm4657_vm0, %v4658_v1  ;;  %v4157_v5 = vpack.c.bf16 %v62_v3, %v61_v2  ;;  %v4160_v7 = vpack.c.bf16 %v64_v6, %v63_v4  ;;  %v65_v8 = vld [vmem:[#allocation5 + $0x20] sm:$0xff]  ;;  %v66_v9 = vld [vmem:[#allocation5 + $0x28] sm:$0xff]  ;;  %v67_v11 = vld [vmem:[#allocation5 + $0x30] sm:$0xff]  ;;  %s4659_s2 = smov 96   ;;  %vm415_vm4 = vcmask 130048   ;;  %vm511_vm6 = vcmask 138240  }
  0x39   :  { %v4163_v10 = vpack.c.bf16 %v66_v9, %v65_v8  ;;  %v68_v12 = vld [vmem:[#allocation5 + $0x38] sm:$0xff]  ;;  %v57_v15 = vld [vmem:[#allocation2 + $0x8] sm:$0xff]  ;;  %v58_v16 = vld [vmem:[#allocation2 + $0x10] sm:$0xff]  ;;  %vm518_vm7 = vcmask 131072   ;;  %s4660_s21 = smov 64   ;;  %s4661_s22 = smov 80  }
  0x3a   :  { %4158 = vmatpush3.bf16.msra.mxu0 %v4157_v5  ;;  %v4166_v13 = vpack.c.bf16 %v68_v12, %v67_v11  ;;  %v56_v14 = vld [vmem:[#allocation2] sm:$0xff]  ;;  %v59_v17 = vld [vmem:[#allocation2 + $0x18] sm:$0xff]  ;;  %v69_v19 = vld [vmem:[#allocation5 + $0x40] sm:$0xff]  ;;  %vm902_vm8 = vcmask 1046528   ;;  %s4662_s23 = smov 112   ;;  %vm563_vm9 = vcmask 1040384  }
  0x3b   :  { %4159 = vmatprep.subr.bf16.mxu0 %v4656_v0  ;;  %v60_v18 = vld [vmem:[#allocation2 + $0x20] sm:$0x3]  ;;  %v70_v23 = vld [vmem:[#allocation5 + $0x48] sm:$0xff]  ;;  %v71_v28 = vld [vmem:[#allocation5 + $0x50] sm:$0xff]  ;;  %s4663_s24 = smov 48   ;;  %s4664_s25 = smov 16  }
  0x3c   :  { %v72_v44 = vld [vmem:[#allocation5 + $0x58] sm:$0xff]  ;;  %v73_v51 = vld [vmem:[#allocation5 + $0x60] sm:$0x3]  ;;  %v186_v62 = vld [vmem:[#allocation7 + $0x18] sm:$0xff]  ;;  %vm3346_vm10 = vcmask 74752   ;;  %s4665_s26 = smov [#allocation8]  }
  0x3d   :  { %v184_v59 = vld [vmem:[#allocation7 + $0x8] sm:$0xff]  ;;  %v185_v60 = vld [vmem:[#allocation7 + $0x10] sm:$0xff]  ;;  %v187_v63 = vld [vmem:[#allocation7 + $0x20] sm:$0xff]  ;;  %s3365_s27 = sshll.u32 %s4665_s26, 4  ;;  %s3366_s27 = int_to_ptr.vmem [resolvable:$true] %s3365_s27 }
  0x3e   :  { %4161 = vmatpush3.bf16.msra.mxu0 %v4160_v7  ;;  %v4169_v61 = vpack.c.bf16 %v185_v60, %v184_v59  ;;  %v4172_v2 = vpack.c.bf16 %v187_v63, %v186_v62  ;;  %vm4826_vm5 = vmpackc.low %vm415_vm4, %vm415_vm4  ;;  %s4623_s28 = scalar_lea.vmem %s3366_s27, 32  ;;  %p4628_p11 = scmp.lt.s32.totalorder %s3366_s27, %s3366_s27 }
  0x3f   :  { %4162 = vmatprep.subr.bf16.mxu0 %v4656_v0  ;;  %p4624_p10 = scmp.ne.s32.totalorder %s3366_s27, %s4623_s28  ;;  %p4629_p12 = scmp.lt.s32.totalorder %s4623_s28, %s4623_s28 }
  0x40   :  { %4170 = vmatpush3.bf16.msra.mxu1 %v4169_v61 }
  0x41   :  { %4171 = vmatprep.subr.bf16.mxu1 %v4656_v0  ;;  %p4630_p13 = por %p4629_p12, %p4628_p11 }
  0x42   :  { %4164 = vmatpush3.bf16.msra.mxu0 %v4163_v10 }
  0x43   :  { %4165 = vmatprep.subr.bf16.mxu0 %v4656_v0  ;;  %p4631_p0 = pnand %p4630_p13, %p4624_p10 }
  0x44   :  { %4173 = vmatpush3.bf16.msra.mxu1 %v4172_v2 }
  0x45   :  { %4174 = vmatprep.subr.bf16.mxu1 %v4656_v0 }
  0x46   :  { %4167 = vmatpush3.bf16.msra.mxu0 %v4166_v13 }
  0x47   :  { %4185 = vmatprep.subr.bf16.mxu0 %v4656_v0 }
  0x49   :  { %3705 = vmatmul.mubr.msk.f32.vlgmr.msra.gmra.mrb[0].mxu0 %vm74_vm1, %v56_v14 }
  0x4a   :  { %3707 = vmatprep.mubr.msk.f32.mxu0 %vm4657_vm0, %v4658_v1 }
  0x4d   :  { %3708 = vmatmul.mubr.msk.f32.gmra.mrb[2].mxu0 %vm74_vm1, %v57_v15 }
  0x4e   :  { %3710 = vmatprep.mubr.msk.f32.mxu0 %vm4657_vm0, %v4658_v1 }
  0x51   :  { %3711 = vmatmul.mubr.msk.f32.gmra.mrb[4].mxu0 %vm74_vm1, %v58_v16 }
  0x52   :  { %3713 = vmatprep.mubr.msk.f32.mxu0 %vm4657_vm0, %v4658_v1 }
  0x55   :  { %3714 = vmatmul.mubr.msk.f32.gmra.mrb[6].mxu0 %vm74_vm1, %v59_v17 }
  0x56   :  { %3716 = vmatprep.mubr.msk.f32.mxu0 %vm4657_vm0, %v4658_v1 }
  0x59   :  { %3717 = vmatmul.mubr.msk.f32.gmra.mrb[8].mxu0 %vm74_vm1, %v60_v18 }
  0x5a   :  { %3793 = vmatprep.mubr.msk.f32.mxu0 %vm4657_vm0, %v4658_v1 }
 0x11c   :  { %v156_v20 = vpop.f32.mrb[0].mxu0 }
 0x11d   :  { %v4758_v21 = vadd.f32 %v156_v20, %v69_v19  ;;  %v3706_v22 = vpop.f32.mrb[1].mxu0 }
 0x11e   :  { %v3380_v22 = vld [vmem:[#allocation7] ss:$0 sm:$0xff] }
 0x11f   :  { %v212_v24 = vsel %vm211_vm2, %v4758_v21, 0.0 }
 0x120   :  { %213 = vadd.xlane.f32.xlu0 %v212_v24  ;;  %v161_v25 = vpop.f32.mrb[2].mxu0 }
 0x121   :  { %v4762_v26 = vadd.f32 %v161_v25, %v70_v23  ;;  %v3709_v27 = vpop.f32.mrb[3].mxu0  ;;  %v3381_v25 = vld [vmem:[#allocation7 + $0x1] ss:$0 sm:$0xff] }
 0x123   :  { %v215_v29 = vsel %vm211_vm2, %v4762_v26, 0.0 }
 0x124   :  { %216 = vadd.xlane.f32.xlu0 %v215_v29  ;;  %v166_v30 = vpop.f32.mrb[4].mxu0 }
 0x125   :  { %v4766_v31 = vadd.f32 %v166_v30, %v71_v28  ;;  %v3712_v32 = vpop.f32.mrb[5].mxu0 }
 0x127   :  { %v218_v33 = vsel %vm211_vm2, %v4766_v31, 0.0 }
 0x128   :  { %219 = vadd.xlane.f32.xlu1 %v218_v33  ;;  %v171_v34 = vpop.f32.mrb[6].mxu0 }
 0x129   :  { %v3715_v35 = vpop.f32.mrb[7].mxu0  ;;  %v4773_v50 = vadd.f32 %v171_v34, %v72_v44 }
 0x12b   :  { %v221_v55 = vsel %vm211_vm2, %v4773_v50, 0.0 }
 0x12c   :  { %v176_v36 = vpop.f32.mrb[8].mxu0 }
 0x12d   :  { %v3718_v37 = vpop.f32.mrb[9].mxu0  ;;  %v4779_v56 = vadd.f32 %v176_v36, %v73_v51 }
 0x12f   :  { %v225_v58 = vsel %vm224_vm3, %v4779_v56, 0.0 }
 0x1ad   :  { %v214_v38 = vpop.xlane.xlu0 %213 }
 0x1ae   :  { %v229_v39 = vmul.f32 0.03125, %v214_v38 }
 0x1b0   :  { %v234_v40 = vsub.f32 %v4758_v21, %v229_v39 }
 0x1b1   :  { %v217_v41 = vpop.xlane.xlu0 %216 }
 0x1b2   :  { %v230_v42 = vmul.f32 0.03125, %v217_v41  ;;  %v239_v43 = vmul.f32 %v234_v40, %v234_v40 }
 0x1b4   :  { %v235_v45 = vsub.f32 %v4762_v26, %v230_v42  ;;  %v244_v46 = vsel %vm211_vm2, %v239_v43, 0.0 }
 0x1b5   :  { %245 = vadd.xlane.f32.xlu1 %v244_v46  ;;  %v220_v47 = vpop.xlane.xlu1 %219 }
 0x1b6   :  { %v231_v48 = vmul.f32 0.03125, %v220_v47  ;;  %v240_v49 = vmul.f32 %v235_v45, %v235_v45 }
 0x1b8   :  { %v236_v52 = vsub.f32 %v4766_v31, %v231_v48  ;;  %v247_v53 = vsel %vm211_vm2, %v240_v49, 0.0 }
 0x1b9   :  { %248 = vadd.xlane.f32.xlu0 %v247_v53 }
 0x1ba   :  { %v241_v54 = vmul.f32 %v236_v52, %v236_v52 }
 0x1bc   :  { %v250_v57 = vsel %vm211_vm2, %v241_v54, 0.0 }
 0x1bd   :  { %251 = vadd.xlane.f32.xlu1 %v250_v57  ;;  %222 = vadd.xlane.f32.xlu0 %v221_v55  ;;  %v4805_v57 = vld [vmem:[#allocation7 + $0x2] ss:$0 sm:$0xff] }
 0x1c1   :  { %226 = vadd.xlane.f32.xlu1 %v225_v58 }
 0x242   :  { %v246_v3 = vpop.xlane.xlu1 %245 }
 0x243   :  { %v259_v4 = vmul.f32 0.03125, %v246_v3 }
 0x245   :  { %v264_v5 = vadd.f32 1e-05, %v259_v4 }
 0x246   :  { %v249_v6 = vpop.xlane.xlu0 %248 }
 0x247   :  { %4397 = vrsqrt.f32 %v264_v5  ;;  %v260_v7 = vmul.f32 0.03125, %v249_v6 }
 0x249   :  { %v265_v8 = vadd.f32 1e-05, %v260_v7 }
 0x24a   :  { %v252_v9 = vpop.xlane.xlu1 %251  ;;  %v223_v10 = vpop.xlane.xlu0 %222 }
 0x24b   :  { %4399 = vrsqrt.f32 %v265_v8  ;;  %v261_v11 = vmul.f32 0.03125, %v252_v9  ;;  %v232_v12 = vmul.f32 0.03125, %v223_v10 }
 0x24d   :  { %v266_v13 = vadd.f32 1e-05, %v261_v11  ;;  %v237_v14 = vsub.f32 %v4773_v50, %v232_v12 }
 0x24e   :  { %v227_v15 = vpop.xlane.xlu1 %226 }
 0x24f   :  { %4401 = vrsqrt.f32 %v266_v13  ;;  %v233_v16 = vmul.f32 0.03125, %v227_v15  ;;  %v242_v17 = vmul.f32 %v237_v14, %v237_v14 }
 0x251   :  { %v4398_v18 = vpop.eup %4397  ;;  %v238_v19 = vsub.f32 %v4779_v56, %v233_v16  ;;  %v253_v20 = vsel %vm211_vm2, %v242_v17, 0.0 }
 0x252   :  { %254 = vadd.xlane.f32.xlu0 %v253_v20  ;;  %v274_v23 = vmul.f32 %v4398_v18, %v234_v40 }
 0x253   :  { %v243_v24 = vmul.f32 %v238_v19, %v238_v19 }
 0x254   :  { %v283_v27 = vmul.f32 %v3380_v22, %v274_v23 }
 0x255   :  { %v4400_v28 = vpop.eup %4399  ;;  %v256_v29 = vsel %vm224_vm3, %v243_v24, 0.0 }
 0x256   :  { %257 = vadd.xlane.f32.xlu1 %v256_v29  ;;  %v292_v30 = vadd.f32 %v3381_v25, %v283_v27  ;;  %v275_v32 = vmul.f32 %v4400_v28, %v235_v45 }
 0x258   :  { %3728 = vmatmul.mubr.msk.f32.vlgmr.msra.gmra.mrb[0].mxu1 %vm211_vm2, %v292_v30  ;;  %v284_v33 = vmul.f32 %v3380_v22, %v275_v32 }
 0x259   :  { %v4402_v34 = vpop.eup %4401  ;;  %3730 = vmatprep.mubr.msk.f32.mxu1 %vm4657_vm0, %v4658_v1 }
 0x25a   :  { %v293_v35 = vadd.f32 %v3381_v25, %v284_v33  ;;  %v276_v36 = vmul.f32 %v4402_v34, %v236_v52 }
 0x25c   :  { %3731 = vmatmul.mubr.msk.f32.gmra.mrb[2].mxu1 %vm211_vm2, %v293_v35  ;;  %v285_v37 = vmul.f32 %v3380_v22, %v276_v36 }
 0x25d   :  { %3733 = vmatprep.mubr.msk.f32.mxu1 %vm4657_vm0, %v4658_v1 }
 0x25e   :  { %v294_v38 = vadd.f32 %v3381_v25, %v285_v37 }
 0x260   :  { %3734 = vmatmul.mubr.msk.f32.gmra.mrb[4].mxu1 %vm211_vm2, %v294_v38 }
 0x261   :  { %3736 = vmatprep.mubr.msk.f32.mxu1 %vm4657_vm0, %v4658_v1 }
 0x2df   :  { %v255_v39 = vpop.xlane.xlu0 %254 }
 0x2e0   :  { %v262_v40 = vmul.f32 0.03125, %v255_v39 }
 0x2e2   :  { %v267_v41 = vadd.f32 1e-05, %v262_v40 }
 0x2e3   :  { %v258_v42 = vpop.xlane.xlu1 %257 }
 0x2e4   :  { %4403 = vrsqrt.f32 %v267_v41  ;;  %v263_v43 = vmul.f32 0.03125, %v258_v42 }
 0x2e6   :  { %v268_v44 = vadd.f32 1e-05, %v263_v43 }
 0x2e8   :  { %4405 = vrsqrt.f32 %v268_v44 }
 0x2ee   :  { %v4404_v45 = vpop.eup %4403 }
 0x2ef   :  { %v277_v46 = vmul.f32 %v4404_v45, %v237_v14 }
 0x2f1   :  { %v286_v47 = vmul.f32 %v3380_v22, %v277_v46 }
 0x2f2   :  { %v4406_v48 = vpop.eup %4405 }
 0x2f3   :  { %v295_v49 = vadd.f32 %v3381_v25, %v286_v47  ;;  %v278_v51 = vmul.f32 %v4406_v48, %v238_v19 }
 0x2f5   :  { %3737 = vmatmul.mubr.msk.f32.gmra.mrb[6].mxu1 %vm211_vm2, %v295_v49  ;;  %v287_v52 = vmul.f32 %v3380_v22, %v278_v51 }
 0x2f6   :  { %3739 = vmatprep.mubr.msk.f32.mxu1 %vm4657_vm0, %v4658_v1 }
 0x2f7   :  { %v296_v53 = vadd.f32 %v3381_v25, %v287_v52 }
 0x2f9   :  { %3740 = vmatmul.mubr.msk.f32.gmra.mrb[8].mxu1 %vm211_vm2, %v296_v53 }
 0x2fa   :  { %3748 = vmatprep.mubr.msk.f32.mxu1 %vm4657_vm0, %v4658_v1 }
 0x32b   :  { %v382_v54 = vpop.f32.mrb[0].mxu1 }
 0x32c   :  { %v3729_v55 = vpop.f32.mrb[1].mxu1  ;;  %v4808_v59 = vadd.f32 %v4805_v57, %v382_v54 }
 0x32f   :  { %v387_v58 = vpop.f32.mrb[2].mxu1 }
 0x330   :  { %v4811_v60 = vadd.f32 %v4805_v57, %v387_v58  ;;  %v3732_v61 = vpop.f32.mrb[3].mxu1 }
 0x332   :  { %v4815_v62 = vpack.i.bf16 %v4811_v60, %v4808_v59 }
 0x333   :  { %v392_v63 = vpop.f32.mrb[4].mxu1 }
 0x334   :  { %v4818_v2 = vadd.f32 %v4805_v57, %v392_v63  ;;  %v3735_v3 = vpop.f32.mrb[5].mxu1  ;;  %4318 = vrot.lane.b32.xlu0 %v4815_v62, %s4659_s2 }
 0x336   :  { %413 = vrot.lane.b32.xlu1 %v4818_v2, %s4659_s2  ;;  %v903_v43 = vrot.slane %v4818_v2, 1 }
 0x3a6   :  { %v4319_v4 = vpop.permute.xlu0 %4318 }
 0x3a7   :  { %v4321_v5 = vunpack.i.h.bf16 %v4319_v4  ;;  %v4320_v6 = vunpack.i.l.bf16 %v4319_v4 }
 0x3a8   :  { %v414_v9 = vpop.permute.xlu1 %413 }
 0x3a9   :  { %v4175_v8 = vpack.c.bf16 %v4321_v5, %v4320_v6 }
 0x3ab   :  { %4177 = vmatpush3.bf16.xpose.msk.msra.mxu1 %vm4826_vm5, %v4175_v8 }
 0x3ac   :  { %3746 = vmatprep.subr.mxu1 %v4658_v1 }
 0x3b3   :  { %3747 = vmatpush3.xpose.msk.msra.mxu1 %vm415_vm4, %v414_v9 }
 0x3b4   :  { %4178 = vmatprep.subr.bf16.mxu1 %v4656_v0 }
 0x3b6   :  { %3749 = vmatmul.mubr.msk.f32.vlgmr.msra.gmra.mrb[10].mxu1 %vm415_vm4, %v4808_v59 }
 0x3b7   :  { %3751 = vmatprep.mubr.msk.f32.mxu1 %vm4657_vm0, %v4658_v1 }
 0x3ba   :  { %3752 = vmatmul.mubr.msk.f32.gmra.mrb[12].mxu1 %vm415_vm4, %v4811_v60 }
 0x3bb   :  { %3754 = vmatprep.mubr.msk.f32.mxu1 %vm4657_vm0, %v4658_v1 }
 0x3be   :  { %3755 = vmatmul.mubr.msk.f32.gmra.mrb[14].mxu1 %vm415_vm4, %v4818_v2 }
 0x3bf   :  { %3763 = vmatprep.mubr.msk.f32.mxu1 %vm4657_vm0, %v4658_v1 }
 0x3c8   :  { %v397_v10 = vpop.f32.mrb[6].mxu1 }
 0x3c9   :  { %v3738_v11 = vpop.f32.mrb[7].mxu1  ;;  %v398_v40 = vadd.f32 %v4805_v57, %v397_v10 }
 0x3cb   :  { %v904_v42 = vrot.slane %v398_v40, 1 }
 0x3cc   :  { %v402_v12 = vpop.f32.mrb[8].mxu1 }
 0x3cd   :  { %v3741_v13 = vpop.f32.mrb[9].mxu1  ;;  %v403_v39 = vadd.f32 %v4805_v57, %v402_v12  ;;  %v4870_v45 = vsel %vm902_vm8, %v903_v43, %v904_v42 }
 0x3cf   :  { %v4856_v41 = vrot.slane %v403_v39, 1 }
 0x3d1   :  { %v4865_v44 = vsel %vm902_vm8, %v904_v42, %v4856_v41 }
 0x3d2   :  { %v4874_v46 = vpack.i.bf16 %v4865_v44, %v4870_v45 }
 0x489   :  { %v494_v14 = vpop.f32.mrb[10].mxu1 }
 0x48a   :  { %v508_v15 = vmul.f32 0.25, %v494_v14  ;;  %v3750_v16 = vpop.f32.mrb[11].mxu1 }
 0x48c   :  { %v512_v17 = vsel %vm511_vm6, %v508_v15, -inf }
 0x48d   :  { %513 = vmax.xlane.f32.xlu1 %v512_v17  ;;  %v499_v18 = vpop.f32.mrb[12].mxu1 }
 0x48e   :  { %v509_v19 = vmul.f32 0.25, %v499_v18  ;;  %v3753_v20 = vpop.f32.mrb[13].mxu1 }
 0x490   :  { %v515_v22 = vsel %vm511_vm6, %v509_v19, -inf }
 0x491   :  { %516 = vmax.xlane.f32.xlu0 %v515_v22  ;;  %v504_v23 = vpop.f32.mrb[14].mxu1 }
 0x492   :  { %v510_v24 = vmul.f32 0.25, %v504_v23  ;;  %v3756_v25 = vpop.f32.mrb[15].mxu1 }
 0x494   :  { %v519_v27 = vsel %vm518_vm7, %v510_v24, -inf }
 0x495   :  { %520 = vmax.xlane.f32.xlu0 %v519_v27 }
 0x51a   :  { %v514_v28 = vpop.xlane.xlu1 %513 }
 0x51b   :  { %v522_v29 = vsub.f32 %v508_v15, %v514_v28 }
 0x51d   :  { %v525_v30 = vmul.f32 1.442695, %v522_v29 }
 0x51e   :  { %v517_v32 = vpop.xlane.xlu0 %516 }
 0x51f   :  { %4407 = vpow2.f32 %v525_v30  ;;  %v523_v33 = vsub.f32 %v509_v19, %v517_v32 }
 0x521   :  { %v527_v34 = vmul.f32 1.442695, %v523_v33 }
 0x522   :  { %v521_v47 = vpop.xlane.xlu0 %520 }
 0x523   :  { %4409 = vpow2.f32 %v527_v34  ;;  %v524_v48 = vsub.f32 %v510_v24, %v521_v47 }
 0x525   :  { %v529_v49 = vmul.f32 1.442695, %v524_v48 }
 0x527   :  { %4411 = vpow2.f32 %v529_v49 }
 0x529   :  { %v4408_v35 = vpop.eup %4407 }
 0x52a   :  { %v531_v36 = vsel %vm511_vm6, %v4408_v35, 0.0 }
 0x52b   :  { %532 = vadd.xlane.f32.xlu1 %v531_v36 }
 0x52d   :  { %v4410_v37 = vpop.eup %4409 }
 0x52e   :  { %v534_v38 = vsel %vm511_vm6, %v4410_v37, 0.0 }
 0x52f   :  { %535 = vadd.xlane.f32.xlu0 %v534_v38 }
 0x531   :  { %v4412_v51 = vpop.eup %4411 }
 0x532   :  { %v537_v52 = vsel %vm518_vm7, %v4412_v51, 0.0 }
 0x53c   :  { %550 = vrot.lane.b32.xlu1 %v4818_v2, %s4660_s21 }
 0x540   :  { %4328 = vrot.lane.b32.xlu1 %v4815_v62, %s4661_s22 }
 0x544   :  { %656 = vrot.lane.b32.xlu1 %v4818_v2, %s4661_s22 }
 0x545   :  { %4323 = vrot.lane.b32.xlu0 %v4815_v62, %s4660_s21 }
 0x549   :  { %4333 = vrot.lane.b32.xlu0 %v4874_v46, %s4659_s2 }
 0x54d   :  { %648 = vrot.lane.b32.xlu0 %v4811_v60, %s4662_s23 }
 0x551   :  { %912 = vrot.lane.b32.xlu0 %v4856_v41, %s4659_s2 }
 0x555   :  { %1151 = vrot.lane.b32.xlu0 %v4856_v41, %s4661_s22 }
 0x559   :  { %1143 = vrot.lane.b32.xlu0 %v4865_v44, %s4662_s23 }
 0x568   :  { %538 = vadd.xlane.f32.xlu1 %v537_v52 }
 0x579   :  { %646 = vrot.lane.b32.xlu1 %v4808_v59, %s4662_s23 }
 0x57d   :  { %650 = vrot.lane.b32.xlu1 %v4818_v2, %s4662_s23 }
 0x581   :  { %4338 = vrot.lane.b32.xlu1 %v4874_v46, %s4661_s22 }
 0x585   :  { %1141 = vrot.lane.b32.xlu1 %v4870_v45, %s4662_s23 }
 0x589   :  { %1145 = vrot.lane.b32.xlu1 %v4856_v41, %s4662_s23 }
 0x5b8   :  { %v533_v53 = vpop.xlane.xlu1 %532 }
 0x5b9   :  { %4413 = vrcp.f32 %v533_v53 }
 0x5bc   :  { %v536_v54 = vpop.xlane.xlu0 %535  ;;  %v551_v57 = vpop.permute.xlu1 %550 }
 0x5bd   :  { %4415 = vrcp.f32 %v536_v54 }
 0x5c0   :  { %v4324_v55 = vpop.permute.xlu0 %4323  ;;  %v4329_v63 = vpop.permute.xlu1 %4328 }
 0x5c1   :  { %v4326_v58 = vunpack.i.h.bf16 %v4324_v55  ;;  %v4325_v59 = vunpack.i.l.bf16 %v4324_v55  ;;  %v4331_v5 = vunpack.i.h.bf16 %v4329_v63  ;;  %v4330_v6 = vunpack.i.l.bf16 %v4329_v63 }
 0x5c3   :  { %v4179_v60 = vpack.c.bf16 %v4326_v58, %v4325_v59  ;;  %v4414_v61 = vpop.eup %4413  ;;  %v4182_v9 = vpack.c.bf16 %v4331_v5, %v4330_v6 }
 0x5c4   :  { %v543_v3 = vmul.f32 %v4414_v61, %v4408_v35  ;;  %v657_v10 = vpop.permute.xlu1 %656  ;;  %v4334_v12 = vpop.permute.xlu0 %4333 }
 0x5c5   :  { %4180 = vmatpush3.bf16.msra.mxu1 %v4179_v60  ;;  %v4336_v16 = vunpack.i.h.bf16 %v4334_v12  ;;  %v4335_v17 = vunpack.i.l.bf16 %v4334_v12 }
 0x5c6   :  { %3761 = vmatprep.subr.mxu1 %v4658_v1 }
 0x5c7   :  { %v4416_v4 = vpop.eup %4415  ;;  %v4189_v19 = vpack.c.bf16 %v4336_v16, %v4335_v17 }
 0x5c8   :  { %v544_v8 = vmul.f32 %v4416_v4, %v4410_v37  ;;  %v649_v20 = vpop.permute.xlu0 %648 }
 0x5c9   :  { %3762 = vmatpush3.msk.msra.mxu1 %vm563_vm9, %v551_v57 }
 0x5ca   :  { %3764 = vmatmul.mubr.msk.f32.vlgmr.msra.gmra.mrb[16].mxu1 %vm511_vm6, %v543_v3  ;;  %4181 = vmatprep.subr.bf16.mxu1 %v4656_v0 }
 0x5cb   :  { %3766 = vmatprep.mubr.msk.f32.mxu1 %vm4657_vm0, %v4658_v1 }
 0x5cc   :  { %v913_v25 = vpop.permute.xlu0 %912 }
 0x5ce   :  { %3767 = vmatmul.mubr.msk.f32.gmra.mrb[18].mxu1 %vm511_vm6, %v544_v8 }
 0x5cf   :  { %3769 = vmatprep.mubr.msk.f32.mxu1 %vm4657_vm0, %v4658_v1 }
 0x5d0   :  { %4184 = vmatpush3.bf16.xpose.msk.msra.mxu1 %vm4826_vm5, %v4182_v9  ;;  %v1152_v28 = vpop.permute.xlu0 %1151 }
 0x5d1   :  { %3776 = vmatprep.subr.mxu1 %v4658_v1 }
 0x5d4   :  { %v1144_v30 = vpop.permute.xlu0 %1143 }
 0x5d8   :  { %3777 = vmatpush3.xpose.msk.msra.mxu1 %vm415_vm4, %v657_v10 }
 0x5d9   :  { %4188 = vmatprep.subr.bf16.mxu1 %v4656_v0 }
 0x5f5   :  { %v539_v11 = vpop.xlane.xlu1 %538 }
 0x5f6   :  { %4417 = vrcp.f32 %v539_v11 }
 0x5f9   :  { %v647_v13 = vpop.permute.xlu1 %646 }
 0x5fd   :  { %v651_v18 = vpop.permute.xlu1 %650 }
 0x600   :  { %v4418_v14 = vpop.eup %4417 }
 0x601   :  { %v545_v15 = vmul.f32 %v4418_v14, %v4412_v51  ;;  %v4339_v22 = vpop.permute.xlu1 %4338 }
 0x602   :  { %v4341_v23 = vunpack.i.h.bf16 %v4339_v22  ;;  %v4340_v24 = vunpack.i.l.bf16 %v4339_v22 }
 0x603   :  { %3770 = vmatmul.mubr.msk.f32.gmra.mrb[20].mxu1 %vm511_vm6, %v545_v15 }
 0x604   :  { %3778 = vmatprep.mubr.msk.f32.mxu1 %vm4657_vm0, %v4658_v1  ;;  %v4196_v27 = vpack.c.bf16 %v4341_v23, %v4340_v24 }
 0x605   :  { %v1142_v29 = vpop.permute.xlu1 %1141 }
 0x607   :  { %3779 = vmatmul.mubr.msk.f32.vlgmr.msra.gmra.mrb[22].mxu1 %vm415_vm4, %v647_v13 }
 0x608   :  { %4191 = vmatpush3.bf16.xpose.msk.msra.mxu1 %vm4826_vm5, %v4189_v19  ;;  %3781 = vmatprep.mubr.msk.f32.mxu1 %vm4657_vm0, %v4658_v1 }
 0x609   :  { %3806 = vmatprep.subr.mxu1 %v4658_v1  ;;  %v1146_v32 = vpop.permute.xlu1 %1145 }
 0x60b   :  { %3782 = vmatmul.mubr.msk.f32.gmra.mrb[24].mxu1 %vm415_vm4, %v649_v20 }
 0x60c   :  { %3784 = vmatprep.mubr.msk.f32.mxu1 %vm4657_vm0, %v4658_v1 }
 0x60f   :  { %3785 = vmatmul.mubr.msk.f32.gmra.mrb[26].mxu1 %vm415_vm4, %v651_v18 }
 0x610   :  { %3807 = vmatpush3.xpose.msk.msra.mxu1 %vm415_vm4, %v913_v25  ;;  %3808 = vmatprep.mubr.msk.f32.mxu1 %vm4657_vm0, %v4658_v1 }
 0x611   :  { %4195 = vmatprep.subr.bf16.mxu1 %v4656_v0 }
 0x613   :  { %3809 = vmatmul.mubr.msk.f32.vlgmr.msra.gmra.mrb[28].mxu1 %vm415_vm4, %v4870_v45 }
 0x614   :  { %4198 = vmatpush3.bf16.xpose.msk.msra.mxu1 %vm4826_vm5, %v4196_v27  ;;  %3811 = vmatprep.mubr.msk.f32.mxu1 %vm4657_vm0, %v4658_v1 }
 0x615   :  { %3836 = vmatprep.subr.mxu1 %v4658_v1 }
 0x617   :  { %3812 = vmatmul.mubr.msk.f32.gmra.mrb[30].mxu1 %vm415_vm4, %v4865_v44 }
 0x618   :  { %3814 = vmatprep.mubr.msk.f32.mxu1 %vm4657_vm0, %v4658_v1 }
 0x61b   :  { %3815 = vmatmul.mubr.msk.f32.gmra.mrb[32].mxu1 %vm415_vm4, %v4856_v41 }
 0x61c   :  { %3837 = vmatpush3.xpose.msk.msra.mxu1 %vm415_vm4, %v1152_v28  ;;  %3838 = vmatprep.mubr.msk.f32.mxu1 %vm4657_vm0, %v4658_v1 }
 0x61d   :  { %4202 = vmatprep.subr.bf16.mxu1 %v4656_v0 }
 0x61f   :  { %3839 = vmatmul.mubr.msk.f32.vlgmr.msra.gmra.mrb[34].mxu1 %vm415_vm4, %v1142_v29 }
 0x620   :  { %3841 = vmatprep.mubr.msk.f32.mxu1 %vm4657_vm0, %v4658_v1 }
 0x623   :  { %3842 = vmatmul.mubr.msk.f32.gmra.mrb[36].mxu1 %vm415_vm4, %v1144_v30 }
 0x624   :  { %3844 = vmatprep.mubr.msk.f32.mxu1 %vm4657_vm0, %v4658_v1 }
 0x627   :  { %3845 = vmatmul.mubr.msk.f32.gmra.mrb[38].mxu1 %vm415_vm4, %v1146_v32 }
 0x628   :  { %3870 = vmatprep.mubr.msk.f32.mxu1 %vm4657_vm0, %v4658_v1 }
 0x69d   :  { %v4954_v33 = vpop.f32.mrb[16].mxu1 }
 0x69e   :  { %v3765_v34 = vpop.f32.mrb[17].mxu1 }
 0x6a1   :  { %v4956_v35 = vpop.f32.mrb[18].mxu1 }
 0x6a2   :  { %v3768_v36 = vpop.f32.mrb[19].mxu1 }
 0x6d6   :  { %v4958_v37 = vpop.f32.mrb[20].mxu1 }
 0x6d7   :  { %v3771_v38 = vpop.f32.mrb[21].mxu1 }
 0x6da   :  { %v736_v39 = vpop.f32.mrb[22].mxu1 }
 0x6db   :  { %v750_v40 = vmul.f32 0.25, %v736_v39  ;;  %v3780_v42 = vpop.f32.mrb[23].mxu1 }
 0x6dd   :  { %v753_v43 = vsel %vm511_vm6, %v750_v40, -inf }
 0x6de   :  { %754 = vmax.xlane.f32.xlu0 %v753_v43  ;;  %v741_v44 = vpop.f32.mrb[24].mxu1 }
 0x6df   :  { %v751_v45 = vmul.f32 0.25, %v741_v44  ;;  %v3783_v47 = vpop.f32.mrb[25].mxu1 }
 0x6e1   :  { %v756_v48 = vsel %vm511_vm6, %v751_v45, -inf }
 0x6e2   :  { %757 = vmax.xlane.f32.xlu1 %v756_v48  ;;  %v746_v49 = vpop.f32.mrb[26].mxu1 }
 0x6e3   :  { %v752_v51 = vmul.f32 0.25, %v746_v49  ;;  %v3786_v52 = vpop.f32.mrb[27].mxu1 }
 0x6e5   :  { %v759_v53 = vsel %vm518_vm7, %v752_v51, -inf }
 0x6e6   :  { %760 = vmax.xlane.f32.xlu0 %v759_v53  ;;  %v992_v54 = vpop.f32.mrb[28].mxu1 }
 0x6e7   :  { %v1006_v55 = vmul.f32 0.25, %v992_v54  ;;  %v3810_v57 = vpop.f32.mrb[29].mxu1 }
 0x6e9   :  { %v1009_v58 = vsel %vm511_vm6, %v1006_v55, -inf }
 0x6ea   :  { %1010 = vmax.xlane.f32.xlu0 %v1009_v58  ;;  %v997_v59 = vpop.f32.mrb[30].mxu1 }
 0x6eb   :  { %v1007_v60 = vmul.f32 0.25, %v997_v59  ;;  %v3813_v61 = vpop.f32.mrb[31].mxu1 }
 0x6ed   :  { %v1012_v63 = vsel %vm511_vm6, %v1007_v60, -inf }
 0x6ee   :  { %1013 = vmax.xlane.f32.xlu0 %v1012_v63  ;;  %v1002_v3 = vpop.f32.mrb[32].mxu1 }
 0x6ef   :  { %v1008_v4 = vmul.f32 0.25, %v1002_v3  ;;  %v3816_v5 = vpop.f32.mrb[33].mxu1 }
 0x6f1   :  { %v1015_v6 = vsel %vm518_vm7, %v1008_v4, -inf }
 0x6f2   :  { %1016 = vmax.xlane.f32.xlu1 %v1015_v6  ;;  %v1231_v8 = vpop.f32.mrb[34].mxu1 }
 0x6f3   :  { %v1245_v9 = vmul.f32 0.25, %v1231_v8  ;;  %v3840_v10 = vpop.f32.mrb[35].mxu1 }
 0x6f5   :  { %v1248_v11 = vsel %vm511_vm6, %v1245_v9, -inf }
 0x6f6   :  { %1249 = vmax.xlane.f32.xlu0 %v1248_v11  ;;  %v1236_v12 = vpop.f32.mrb[36].mxu1 }
 0x6f7   :  { %v4967_v13 = vmul.f32 0.25, %v1236_v12  ;;  %v3843_v14 = vpop.f32.mrb[37].mxu1 }
 0x6f9   :  { %v1251_v15 = vsel %vm511_vm6, %v4967_v13, -inf }
 0x6fa   :  { %1252 = vmax.xlane.f32.xlu1 %v1251_v15  ;;  %v1241_v16 = vpop.f32.mrb[38].mxu1 }
 0x6fb   :  { %v1247_v17 = vmul.f32 0.25, %v1241_v16  ;;  %v3846_v18 = vpop.f32.mrb[39].mxu1 }
 0x6fd   :  { %v1254_v19 = vsel %vm518_vm7, %v1247_v17, -inf }
 0x6fe   :  { %1255 = vmax.xlane.f32.xlu0 %v1254_v19 }
 0x70b   :  { %790 = vrot.lane.b32.xlu1 %v4818_v2, %s4663_s24 }
 0x70f   :  { %4348 = vrot.lane.b32.xlu1 %v4874_v46, %s4660_s21 }
 0x714   :  { %4343 = vrot.lane.b32.xlu0 %v4815_v62, %s4663_s24 }
 0x76b   :  { %v755_v20 = vpop.xlane.xlu0 %754 }
 0x76c   :  { %v762_v22 = vsub.f32 %v750_v40, %v755_v20 }
 0x76e   :  { %v765_v23 = vmul.f32 1.442695, %v762_v22 }
 0x76f   :  { %v758_v24 = vpop.xlane.xlu1 %757 }
 0x770   :  { %4419 = vpow2.f32 %v765_v23  ;;  %v763_v25 = vsub.f32 %v751_v45, %v758_v24 }
 0x772   :  { %v767_v27 = vmul.f32 1.442695, %v763_v25 }
 0x773   :  { %v761_v28 = vpop.xlane.xlu0 %760 }
 0x774   :  { %4421 = vpow2.f32 %v767_v27  ;;  %v764_v29 = vsub.f32 %v752_v51, %v761_v28 }
 0x776   :  { %v769_v30 = vmul.f32 1.442695, %v764_v29 }
 0x777   :  { %v1011_v32 = vpop.xlane.xlu0 %1010 }
 0x778   :  { %4423 = vpow2.f32 %v769_v30  ;;  %v1018_v2 = vsub.f32 %v1006_v55, %v1011_v32 }
 0x77a   :  { %v4978_v34 = vpop.eup %4419  ;;  %v1021_v36 = vmul.f32 1.442695, %v1018_v2 }
 0x77b   :  { %v1014_v38 = vpop.xlane.xlu0 %1013  ;;  %v771_v62 = vsel %vm511_vm6, %v4978_v34, 0.0 }
 0x77c   :  { %4425 = vpow2.f32 %v1021_v36  ;;  %v1019_v39 = vsub.f32 %v1007_v60, %v1014_v38  ;;  %772 = vadd.xlane.f32.xlu1 %v771_v62 }
 0x77e   :  { %v4982_v40 = vpop.eup %4421  ;;  %v1023_v42 = vmul.f32 1.442695, %v1019_v39 }
 0x77f   :  { %v1017_v43 = vpop.xlane.xlu1 %1016  ;;  %v774_v44 = vsel %vm511_vm6, %v4982_v40, 0.0 }
 0x780   :  { %4427 = vpow2.f32 %v1023_v42  ;;  %v1020_v45 = vsub.f32 %v1008_v4, %v1017_v43  ;;  %775 = vadd.xlane.f32.xlu0 %v774_v44 }
 0x782   :  { %v4986_v47 = vpop.eup %4423  ;;  %v1025_v48 = vmul.f32 1.442695, %v1020_v45 }
 0x783   :  { %v1250_v49 = vpop.xlane.xlu0 %1249  ;;  %v777_v51 = vsel %vm518_vm7, %v4986_v47, 0.0 }
 0x784   :  { %4429 = vpow2.f32 %v1025_v48  ;;  %v1257_v52 = vsub.f32 %v1245_v9, %v1250_v49  ;;  %778 = vadd.xlane.f32.xlu1 %v777_v51 }
 0x786   :  { %v4990_v53 = vpop.eup %4425  ;;  %v1260_v54 = vmul.f32 1.442695, %v1257_v52 }
 0x787   :  { %v1027_v55 = vsel %vm511_vm6, %v4990_v53, 0.0  ;;  %v1253_v9 = vpop.xlane.xlu1 %1252 }
 0x788   :  { %4431 = vpow2.f32 %v1260_v54  ;;  %1028 = vadd.xlane.f32.xlu0 %v1027_v55  ;;  %v1258_v16 = vsub.f32 %v4967_v13, %v1253_v9 }
 0x78a   :  { %v4994_v57 = vpop.eup %4427 }
 0x78b   :  { %v1256_v58 = vpop.xlane.xlu0 %1255  ;;  %v1030_v59 = vsel %vm511_vm6, %v4994_v57, 0.0  ;;  %v791_v12 = vpop.permute.xlu1 %790 }
 0x78c   :  { %v1259_v60 = vsub.f32 %v1247_v17, %v1256_v58  ;;  %1031 = vadd.xlane.f32.xlu1 %v1030_v59  ;;  %v1262_v17 = vmul.f32 1.442695, %v1258_v16 }
 0x78e   :  { %v4998_v61 = vpop.eup %4429  ;;  %v1264_v63 = vmul.f32 1.442695, %v1259_v60 }
 0x78f   :  { %v4344_v3 = vpop.permute.xlu0 %4343  ;;  %v1033_v4 = vsel %vm518_vm7, %v4998_v61, 0.0  ;;  %v4349_v20 = vpop.permute.xlu1 %4348 }
 0x790   :  { %4433 = vpow2.f32 %v1264_v63  ;;  %v4346_v5 = vunpack.i.h.bf16 %v4344_v3  ;;  %1034 = vadd.xlane.f32.xlu1 %v1033_v4  ;;  %v4345_v6 = vunpack.i.l.bf16 %v4344_v3  ;;  %v4351_v24 = vunpack.i.h.bf16 %v4349_v20 }
 0x791   :  { %4435 = vpow2.f32 %v1262_v17  ;;  %v4350_v25 = vunpack.i.l.bf16 %v4349_v20 }
 0x792   :  { %v5002_v8 = vpop.eup %4431  ;;  %v4186_v10 = vpack.c.bf16 %v4346_v5, %v4345_v6 }
 0x793   :  { %v1266_v11 = vsel %vm511_vm6, %v5002_v8, 0.0  ;;  %v4193_v29 = vpack.c.bf16 %v4351_v24, %v4350_v25 }
 0x794   :  { %1267 = vadd.xlane.f32.xlu1 %v1266_v11  ;;  %4187 = vmatpush3.bf16.msra.mxu0 %v4186_v10 }
 0x795   :  { %3791 = vmatprep.subr.mxu0 %v4658_v1 }
 0x798   :  { %3792 = vmatpush3.msk.msra.mxu0 %vm563_vm9, %v791_v12 }
 0x799   :  { %4192 = vmatprep.subr.bf16.mxu0 %v4656_v0 }
 0x79a   :  { %v5008_v14 = vpop.eup %4433 }
 0x79b   :  { %v1272_v15 = vsel %vm518_vm7, %v5008_v14, 0.0  ;;  %v5018_v18 = vpop.eup %4435 }
 0x79c   :  { %1273 = vadd.xlane.f32.xlu1 %v1272_v15  ;;  %v1269_v19 = vsel %vm511_vm6, %v5018_v18, 0.0 }
 0x79e   :  { %1046 = vrot.lane.b32.xlu0 %v4856_v41, %s4660_s21 }
 0x7ad   :  { %4353 = vrot.lane.b32.xlu1 %v4874_v46, %s4663_s24 }
 0x7bd   :  { %1270 = vadd.xlane.f32.xlu0 %v1269_v19 }
 0x7d3   :  { %1285 = vrot.lane.b32.xlu0 %v4856_v41, %s4663_s24 }
 0x809   :  { %v773_v22 = vpop.xlane.xlu1 %772 }
 0x80a   :  { %4437 = vrcp.f32 %v773_v22 }
 0x80d   :  { %v776_v23 = vpop.xlane.xlu0 %775 }
 0x80e   :  { %4439 = vrcp.f32 %v776_v23 }
 0x811   :  { %v779_v13 = vpop.xlane.xlu1 %778 }
 0x812   :  { %4441 = vrcp.f32 %v779_v13 }
 0x814   :  { %v4438_v46 = vpop.eup %4437 }
 0x815   :  { %v783_v27 = vmul.f32 %v4438_v46, %v4978_v34  ;;  %v1029_v28 = vpop.xlane.xlu0 %1028 }
 0x816   :  { %4443 = vrcp.f32 %v1029_v28 }
 0x817   :  { %3794 = vmatmul.mubr.msk.f32.vlgmr.msra.gmra.mrb[10].mxu0 %vm511_vm6, %v783_v27 }
 0x818   :  { %v4440_v30 = vpop.eup %4439  ;;  %4194 = vmatpush3.bf16.msra.mxu0 %v4193_v29  ;;  %3796 = vmatprep.mubr.msk.f32.mxu0 %vm4657_vm0, %v4658_v1 }
 0x819   :  { %v1032_v41 = vpop.xlane.xlu1 %1031  ;;  %v1047_v32 = vpop.permute.xlu0 %1046  ;;  %3821 = vmatprep.subr.mxu0 %v4658_v1  ;;  %v784_v2 = vmul.f32 %v4440_v30, %v4982_v40 }
 0x81a   :  { %4445 = vrcp.f32 %v1032_v41 }
 0x81b   :  { %3797 = vmatmul.mubr.msk.f32.gmra.mrb[12].mxu0 %vm511_vm6, %v784_v2 }
 0x81c   :  { %v4442_v34 = vpop.eup %4441  ;;  %3822 = vmatpush3.msk.msra.mxu0 %vm563_vm9, %v1047_v32  ;;  %3799 = vmatprep.mubr.msk.f32.mxu0 %vm4657_vm0, %v4658_v1 }
 0x81d   :  { %v1035_v36 = vpop.xlane.xlu1 %1034  ;;  %v785_v38 = vmul.f32 %v4442_v34, %v4986_v47  ;;  %4199 = vmatprep.subr.bf16.mxu0 %v4656_v0 }
 0x81e   :  { %4447 = vrcp.f32 %v1035_v36 }
 0x81f   :  { %3800 = vmatmul.mubr.msk.f32.gmra.mrb[14].mxu0 %vm511_vm6, %v785_v38 }
 0x820   :  { %v4444_v62 = vpop.eup %4443  ;;  %3823 = vmatprep.mubr.msk.f32.mxu0 %vm4657_vm0, %v4658_v1 }
 0x821   :  { %v1039_v39 = vmul.f32 %v4444_v62, %v4990_v53  ;;  %v1268_v42 = vpop.xlane.xlu1 %1267 }
 0x822   :  { %4449 = vrcp.f32 %v1268_v42 }
 0x823   :  { %3824 = vmatmul.mubr.msk.f32.vlgmr.msra.gmra.mrb[16].mxu0 %vm511_vm6, %v1039_v39 }
 0x824   :  { %v4446_v40 = vpop.eup %4445  ;;  %3826 = vmatprep.mubr.msk.f32.mxu0 %vm4657_vm0, %v4658_v1 }
 0x825   :  { %v1040_v43 = vmul.f32 %v4446_v40, %v4994_v57 }
 0x827   :  { %3827 = vmatmul.mubr.msk.f32.gmra.mrb[18].mxu0 %vm511_vm6, %v1040_v43 }
 0x828   :  { %v4448_v44 = vpop.eup %4447  ;;  %3829 = vmatprep.mubr.msk.f32.mxu0 %vm4657_vm0, %v4658_v1 }
 0x829   :  { %v1274_v45 = vpop.xlane.xlu1 %1273  ;;  %v1041_v47 = vmul.f32 %v4448_v44, %v4998_v61 }
 0x82b   :  { %3830 = vmatmul.mubr.msk.f32.gmra.mrb[20].mxu0 %vm511_vm6, %v1041_v47 }
 0x82c   :  { %3853 = vmatprep.mubr.msk.f32.mxu0 %vm4657_vm0, %v4658_v1  ;;  %v4450_v54 = vpop.eup %4449 }
 0x82d   :  { %v4354_v48 = vpop.permute.xlu1 %4353  ;;  %v1278_v55 = vmul.f32 %v4450_v54, %v5002_v8 }
 0x82e   :  { %v4356_v49 = vunpack.i.h.bf16 %v4354_v48  ;;  %v4355_v51 = vunpack.i.l.bf16 %v4354_v48 }
 0x830   :  { %v4200_v52 = vpack.c.bf16 %v4356_v49, %v4355_v51 }
 0x832   :  { %4201 = vmatpush3.bf16.msra.mxu0 %v4200_v52 }
 0x833   :  { %3851 = vmatprep.subr.mxu0 %v4658_v1 }
 0x84a   :  { %v1271_v53 = vpop.xlane.xlu0 %1270 }
 0x84b   :  { %4451 = vrcp.f32 %v1271_v53 }
 0x84c   :  { %4453 = vrcp.f32 %v1274_v45 }
 0x84e   :  { %v1286_v57 = vpop.permute.xlu0 %1285 }
 0x84f   :  { %3852 = vmatpush3.msk.msra.mxu0 %vm563_vm9, %v1286_v57  ;;  %v189_v57 = vld [vmem:[#allocation7 + $0x28] sm:$0xff] }
 0x850   :  { %3854 = vmatmul.mubr.msk.f32.vlgmr.msra.gmra.mrb[22].mxu0 %vm511_vm6, %v1278_v55  ;;  %4208 = vmatprep.subr.bf16.mxu0 %v4656_v0 }
 0x851   :  { %3856 = vmatprep.mubr.msk.f32.mxu0 %vm4657_vm0, %v4658_v1 }
 0x855   :  { %v4452_v58 = vpop.eup %4451 }
 0x856   :  { %v1279_v59 = vmul.f32 %v4452_v58, %v5018_v18  ;;  %v4454_v60 = vpop.eup %4453  ;;  %v190_v58 = vld [vmem:[#allocation7 + $0x30] sm:$0xff] }
 0x857   :  { %v1280_v61 = vmul.f32 %v4454_v60, %v5008_v14  ;;  %v191_v60 = vld [vmem:[#allocation7 + $0x38] sm:$0xff] }
 0x858   :  { %3857 = vmatmul.mubr.msk.f32.gmra.mrb[24].mxu0 %vm511_vm6, %v1279_v59  ;;  %v4203_v59 = vpack.c.bf16 %v190_v58, %v189_v57 }
 0x859   :  { %3859 = vmatprep.mubr.msk.f32.mxu0 %vm4657_vm0, %v4658_v1 }
 0x85a   :  { %4204 = vmatpush3.bf16.msra.mxu1 %v4203_v59 }
 0x85b   :  { %4205 = vmatprep.subr.bf16.mxu1 %v4656_v0 }
 0x85c   :  { %3860 = vmatmul.mubr.msk.f32.gmra.mrb[26].mxu0 %vm511_vm6, %v1280_v61  ;;  %v192_v61 = vld [vmem:[#allocation7 + $0x40] sm:$0xff] }
 0x85d   :  { %3917 = vmatprep.mubr.msk.f32.mxu0 %vm4657_vm0, %v4658_v1 }
 0x8ea   :  { %v871_v63 = vpop.f32.mrb[10].mxu0 }
 0x8eb   :  { %888 = vrot.lane.b32.xlu0 %v871_v63, %s4664_s25  ;;  %v3795_v3 = vpop.f32.mrb[11].mxu0  ;;  %v4206_v63 = vpack.c.bf16 %v192_v61, %v191_v60 }
 0x8ed   :  { %4207 = vmatpush3.bf16.msra.mxu1 %v4206_v63 }
 0x8ee   :  { %v876_v4 = vpop.f32.mrb[12].mxu0  ;;  %4232 = vmatprep.subr.bf16.mxu1 %v4656_v0 }
 0x8ef   :  { %890 = vrot.lane.b32.xlu1 %v876_v4, %s4664_s25  ;;  %v3798_v5 = vpop.f32.mrb[13].mxu0 }
 0x8f2   :  { %v881_v6 = vpop.f32.mrb[14].mxu0 }
 0x8f3   :  { %892 = vrot.lane.b32.xlu1 %v881_v6, %s4664_s25  ;;  %v3801_v8 = vpop.f32.mrb[15].mxu0 }
 0x8f6   :  { %v1127_v9 = vpop.f32.mrb[16].mxu0 }
 0x8f7   :  { %v3825_v10 = vpop.f32.mrb[17].mxu0 }
 0x8fa   :  { %v1132_v11 = vpop.f32.mrb[18].mxu0 }
 0x8fb   :  { %v3828_v12 = vpop.f32.mrb[19].mxu0 }
 0x8fe   :  { %v1137_v14 = vpop.f32.mrb[20].mxu0 }
 0x8ff   :  { %v3831_v15 = vpop.f32.mrb[21].mxu0 }
 0x923   :  { %v1366_v16 = vpop.f32.mrb[22].mxu0 }
 0x924   :  { %1383 = vrot.lane.b32.xlu0 %v1366_v16, %s4664_s25  ;;  %v3855_v17 = vpop.f32.mrb[23].mxu0 }
 0x92b   :  { %v1371_v18 = vpop.f32.mrb[24].mxu0 }
 0x92c   :  { %1385 = vrot.lane.b32.xlu0 %v1371_v18, %s4664_s25  ;;  %v3858_v19 = vpop.f32.mrb[25].mxu0 }
 0x92f   :  { %v1376_v20 = vpop.f32.mrb[26].mxu0 }
 0x930   :  { %1387 = vrot.lane.b32.xlu1 %v1376_v20, %s4664_s25  ;;  %v3861_v22 = vpop.f32.mrb[27].mxu0  ;;  %v194_v20 = vld [vmem:[#allocation7 + $0x48] sm:$0xff] }
 0x931   :  { %v195_v22 = vld [vmem:[#allocation7 + $0x50] sm:$0xff] }
 0x95d   :  { %v889_v23 = vpop.permute.xlu0 %888 }
 0x95e   :  { %v897_v13 = vsel %vm415_vm4, %v4954_v33, %v889_v23  ;;  %v196_v23 = vld [vmem:[#allocation7 + $0x58] sm:$0xff] }
 0x95f   :  { %v5075_v24 = vadd.f32 %v897_v13, %v4758_v21  ;;  %v4209_v13 = vpack.c.bf16 %v195_v22, %v194_v20  ;;  %v207_v20 = vld [vmem:[#allocation7 + $0xb0] sm:$0xff] }
 0x961   :  { %v891_v25 = vpop.permute.xlu1 %890  ;;  %v1412_v46 = vsel %vm211_vm2, %v5075_v24, 0.0  ;;  %4210 = vmatpush3.bf16.msra.mxu0 %v4209_v13  ;;  %v209_v13 = vld [vmem:[#allocation7 + $0xc0] sm:$0xff] }
 0x962   :  { %v898_v27 = vsel %vm415_vm4, %v4956_v35, %v891_v25  ;;  %1413 = vadd.xlane.f32.xlu0 %v1412_v46  ;;  %v197_v25 = vld [vmem:[#allocation7 + $0x60] sm:$0xff]  ;;  %4211 = vmatprep.subr.bf16.mxu0 %v4656_v0 }
 0x963   :  { %v5082_v28 = vadd.f32 %v898_v27, %v4762_v26  ;;  %v4212_v46 = vpack.c.bf16 %v197_v25, %v196_v23  ;;  %v198_v27 = vld [vmem:[#allocation7 + $0x68] sm:$0xff]  ;;  %v208_v23 = vld [vmem:[#allocation7 + $0xb8] sm:$0xff] }
 0x964   :  { %v4230_v25 = vpack.c.bf16 %v209_v13, %v208_v23 }
 0x965   :  { %v1415_v29 = vsel %vm211_vm2, %v5082_v28, 0.0  ;;  %v893_v30 = vpop.permute.xlu1 %892  ;;  %4213 = vmatpush3.bf16.msra.mxu0 %v4212_v46  ;;  %v3430_v46 = vld [vmem:[#allocation7 + $0x3] ss:$0 sm:$0xff] }
 0x966   :  { %1416 = vadd.xlane.f32.xlu1 %v1415_v29  ;;  %v899_v32 = vsel %vm415_vm4, %v4958_v37, %v893_v30  ;;  %v199_v29 = vld [vmem:[#allocation7 + $0x70] sm:$0xff]  ;;  %4214 = vmatprep.subr.bf16.mxu0 %v4656_v0 }
 0x967   :  { %v4215_v30 = vpack.c.bf16 %v199_v29, %v198_v27 }
 0x969   :  { %4216 = vmatpush3.bf16.msra.mxu0 %v4215_v30 }
 0x96a   :  { %4217 = vmatprep.subr.bf16.mxu0 %v4656_v0 }
 0x996   :  { %v1384_v33 = vpop.permute.xlu0 %1383 }
 0x997   :  { %v1392_v21 = vsel %vm415_vm4, %v1127_v9, %v1384_v33 }
 0x998   :  { %v1398_v41 = vrot.slane %v1392_v21, 7 }
 0x99a   :  { %v1406_v2 = vsel %vm563_vm9, %v899_v32, %v1398_v41 }
 0x99b   :  { %v5091_v35 = vadd.f32 %v1406_v2, %v4766_v31 }
 0x99d   :  { %v1418_v26 = vsel %vm211_vm2, %v5091_v35, 0.0 }
 0x99e   :  { %1419 = vadd.xlane.f32.xlu0 %v1418_v26  ;;  %v1386_v34 = vpop.permute.xlu0 %1385 }
 0x99f   :  { %v1393_v36 = vsel %vm415_vm4, %v1132_v11, %v1386_v34 }
 0x9a0   :  { %v1399_v38 = vrot.slane %v1393_v36, 7  ;;  %v3428_v36 = vld [vmem:[#allocation7 + $0x5] ss:$0 sm:$0xff] }
 0x9a2   :  { %v1388_v62 = vpop.permute.xlu1 %1387  ;;  %v1400_v39 = vsel %vm563_vm9, %v1398_v41, %v1399_v38 }
 0x9a3   :  { %v1394_v40 = vsel %vm415_vm4, %v1137_v14, %v1388_v62  ;;  %v5099_v37 = vadd.f32 %v1400_v39, %v4773_v50  ;;  %v3429_v62 = vld [vmem:[#allocation7 + $0x6] ss:$0 sm:$0xff] }
 0x9a4   :  { %v1401_v42 = vrot.slane %v1394_v40, 7 }
 0x9a5   :  { %v1421_v31 = vsel %vm211_vm2, %v5099_v37, 0.0 }
 0x9a6   :  { %1422 = vadd.xlane.f32.xlu0 %v1421_v31  ;;  %v1402_v43 = vsel %vm563_vm9, %v1399_v38, %v1401_v42 }
 0x9a7   :  { %v5105_v44 = vadd.f32 %v1402_v43, %v4779_v56 }
 0x9a9   :  { %v1424_v45 = vsel %vm224_vm3, %v5105_v44, 0.0 }
 0x9aa   :  { %1425 = vadd.xlane.f32.xlu0 %v1424_v45 }
 0x9ef   :  { %v1414_v47 = vpop.xlane.xlu0 %1413 }
 0x9f0   :  { %v1427_v48 = vmul.f32 0.03125, %v1414_v47 }
 0x9f2   :  { %v5110_v49 = vsub.f32 %v5075_v24, %v1427_v48 }
 0x9f3   :  { %v1417_v50 = vpop.xlane.xlu1 %1416 }
 0x9f4   :  { %v1428_v51 = vmul.f32 0.03125, %v1417_v50  ;;  %v1437_v52 = vmul.f32 %v5110_v49, %v5110_v49 }
 0x9f6   :  { %v5115_v53 = vsub.f32 %v5082_v28, %v1428_v51  ;;  %v1442_v56 = vsel %vm211_vm2, %v1437_v52, 0.0 }
 0x9f7   :  { %1443 = vadd.xlane.f32.xlu1 %v1442_v56 }
 0x9f8   :  { %v1438_v54 = vmul.f32 %v5115_v53, %v5115_v53 }
 0x9fa   :  { %v1445_v55 = vsel %vm211_vm2, %v1438_v54, 0.0 }
 0x9fb   :  { %1446 = vadd.xlane.f32.xlu0 %v1445_v55 }
 0xa2b   :  { %v1420_v3 = vpop.xlane.xlu0 %1419 }
 0xa2c   :  { %v1429_v4 = vmul.f32 0.03125, %v1420_v3 }
 0xa2e   :  { %v5124_v5 = vsub.f32 %v5091_v35, %v1429_v4 }
 0xa30   :  { %v1439_v6 = vmul.f32 %v5124_v5, %v5124_v5 }
 0xa32   :  { %v1448_v8 = vsel %vm211_vm2, %v1439_v6, 0.0 }
 0xa33   :  { %v1423_v9 = vpop.xlane.xlu0 %1422  ;;  %1449 = vadd.xlane.f32.xlu1 %v1448_v8 }
 0xa34   :  { %v1430_v10 = vmul.f32 0.03125, %v1423_v9  ;;  %v200_v9 = vld [vmem:[#allocation7 + $0x78] sm:$0xff] }
 0xa36   :  { %v5130_v11 = vsub.f32 %v5099_v37, %v1430_v10  ;;  %v201_v10 = vld [vmem:[#allocation7 + $0x80] sm:$0xff] }
 0xa37   :  { %v1426_v12 = vpop.xlane.xlu0 %1425 }
 0xa38   :  { %v1431_v14 = vmul.f32 0.03125, %v1426_v12  ;;  %v1440_v15 = vmul.f32 %v5130_v11, %v5130_v11  ;;  %v202_v12 = vld [vmem:[#allocation7 + $0x88] sm:$0xff] }
 0xa3a   :  { %v5135_v16 = vsub.f32 %v5105_v44, %v1431_v14  ;;  %v1451_v17 = vsel %vm211_vm2, %v1440_v15, 0.0  ;;  %v203_v14 = vld [vmem:[#allocation7 + $0x90] sm:$0xff] }
 0xa3b   :  { %1452 = vadd.xlane.f32.xlu0 %v1451_v17  ;;  %v4221_v15 = vpack.c.bf16 %v203_v14, %v202_v12  ;;  %v205_v17 = vld [vmem:[#allocation7 + $0xa0] sm:$0xff] }
 0xa3c   :  { %v1441_v18 = vmul.f32 %v5135_v16, %v5135_v16 }
 0xa3e   :  { %v1454_v19 = vsel %vm224_vm3, %v1441_v18, 0.0 }
 0xa3f   :  { %1455 = vadd.xlane.f32.xlu1 %v1454_v19  ;;  %v206_v19 = vld [vmem:[#allocation7 + $0xa8] sm:$0xff] }
 0xa40   :  { %v4227_v22 = vpack.c.bf16 %v207_v20, %v206_v19 }
 0xa84   :  { %v1444_v33 = vpop.xlane.xlu1 %1443 }
 0xa85   :  { %v1457_v21 = vmul.f32 0.03125, %v1444_v33 }
 0xa87   :  { %v1462_v41 = vadd.f32 1e-05, %v1457_v21 }
 0xa88   :  { %v1447_v32 = vpop.xlane.xlu0 %1446 }
 0xa89   :  { %4455 = vrsqrt.f32 %v1462_v41  ;;  %v1458_v2 = vmul.f32 0.03125, %v1447_v32 }
 0xa8b   :  { %v1463_v26 = vadd.f32 1e-05, %v1458_v2 }
 0xa8d   :  { %4457 = vrsqrt.f32 %v1463_v26 }
 0xa93   :  { %v4456_v34 = vpop.eup %4455 }
 0xa94   :  { %v1472_v38 = vmul.f32 %v4456_v34, %v5110_v49 }
 0xa96   :  { %v1481_v39 = vmul.f32 %v3428_v36, %v1472_v38 }
 0xa97   :  { %v4458_v40 = vpop.eup %4457 }
 0xa98   :  { %v1490_v42 = vadd.f32 %v3429_v62, %v1481_v39  ;;  %v1473_v31 = vmul.f32 %v4458_v40, %v5115_v53 }
 0xa9a   :  { %3871 = vmatmul.mubr.msk.f32.vlgmr.msra.gmra.mrb[40].mxu1 %vm211_vm2, %v1490_v42  ;;  %v1482_v43 = vmul.f32 %v3428_v36, %v1473_v31 }
 0xa9b   :  { %3873 = vmatprep.mubr.msk.f32.mxu1 %vm4657_vm0, %v4658_v1 }
 0xa9c   :  { %v1491_v45 = vadd.f32 %v3429_v62, %v1482_v43 }
 0xa9e   :  { %3874 = vmatmul.mubr.msk.f32.gmra.mrb[42].mxu1 %vm211_vm2, %v1491_v45 }
 0xa9f   :  { %3876 = vmatprep.mubr.msk.f32.mxu1 %vm4657_vm0, %v4658_v1 }
 0xac0   :  { %v1450_v47 = vpop.xlane.xlu1 %1449 }
 0xac1   :  { %v1459_v48 = vmul.f32 0.03125, %v1450_v47 }
 0xac3   :  { %v1464_v49 = vadd.f32 1e-05, %v1459_v48 }
 0xac5   :  { %4459 = vrsqrt.f32 %v1464_v49 }
 0xac8   :  { %v1453_v50 = vpop.xlane.xlu0 %1452 }
 0xac9   :  { %v1460_v51 = vmul.f32 0.03125, %v1453_v50 }
 0xacb   :  { %v1465_v52 = vadd.f32 1e-05, %v1460_v51 }
 0xacc   :  { %v1456_v53 = vpop.xlane.xlu1 %1455 }
 0xacd   :  { %4461 = vrsqrt.f32 %v1465_v52  ;;  %v1461_v56 = vmul.f32 0.03125, %v1456_v53 }
 0xacf   :  { %v4460_v54 = vpop.eup %4459  ;;  %v1466_v55 = vadd.f32 1e-05, %v1461_v56 }
 0xad0   :  { %v1474_v57 = vmul.f32 %v4460_v54, %v5124_v5 }
 0xad1   :  { %4463 = vrsqrt.f32 %v1466_v55 }
 0xad2   :  { %v1483_v58 = vmul.f32 %v3428_v36, %v1474_v57 }
 0xad4   :  { %v1492_v59 = vadd.f32 %v3429_v62, %v1483_v58 }
 0xad6   :  { %3877 = vmatmul.mubr.msk.f32.gmra.mrb[44].mxu1 %vm211_vm2, %v1492_v59 }
 0xad7   :  { %v4462_v60 = vpop.eup %4461  ;;  %3879 = vmatprep.mubr.msk.f32.mxu1 %vm4657_vm0, %v4658_v1 }
 0xad8   :  { %v1475_v61 = vmul.f32 %v4462_v60, %v5130_v11  ;;  %v4218_v11 = vpack.c.bf16 %v201_v10, %v200_v9  ;;  %v3436_v9 = vld [vmem:[#allocation7 + $0x4] ss:$0 sm:$0xff] }
 0xada   :  { %v1484_v63 = vmul.f32 %v3428_v36, %v1475_v61  ;;  %4219 = vmatpush3.bf16.msra.mxu0 %v4218_v11 }
 0xadb   :  { %v4464_v3 = vpop.eup %4463  ;;  %4220 = vmatprep.subr.bf16.mxu0 %v4656_v0 }
 0xadc   :  { %v1493_v4 = vadd.f32 %v3429_v62, %v1484_v63  ;;  %v1476_v6 = vmul.f32 %v4464_v3, %v5135_v16  ;;  %v204_v16 = vld [vmem:[#allocation7 + $0x98] sm:$0xff] }
 0xadd   :  { %v4224_v18 = vpack.c.bf16 %v205_v17, %v204_v16 }
 0xade   :  { %3880 = vmatmul.mubr.msk.f32.gmra.mrb[46].mxu1 %vm211_vm2, %v1493_v4  ;;  %v1485_v8 = vmul.f32 %v3428_v36, %v1476_v6  ;;  %4222 = vmatpush3.bf16.msra.mxu0 %v4221_v15 }
 0xadf   :  { %3882 = vmatprep.mubr.msk.f32.mxu1 %vm4657_vm0, %v4658_v1  ;;  %4223 = vmatprep.subr.bf16.mxu0 %v4656_v0 }
 0xae0   :  { %v1494_v5 = vadd.f32 %v3429_v62, %v1485_v8 }
 0xae2   :  { %3883 = vmatmul.mubr.msk.f32.gmra.mrb[48].mxu1 %vm211_vm2, %v1494_v5  ;;  %4225 = vmatpush3.bf16.msra.mxu0 %v4224_v18 }
 0xae3   :  { %3940 = vmatprep.mubr.msk.f32.mxu1 %vm4657_vm0, %v4658_v1  ;;  %4226 = vmatprep.subr.bf16.mxu0 %v4656_v0 }
 0xae6   :  { %4228 = vmatpush3.bf16.msra.mxu0 %v4227_v22 }
 0xae7   :  { %4229 = vmatprep.subr.bf16.mxu0 %v4656_v0 }
 0xaea   :  { %4231 = vmatpush3.bf16.msra.mxu0 %v4230_v25 }
 0xaeb   :  { %4242 = vmatprep.subr.bf16.mxu0 %v4656_v0 }
 0xb6d   :  { %v1580_v27 = vpop.f32.mrb[40].mxu1 }
 0xb6e   :  { %v1581_v29 = vadd.f32 %v3430_v46, %v1580_v27  ;;  %v3872_v30 = vpop.f32.mrb[41].mxu1 }
 0xb70   :  { %v1609_v33 = vmul.f32 0.70710677, %v1581_v29  ;;  %v1604_v34 = vmul.f32 0.5, %v1581_v29 }
 0xb71   :  { %v1585_v21 = vpop.f32.mrb[42].mxu1 }
 0xb72   :  { %4465 = verf.f32 %v1609_v33  ;;  %v1586_v41 = vadd.f32 %v3430_v46, %v1585_v21  ;;  %v3875_v32 = vpop.f32.mrb[43].mxu1 }
 0xb74   :  { %v1610_v2 = vmul.f32 0.70710677, %v1586_v41  ;;  %v1605_v39 = vmul.f32 0.5, %v1586_v41 }
 0xb76   :  { %4467 = verf.f32 %v1610_v2 }
 0xb7c   :  { %v4466_v26 = vpop.eup %4465 }
 0xb7d   :  { %v1619_v36 = vadd.f32 1.0, %v4466_v26 }
 0xb7f   :  { %v1624_v38 = vmul.f32 %v1619_v36, %v1604_v34 }
 0xb80   :  { %v4468_v62 = vpop.eup %4467 }
 0xb81   :  { %v1620_v40 = vadd.f32 1.0, %v4468_v62  ;;  %3918 = vmatmul.mubr.f32.vlgmr.msra.gmra.mrb[28].mxu0 %v1624_v38 }
 0xb82   :  { %3920 = vmatprep.mubr.msk.f32.mxu0 %vm4657_vm0, %v4658_v1 }
 0xb83   :  { %v1625_v42 = vmul.f32 %v1620_v40, %v1605_v39 }
 0xb85   :  { %3921 = vmatmul.mubr.f32.gmra.mrb[30].mxu0 %v1625_v42  ;;  %v1733_v42 = vld [vmem:[#allocation7 + $0xd0] sm:$0xff] }
 0xb86   :  { %3923 = vmatprep.mubr.msk.f32.mxu0 %vm4657_vm0, %v4658_v1 }
 0xba9   :  { %v1590_v31 = vpop.f32.mrb[44].mxu1 }
 0xbaa   :  { %v1591_v43 = vadd.f32 %v3430_v46, %v1590_v31  ;;  %v3878_v45 = vpop.f32.mrb[45].mxu1  ;;  %v1734_v31 = vld [vmem:[#allocation7 + $0xd8] sm:$0xff] }
 0xbab   :  { %v1735_v45 = vld [vmem:[#allocation7 + $0xe0] sm:$0xff] }
 0xbac   :  { %v1611_v47 = vmul.f32 0.70710677, %v1591_v43  ;;  %v1606_v57 = vmul.f32 0.5, %v1591_v43  ;;  %v4233_v43 = vpack.c.bf16 %v1734_v31, %v1733_v42 }
 0xbae   :  { %4469 = verf.f32 %v1611_v47  ;;  %4234 = vmatpush3.bf16.msra.mxu1 %v4233_v43  ;;  %v1736_v47 = vld [vmem:[#allocation7 + $0xe8] sm:$0xff] }
 0xbaf   :  { %4235 = vmatprep.subr.bf16.mxu1 %v4656_v0 }
 0xbb1   :  { %v1595_v48 = vpop.f32.mrb[46].mxu1 }
 0xbb2   :  { %v1596_v49 = vadd.f32 %v3430_v46, %v1595_v48  ;;  %v3881_v50 = vpop.f32.mrb[47].mxu1  ;;  %v4236_v48 = vpack.c.bf16 %v1736_v47, %v1735_v45  ;;  %v3439_v47 = vld [vmem:[#allocation7 + $0xca] ss:$0 sm:$0xff] }
 0xbb4   :  { %v1612_v51 = vmul.f32 0.70710677, %v1596_v49  ;;  %v1607_v61 = vmul.f32 0.5, %v1596_v49  ;;  %4237 = vmatpush3.bf16.msra.mxu1 %v4236_v48 }
 0xbb5   :  { %v1600_v52 = vpop.f32.mrb[48].mxu1  ;;  %4238 = vmatprep.subr.bf16.mxu1 %v4656_v0 }
 0xbb6   :  { %4471 = verf.f32 %v1612_v51  ;;  %v1601_v53 = vadd.f32 %v3430_v46, %v1600_v52  ;;  %v3884_v56 = vpop.f32.mrb[49].mxu1 }
 0xbb8   :  { %v4470_v54 = vpop.eup %4469  ;;  %v1613_v55 = vmul.f32 0.70710677, %v1601_v53  ;;  %v1608_v6 = vmul.f32 0.5, %v1601_v53 }
 0xbb9   :  { %v1621_v58 = vadd.f32 1.0, %v4470_v54 }
 0xbba   :  { %4473 = verf.f32 %v1613_v55 }
 0xbbb   :  { %v1626_v59 = vmul.f32 %v1621_v58, %v1606_v57 }
 0xbbd   :  { %3924 = vmatmul.mubr.f32.gmra.mrb[32].mxu0 %v1626_v59 }
 0xbbe   :  { %3926 = vmatprep.mubr.msk.f32.mxu0 %vm4657_vm0, %v4658_v1 }
 0xbc0   :  { %v4472_v60 = vpop.eup %4471 }
 0xbc1   :  { %v1622_v63 = vadd.f32 1.0, %v4472_v60 }
 0xbc3   :  { %v1627_v3 = vmul.f32 %v1622_v63, %v1607_v61 }
 0xbc4   :  { %v4474_v4 = vpop.eup %4473 }
 0xbc5   :  { %v1623_v8 = vadd.f32 1.0, %v4474_v4  ;;  %3927 = vmatmul.mubr.f32.gmra.mrb[34].mxu0 %v1627_v3 }
 0xbc6   :  { %3929 = vmatprep.mubr.msk.f32.mxu0 %vm4657_vm0, %v4658_v1 }
 0xbc7   :  { %v1628_v5 = vmul.f32 %v1623_v8, %v1608_v6 }
 0xbc9   :  { %3930 = vmatmul.mubr.f32.gmra.mrb[36].mxu0 %v1628_v5 }
 0xbca   :  { %3976 = vmatprep.mubr.msk.f32.mxu0 %vm4657_vm0, %v4658_v1 }
 0xc54   :  { %v1699_v10 = vpop.f32.mrb[28].mxu0 }
 0xc55   :  { %v1700_v11 = vadd.f32 %v3436_v9, %v1699_v10  ;;  %v3919_v12 = vpop.f32.mrb[29].mxu0 }
 0xc56   :  { %v3437_v12 = vld [vmem:[#allocation7 + $0xc8] ss:$0 sm:$0xff] }
 0xc57   :  { %v5180_v14 = vadd.f32 %v1700_v11, %v5075_v24 }
 0xc58   :  { %v1704_v15 = vpop.f32.mrb[30].mxu0 }
 0xc59   :  { %v1705_v16 = vadd.f32 %v3436_v9, %v1704_v15  ;;  %v3922_v17 = vpop.f32.mrb[31].mxu0  ;;  %v1760_v18 = vsel %vm211_vm2, %v5180_v14, 0.0 }
 0xc5a   :  { %1761 = vadd.xlane.f32.xlu0 %v1760_v18 }
 0xc5b   :  { %v5185_v19 = vadd.f32 %v1705_v16, %v5082_v28  ;;  %v3438_v16 = vld [vmem:[#allocation7 + $0xc9] ss:$0 sm:$0xff] }
 0xc5d   :  { %v1763_v20 = vsel %vm211_vm2, %v5185_v19, 0.0 }
 0xc5e   :  { %1764 = vadd.xlane.f32.xlu1 %v1763_v20 }
 0xc90   :  { %v1709_v22 = vpop.f32.mrb[32].mxu0 }
 0xc91   :  { %v1710_v23 = vadd.f32 %v3436_v9, %v1709_v22  ;;  %v3925_v13 = vpop.f32.mrb[33].mxu0 }
 0xc93   :  { %v5190_v24 = vadd.f32 %v1710_v23, %v5091_v35 }
 0xc95   :  { %v1766_v25 = vsel %vm211_vm2, %v5190_v24, 0.0 }
 0xc96   :  { %1767 = vadd.xlane.f32.xlu0 %v1766_v25 }
 0xc98   :  { %v1714_v46 = vpop.f32.mrb[34].mxu0 }
 0xc99   :  { %v1715_v27 = vadd.f32 %v3436_v9, %v1714_v46  ;;  %v3928_v29 = vpop.f32.mrb[35].mxu0 }
 0xc9b   :  { %v5195_v28 = vadd.f32 %v1715_v27, %v5099_v37 }
 0xc9c   :  { %v1719_v30 = vpop.f32.mrb[36].mxu0 }
 0xc9d   :  { %v1720_v33 = vadd.f32 %v3436_v9, %v1719_v30  ;;  %v3931_v21 = vpop.f32.mrb[37].mxu0  ;;  %v1769_v41 = vsel %vm211_vm2, %v5195_v28, 0.0 }
 0xc9e   :  { %1770 = vadd.xlane.f32.xlu1 %v1769_v41 }
 0xc9f   :  { %v5200_v35 = vadd.f32 %v1720_v33, %v5105_v44 }
 0xca1   :  { %v1772_v32 = vsel %vm224_vm3, %v5200_v35, 0.0 }
 0xca2   :  { %1773 = vadd.xlane.f32.xlu0 %v1772_v32 }
 0xce7   :  { %v1762_v2 = vpop.xlane.xlu0 %1761 }
 0xce8   :  { %v1775_v26 = vmul.f32 0.03125, %v1762_v2 }
 0xcea   :  { %v1780_v34 = vsub.f32 %v5180_v14, %v1775_v26 }
 0xceb   :  { %v1765_v37 = vpop.xlane.xlu1 %1764 }
 0xcec   :  { %v1776_v36 = vmul.f32 0.03125, %v1765_v37  ;;  %v1785_v38 = vmul.f32 %v1780_v34, %v1780_v34 }
 0xcee   :  { %v1781_v62 = vsub.f32 %v5185_v19, %v1776_v36  ;;  %v1790_v39 = vsel %vm211_vm2, %v1785_v38, 0.0 }
 0xcef   :  { %1791 = vadd.xlane.f32.xlu1 %v1790_v39 }
 0xcf0   :  { %v1786_v40 = vmul.f32 %v1781_v62, %v1781_v62 }
 0xcf2   :  { %v1793_v44 = vsel %vm211_vm2, %v1786_v40, 0.0 }
 0xcf3   :  { %1794 = vadd.xlane.f32.xlu0 %v1793_v44 }
 0xd23   :  { %v1768_v49 = vpop.xlane.xlu0 %1767 }
 0xd24   :  { %v1777_v50 = vmul.f32 0.03125, %v1768_v49 }
 0xd26   :  { %v1782_v51 = vsub.f32 %v5190_v24, %v1777_v50 }
 0xd28   :  { %v1787_v52 = vmul.f32 %v1782_v51, %v1782_v51 }
 0xd2a   :  { %v1796_v53 = vsel %vm211_vm2, %v1787_v52, 0.0 }
 0xd2b   :  { %1797 = vadd.xlane.f32.xlu1 %v1796_v53  ;;  %v1771_v56 = vpop.xlane.xlu1 %1770 }
 0xd2c   :  { %v1778_v54 = vmul.f32 0.03125, %v1771_v56 }
 0xd2e   :  { %v1783_v55 = vsub.f32 %v5195_v28, %v1778_v54 }
 0xd2f   :  { %v1774_v57 = vpop.xlane.xlu0 %1773 }
 0xd30   :  { %v1779_v58 = vmul.f32 0.03125, %v1774_v57  ;;  %v1788_v59 = vmul.f32 %v1783_v55, %v1783_v55 }
 0xd32   :  { %v1784_v60 = vsub.f32 %v5200_v35, %v1779_v58  ;;  %v1799_v61 = vsel %vm211_vm2, %v1788_v59, 0.0 }
 0xd33   :  { %1800 = vadd.xlane.f32.xlu0 %v1799_v61 }
 0xd34   :  { %v1789_v63 = vmul.f32 %v1784_v60, %v1784_v60 }
 0xd36   :  { %v1802_v3 = vsel %vm224_vm3, %v1789_v63, 0.0 }
 0xd37   :  { %1803 = vadd.xlane.f32.xlu1 %v1802_v3 }
 0xd7c   :  { %v1792_v4 = vpop.xlane.xlu1 %1791 }
 0xd7d   :  { %v1805_v6 = vmul.f32 0.03125, %v1792_v4 }
 0xd7f   :  { %v1810_v8 = vadd.f32 1e-05, %v1805_v6 }
 0xd80   :  { %v1795_v5 = vpop.xlane.xlu0 %1794 }
 0xd81   :  { %4475 = vrsqrt.f32 %v1810_v8  ;;  %v1806_v9 = vmul.f32 0.03125, %v1795_v5 }
 0xd83   :  { %v1811_v10 = vadd.f32 1e-05, %v1806_v9 }
 0xd85   :  { %4477 = vrsqrt.f32 %v1811_v10 }
 0xd8b   :  { %v4476_v11 = vpop.eup %4475 }
 0xd8c   :  { %v1820_v15 = vmul.f32 %v4476_v11, %v1780_v34 }
 0xd8e   :  { %v1829_v17 = vmul.f32 %v3437_v12, %v1820_v15 }
 0xd8f   :  { %v4478_v18 = vpop.eup %4477 }
 0xd90   :  { %v1838_v20 = vadd.f32 %v3438_v16, %v1829_v17  ;;  %v1821_v22 = vmul.f32 %v4478_v18, %v1781_v62 }
 0xd92   :  { %3941 = vmatmul.mubr.msk.f32.vlgmr.msra.gmra.mrb[50].mxu1 %vm211_vm2, %v1838_v20  ;;  %v1830_v23 = vmul.f32 %v3437_v12, %v1821_v22 }
 0xd93   :  { %3943 = vmatprep.mubr.msk.f32.mxu1 %vm4657_vm0, %v4658_v1 }
 0xd94   :  { %v1839_v13 = vadd.f32 %v3438_v16, %v1830_v23 }
 0xd96   :  { %3944 = vmatmul.mubr.msk.f32.gmra.mrb[52].mxu1 %vm211_vm2, %v1839_v13 }
 0xd97   :  { %3946 = vmatprep.mubr.msk.f32.mxu1 %vm4657_vm0, %v4658_v1 }
 0xdb8   :  { %v1798_v25 = vpop.xlane.xlu1 %1797 }
 0xdb9   :  { %v1807_v46 = vmul.f32 0.03125, %v1798_v25 }
 0xdbb   :  { %v1812_v27 = vadd.f32 1e-05, %v1807_v46 }
 0xdbd   :  { %4479 = vrsqrt.f32 %v1812_v27 }
 0xdc0   :  { %v1801_v29 = vpop.xlane.xlu0 %1800 }
 0xdc1   :  { %v1808_v30 = vmul.f32 0.03125, %v1801_v29 }
 0xdc3   :  { %v1813_v33 = vadd.f32 1e-05, %v1808_v30 }
 0xdc4   :  { %v1804_v21 = vpop.xlane.xlu1 %1803 }
 0xdc5   :  { %4481 = vrsqrt.f32 %v1813_v33  ;;  %v1809_v41 = vmul.f32 0.03125, %v1804_v21 }
 0xdc7   :  { %v4480_v32 = vpop.eup %4479  ;;  %v1814_v2 = vadd.f32 1e-05, %v1809_v41 }
 0xdc8   :  { %v1822_v26 = vmul.f32 %v4480_v32, %v1782_v51 }
 0xdc9   :  { %4483 = vrsqrt.f32 %v1814_v2 }
 0xdca   :  { %v1831_v34 = vmul.f32 %v3437_v12, %v1822_v26 }
 0xdcc   :  { %v1840_v37 = vadd.f32 %v3438_v16, %v1831_v34 }
 0xdce   :  { %3947 = vmatmul.mubr.msk.f32.gmra.mrb[54].mxu1 %vm211_vm2, %v1840_v37 }
 0xdcf   :  { %v4482_v36 = vpop.eup %4481  ;;  %3949 = vmatprep.mubr.msk.f32.mxu1 %vm4657_vm0, %v4658_v1 }
 0xdd0   :  { %v1823_v38 = vmul.f32 %v4482_v36, %v1783_v55 }
 0xdd2   :  { %v1832_v62 = vmul.f32 %v3437_v12, %v1823_v38 }
 0xdd3   :  { %v4484_v39 = vpop.eup %4483 }
 0xdd4   :  { %v1841_v40 = vadd.f32 %v3438_v16, %v1832_v62  ;;  %v1824_v44 = vmul.f32 %v4484_v39, %v1784_v60 }
 0xdd6   :  { %3950 = vmatmul.mubr.msk.f32.gmra.mrb[56].mxu1 %vm211_vm2, %v1841_v40  ;;  %v1833_v42 = vmul.f32 %v3437_v12, %v1824_v44 }
 0xdd7   :  { %3952 = vmatprep.mubr.msk.f32.mxu1 %vm4657_vm0, %v4658_v1 }
 0xdd8   :  { %v1842_v31 = vadd.f32 %v3438_v16, %v1833_v42 }
 0xdda   :  { %3953 = vmatmul.mubr.msk.f32.gmra.mrb[58].mxu1 %vm211_vm2, %v1842_v31 }
 0xddb   :  { %3961 = vmatprep.mubr.msk.f32.mxu1 %vm4657_vm0, %v4658_v1 }
 0xe65   :  { %v1928_v43 = vpop.f32.mrb[50].mxu1 }
 0xe66   :  { %v3942_v45 = vpop.f32.mrb[51].mxu1  ;;  %v1929_v49 = vadd.f32 %v3439_v47, %v1928_v43 }
 0xe69   :  { %v1933_v48 = vpop.f32.mrb[52].mxu1 }
 0xe6a   :  { %v1934_v50 = vadd.f32 %v3439_v47, %v1933_v48  ;;  %v3945_v51 = vpop.f32.mrb[53].mxu1 }
 0xe6c   :  { %v5231_v52 = vpack.i.bf16 %v1934_v50, %v1929_v49 }
 0xe6e   :  { %4358 = vrot.lane.b32.xlu0 %v5231_v52, %s4659_s2 }
 0xea1   :  { %v1938_v53 = vpop.f32.mrb[54].mxu1 }
 0xea2   :  { %v5235_v56 = vadd.f32 %v3439_v47, %v1938_v53  ;;  %v3948_v54 = vpop.f32.mrb[55].mxu1 }
 0xea4   :  { %1959 = vrot.lane.b32.xlu1 %v5235_v56, %s4659_s2  ;;  %v2444_v3 = vrot.slane %v5235_v56, 1 }
 0xea8   :  { %4363 = vrot.lane.b32.xlu1 %v5231_v52, %s4661_s22 }
 0xea9   :  { %v1943_v55 = vpop.f32.mrb[56].mxu1 }
 0xeaa   :  { %v1944_v57 = vadd.f32 %v3439_v47, %v1943_v55  ;;  %v3951_v58 = vpop.f32.mrb[57].mxu1 }
 0xeac   :  { %2198 = vrot.lane.b32.xlu1 %v5235_v56, %s4661_s22  ;;  %v2445_v60 = vrot.slane %v1944_v57, 1 }
 0xead   :  { %v1948_v59 = vpop.f32.mrb[58].mxu1 }
 0xeae   :  { %v1949_v61 = vadd.f32 %v3439_v47, %v1948_v59  ;;  %v3954_v63 = vpop.f32.mrb[59].mxu1  ;;  %v5248_v6 = vsel %vm902_vm8, %v2444_v3, %v2445_v60 }
 0xeb0   :  { %v5244_v4 = vrot.slane %v1949_v61, 1  ;;  %2188 = vrot.lane.b32.xlu1 %v1929_v49, %s4662_s23 }
 0xeb2   :  { %v5252_v8 = vsel %vm902_vm8, %v2445_v60, %v5244_v4 }
 0xeb3   :  { %v5256_v5 = vpack.i.bf16 %v5252_v8, %v5248_v6 }
 0xeb4   :  { %2192 = vrot.lane.b32.xlu1 %v5235_v56, %s4662_s23 }
 0xeb5   :  { %4368 = vrot.lane.b32.xlu0 %v5256_v5, %s4659_s2 }
 0xeb8   :  { %4373 = vrot.lane.b32.xlu1 %v5256_v5, %s4661_s22 }
 0xeb9   :  { %2190 = vrot.lane.b32.xlu0 %v1934_v50, %s4662_s23 }
 0xebc   :  { %2682 = vrot.lane.b32.xlu1 %v5248_v6, %s4662_s23 }
 0xebd   :  { %2453 = vrot.lane.b32.xlu0 %v5244_v4, %s4659_s2 }
 0xec0   :  { %4378 = vrot.lane.b32.xlu1 %v5231_v52, %s4660_s21 }
 0xec1   :  { %2692 = vrot.lane.b32.xlu0 %v5244_v4, %s4661_s22 }
 0xee0   :  { %v4359_v9 = vpop.permute.xlu0 %4358 }
 0xee1   :  { %v4361_v10 = vunpack.i.h.bf16 %v4359_v9  ;;  %v4360_v11 = vunpack.i.l.bf16 %v4359_v9 }
 0xee3   :  { %v4239_v12 = vpack.c.bf16 %v4361_v10, %v4360_v11 }
 0xee5   :  { %4241 = vmatpush3.bf16.xpose.msk.msra.mxu1 %vm4826_vm5, %v4239_v12 }
 0xee6   :  { %3959 = vmatprep.subr.mxu1 %v4658_v1 }
 0xf16   :  { %v1960_v15 = vpop.permute.xlu1 %1959 }
 0xf17   :  { %3960 = vmatpush3.xpose.msk.msra.mxu1 %vm415_vm4, %v1960_v15 }
 0xf18   :  { %4245 = vmatprep.subr.bf16.mxu1 %v4656_v0 }
 0xf1a   :  { %v4364_v16 = vpop.permute.xlu1 %4363  ;;  %3962 = vmatmul.mubr.msk.f32.vlgmr.msra.gmra.mrb[60].mxu1 %vm415_vm4, %v1929_v49 }
 0xf1b   :  { %v4366_v17 = vunpack.i.h.bf16 %v4364_v16  ;;  %v4365_v18 = vunpack.i.l.bf16 %v4364_v16  ;;  %3964 = vmatprep.mubr.msk.f32.mxu1 %vm4657_vm0, %v4658_v1 }
 0xf1d   :  { %v4246_v20 = vpack.c.bf16 %v4366_v17, %v4365_v18 }
 0xf1e   :  { %v2199_v22 = vpop.permute.xlu1 %2198  ;;  %3965 = vmatmul.mubr.msk.f32.gmra.mrb[62].mxu1 %vm415_vm4, %v1934_v50 }
 0xf1f   :  { %4248 = vmatpush3.bf16.xpose.msk.msra.mxu1 %vm4826_vm5, %v4246_v20  ;;  %3967 = vmatprep.mubr.msk.f32.mxu1 %vm4657_vm0, %v4658_v1 }
 0xf20   :  { %3989 = vmatprep.subr.mxu1 %v4658_v1 }
 0xf22   :  { %v2189_v23 = vpop.permute.xlu1 %2188  ;;  %3968 = vmatmul.mubr.msk.f32.gmra.mrb[64].mxu1 %vm415_vm4, %v5235_v56 }
 0xf23   :  { %3991 = vmatprep.mubr.msk.f32.mxu1 %vm4657_vm0, %v4658_v1 }
 0xf26   :  { %v2193_v13 = vpop.permute.xlu1 %2192 }
 0xf27   :  { %v4369_v25 = vpop.permute.xlu0 %4368  ;;  %3990 = vmatpush3.xpose.msk.msra.mxu1 %vm415_vm4, %v2199_v22 }
 0xf28   :  { %v4371_v46 = vunpack.i.h.bf16 %v4369_v25  ;;  %v4370_v27 = vunpack.i.l.bf16 %v4369_v25  ;;  %4252 = vmatprep.subr.bf16.mxu1 %v4656_v0 }
 0xf2a   :  { %v4253_v29 = vpack.c.bf16 %v4371_v46, %v4370_v27  ;;  %v4374_v30 = vpop.permute.xlu1 %4373  ;;  %3992 = vmatmul.mubr.msk.f32.vlgmr.msra.gmra.mrb[66].mxu1 %vm415_vm4, %v2189_v23 }
 0xf2b   :  { %3994 = vmatprep.mubr.msk.f32.mxu1 %vm4657_vm0, %v4658_v1  ;;  %v2191_v33 = vpop.permute.xlu0 %2190  ;;  %v4376_v41 = vunpack.i.h.bf16 %v4374_v30  ;;  %v4375_v32 = vunpack.i.l.bf16 %v4374_v30 }
 0xf2c   :  { %4255 = vmatpush3.bf16.xpose.msk.msra.mxu1 %vm4826_vm5, %v4253_v29 }
 0xf2d   :  { %4019 = vmatprep.subr.mxu1 %v4658_v1  ;;  %v4260_v38 = vpack.c.bf16 %v4376_v41, %v4375_v32 }
 0xf2e   :  { %v2683_v21 = vpop.permute.xlu1 %2682  ;;  %3995 = vmatmul.mubr.msk.f32.gmra.mrb[68].mxu1 %vm415_vm4, %v2191_v33 }
 0xf2f   :  { %3997 = vmatprep.mubr.msk.f32.mxu1 %vm4657_vm0, %v4658_v1  ;;  %v2454_v26 = vpop.permute.xlu0 %2453 }
 0xf32   :  { %v4379_v2 = vpop.permute.xlu1 %4378  ;;  %3998 = vmatmul.mubr.msk.f32.gmra.mrb[70].mxu1 %vm415_vm4, %v2193_v13 }
 0xf33   :  { %v4381_v34 = vunpack.i.h.bf16 %v4379_v2  ;;  %v4380_v37 = vunpack.i.l.bf16 %v4379_v2  ;;  %4021 = vmatprep.mubr.msk.f32.mxu1 %vm4657_vm0, %v4658_v1  ;;  %v2693_v62 = vpop.permute.xlu0 %2692 }
 0xf34   :  { %4020 = vmatpush3.xpose.msk.msra.mxu1 %vm415_vm4, %v2454_v26 }
 0xf35   :  { %v4243_v36 = vpack.c.bf16 %v4381_v34, %v4380_v37  ;;  %4259 = vmatprep.subr.bf16.mxu1 %v4656_v0 }
 0xf37   :  { %4244 = vmatpush3.bf16.msra.mxu0 %v4243_v36  ;;  %4022 = vmatmul.mubr.msk.f32.vlgmr.msra.gmra.mrb[72].mxu1 %vm415_vm4, %v5248_v6 }
 0xf38   :  { %4262 = vmatpush3.bf16.xpose.msk.msra.mxu1 %vm4826_vm5, %v4260_v38  ;;  %4024 = vmatprep.mubr.msk.f32.mxu1 %vm4657_vm0, %v4658_v1 }
 0xf39   :  { %4049 = vmatprep.subr.mxu1 %v4658_v1  ;;  %3974 = vmatprep.subr.mxu0 %v4658_v1 }
 0xf3b   :  { %4025 = vmatmul.mubr.msk.f32.gmra.mrb[74].mxu1 %vm415_vm4, %v5252_v8 }
 0xf3c   :  { %4027 = vmatprep.mubr.msk.f32.mxu1 %vm4657_vm0, %v4658_v1 }
 0xf3f   :  { %4028 = vmatmul.mubr.msk.f32.gmra.mrb[76].mxu1 %vm415_vm4, %v5244_v4 }
 0xf40   :  { %4050 = vmatpush3.xpose.msk.msra.mxu1 %vm415_vm4, %v2693_v62  ;;  %4051 = vmatprep.mubr.msk.f32.mxu1 %vm4657_vm0, %v4658_v1 }
 0xf41   :  { %4266 = vmatprep.subr.bf16.mxu1 %v4656_v0 }
 0xf43   :  { %4052 = vmatmul.mubr.msk.f32.vlgmr.msra.gmra.mrb[78].mxu1 %vm415_vm4, %v2683_v21 }
 0xf44   :  { %4054 = vmatprep.mubr.msk.f32.mxu1 %vm4657_vm0, %v4658_v1 }
 0xfed   :  { %v2039_v7 = vpop.f32.mrb[60].mxu1 }
 0xfee   :  { %v2053_v39 = vmul.f32 0.25, %v2039_v7  ;;  %v3963_v40 = vpop.f32.mrb[61].mxu1 }
 0xff0   :  { %v2056_v44 = vsel %vm511_vm6, %v2053_v39, -inf }
 0xff1   :  { %2057 = vmax.xlane.f32.xlu0 %v2056_v44  ;;  %v2044_v42 = vpop.f32.mrb[62].mxu1 }
 0xff2   :  { %v2054_v31 = vmul.f32 0.25, %v2044_v42  ;;  %v3966_v43 = vpop.f32.mrb[63].mxu1 }
 0xff4   :  { %v2059_v45 = vsel %vm511_vm6, %v2054_v31, -inf }
 0xff5   :  { %2060 = vmax.xlane.f32.xlu1 %v2059_v45  ;;  %v2049_v47 = vpop.f32.mrb[64].mxu1 }
 0xff6   :  { %v2055_v48 = vmul.f32 0.25, %v2049_v47  ;;  %v3969_v49 = vpop.f32.mrb[65].mxu1 }
 0xff8   :  { %v2062_v50 = vsel %vm518_vm7, %v2055_v48, -inf }
 0xff9   :  { %2063 = vmax.xlane.f32.xlu0 %v2062_v50 }
 0xffd   :  { %v2278_v51 = vpop.f32.mrb[66].mxu1 }
 0xffe   :  { %v2292_v53 = vmul.f32 0.25, %v2278_v51  ;;  %v3993_v54 = vpop.f32.mrb[67].mxu1 }
0x1000   :  { %v2295_v55 = vsel %vm511_vm6, %v2292_v53, -inf }
0x1001   :  { %2296 = vmax.xlane.f32.xlu0 %v2295_v55  ;;  %v2283_v57 = vpop.f32.mrb[68].mxu1 }
0x1002   :  { %v2293_v58 = vmul.f32 0.25, %v2283_v57  ;;  %v3996_v59 = vpop.f32.mrb[69].mxu1 }
0x1004   :  { %v2298_v60 = vsel %vm511_vm6, %v2293_v58, -inf }
0x1005   :  { %2299 = vmax.xlane.f32.xlu0 %v2298_v60  ;;  %v2288_v61 = vpop.f32.mrb[70].mxu1 }
0x1006   :  { %v2294_v63 = vmul.f32 0.25, %v2288_v61  ;;  %v3999_v3 = vpop.f32.mrb[71].mxu1 }
0x1008   :  { %v2301_v6 = vsel %vm518_vm7, %v2294_v63, -inf }
0x1009   :  { %2302 = vmax.xlane.f32.xlu1 %v2301_v6 }
0x100a   :  { %v2533_v9 = vpop.f32.mrb[72].mxu1 }
0x100b   :  { %v4023_v10 = vpop.f32.mrb[73].mxu1  ;;  %v5343_v25 = vmul.f32 0.25, %v2533_v9 }
0x100d   :  { %v2550_v27 = vsel %vm511_vm6, %v5343_v25, -inf }
0x100e   :  { %v2538_v11 = vpop.f32.mrb[74].mxu1 }
0x100f   :  { %v2548_v12 = vmul.f32 0.25, %v2538_v11  ;;  %v4026_v15 = vpop.f32.mrb[75].mxu1 }
0x1011   :  { %v2553_v16 = vsel %vm511_vm6, %v2548_v12, -inf }
0x1012   :  { %2554 = vmax.xlane.f32.xlu1 %v2553_v16  ;;  %v2543_v17 = vpop.f32.mrb[76].mxu1 }
0x1013   :  { %v4029_v18 = vpop.f32.mrb[77].mxu1  ;;  %v5345_v46 = vmul.f32 0.25, %v2543_v17 }
0x1015   :  { %v2556_v29 = vsel %vm518_vm7, %v5345_v46, -inf }
0x1016   :  { %v2772_v20 = vpop.f32.mrb[78].mxu1 }
0x1017   :  { %v5335_v22 = vmul.f32 0.25, %v2772_v20  ;;  %v4053_v23 = vpop.f32.mrb[79].mxu1 }
0x1019   :  { %v2789_v13 = vsel %vm511_vm6, %v5335_v22, -inf }
0x101a   :  { %2790 = vmax.xlane.f32.xlu1 %v2789_v13 }
0x101b   :  { %2093 = vrot.lane.b32.xlu0 %v5235_v56, %s4660_s21 }
0x102b   :  { %2332 = vrot.lane.b32.xlu1 %v5235_v56, %s4663_s24 }
0x103a   :  { %2551 = vmax.xlane.f32.xlu0 %v2550_v27 }
0x103e   :  { %2557 = vmax.xlane.f32.xlu0 %v2556_v29 }
0x1054   :  { %4383 = vrot.lane.b32.xlu0 %v5231_v52, %s4663_s24 }
0x107e   :  { %v2058_v30 = vpop.xlane.xlu0 %2057 }
0x107f   :  { %v2065_v33 = vsub.f32 %v2053_v39, %v2058_v30 }
0x1081   :  { %v2068_v21 = vmul.f32 1.442695, %v2065_v33 }
0x1082   :  { %v2061_v41 = vpop.xlane.xlu1 %2060 }
0x1083   :  { %4485 = vpow2.f32 %v2068_v21  ;;  %v2066_v56 = vsub.f32 %v2054_v31, %v2061_v41 }
0x1085   :  { %v2070_v32 = vmul.f32 1.442695, %v2066_v56 }
0x1086   :  { %v2064_v2 = vpop.xlane.xlu0 %2063 }
0x1087   :  { %4487 = vpow2.f32 %v2070_v32  ;;  %v2067_v26 = vsub.f32 %v2055_v48, %v2064_v2 }
0x1089   :  { %v2072_v34 = vmul.f32 1.442695, %v2067_v26 }
0x108b   :  { %4489 = vpow2.f32 %v2072_v34 }
0x108d   :  { %v5353_v37 = vpop.eup %4485 }
0x108e   :  { %v2297_v36 = vpop.xlane.xlu0 %2296  ;;  %v2074_v38 = vsel %vm511_vm6, %v5353_v37, 0.0 }
0x108f   :  { %v2304_v62 = vsub.f32 %v2292_v53, %v2297_v36  ;;  %2075 = vadd.xlane.f32.xlu0 %v2074_v38 }
0x1091   :  { %v5357_v52 = vpop.eup %4487  ;;  %v2307_v7 = vmul.f32 1.442695, %v2304_v62 }
0x1092   :  { %v2300_v39 = vpop.xlane.xlu0 %2299  ;;  %v2077_v40 = vsel %vm511_vm6, %v5357_v52, 0.0 }
0x1093   :  { %4491 = vpow2.f32 %v2307_v7  ;;  %v2305_v44 = vsub.f32 %v2293_v58, %v2300_v39  ;;  %2078 = vadd.xlane.f32.xlu1 %v2077_v40 }
0x1095   :  { %v5361_v42 = vpop.eup %4489  ;;  %v2309_v31 = vmul.f32 1.442695, %v2305_v44 }
0x1096   :  { %v2094_v43 = vpop.permute.xlu0 %2093  ;;  %v2303_v45 = vpop.xlane.xlu1 %2302  ;;  %v2080_v47 = vsel %vm518_vm7, %v5361_v42, 0.0 }
0x1097   :  { %4493 = vpow2.f32 %v2309_v31  ;;  %v2306_v48 = vsub.f32 %v2294_v63, %v2303_v45  ;;  %3975 = vmatpush3.msk.msra.mxu0 %vm563_vm9, %v2094_v43  ;;  %2081 = vadd.xlane.f32.xlu0 %v2080_v47 }
0x1098   :  { %4249 = vmatprep.subr.bf16.mxu0 %v4656_v0 }
0x1099   :  { %v2311_v49 = vmul.f32 1.442695, %v2306_v48 }
0x109b   :  { %4495 = vpow2.f32 %v2311_v49 }
0x109d   :  { %v5367_v50 = vpop.eup %4491 }
0x109e   :  { %v2313_v51 = vsel %vm511_vm6, %v5367_v50, 0.0 }
0x109f   :  { %v2555_v53 = vpop.xlane.xlu1 %2554  ;;  %2314 = vadd.xlane.f32.xlu1 %v2313_v51 }
0x10a0   :  { %v2560_v54 = vsub.f32 %v2548_v12, %v2555_v53 }
0x10a1   :  { %v5371_v55 = vpop.eup %4493 }
0x10a2   :  { %v2564_v57 = vmul.f32 1.442695, %v2560_v54  ;;  %v2316_v58 = vsel %vm511_vm6, %v5371_v55, 0.0 }
0x10a3   :  { %2317 = vadd.xlane.f32.xlu0 %v2316_v58 }
0x10a4   :  { %4497 = vpow2.f32 %v2564_v57 }
0x10a5   :  { %v5375_v59 = vpop.eup %4495 }
0x10a6   :  { %v2319_v60 = vsel %vm518_vm7, %v5375_v59, 0.0 }
0x10a7   :  { %2320 = vadd.xlane.f32.xlu0 %v2319_v60  ;;  %v2791_v17 = vpop.xlane.xlu1 %2790 }
0x10a8   :  { %v2798_v20 = vsub.f32 %v5335_v22, %v2791_v17 }
0x10aa   :  { %v2801_v13 = vmul.f32 1.442695, %v2798_v20 }
0x10ab   :  { %v2333_v22 = vpop.permute.xlu1 %2332 }
0x10ae   :  { %v5379_v61 = vpop.eup %4497 }
0x10af   :  { %v2571_v63 = vsel %vm511_vm6, %v5379_v61, 0.0 }
0x10b0   :  { %2572 = vadd.xlane.f32.xlu1 %v2571_v63 }
0x10c1   :  { %2587 = vrot.lane.b32.xlu1 %v5244_v4, %s4660_s21 }
0x10c5   :  { %4393 = vrot.lane.b32.xlu1 %v5256_v5, %s4663_s24 }
0x10c7   :  { %v2552_v3 = vpop.xlane.xlu0 %2551 }
0x10c8   :  { %v2559_v6 = vsub.f32 %v5343_v25, %v2552_v3 }
0x10c9   :  { %2826 = vrot.lane.b32.xlu1 %v5244_v4, %s4663_s24 }
0x10ca   :  { %v2562_v9 = vmul.f32 1.442695, %v2559_v6 }
0x10cb   :  { %v2558_v10 = vpop.xlane.xlu0 %2557 }
0x10cc   :  { %4499 = vpow2.f32 %v2562_v9  ;;  %v2561_v11 = vsub.f32 %v5345_v46, %v2558_v10 }
0x10cd   :  { %2684 = vrot.lane.b32.xlu1 %v5252_v8, %s4662_s23 }
0x10ce   :  { %v2566_v12 = vmul.f32 1.442695, %v2561_v11 }
0x10cf   :  { %v4384_v46 = vpop.permute.xlu0 %4383 }
0x10d0   :  { %4501 = vpow2.f32 %v2566_v12  ;;  %v4386_v33 = vunpack.i.h.bf16 %v4384_v46  ;;  %v4385_v21 = vunpack.i.l.bf16 %v4384_v46 }
0x10d1   :  { %4503 = vpow2.f32 %v2801_v13 }
0x10d2   :  { %v4250_v32 = vpack.c.bf16 %v4386_v33, %v4385_v21 }
0x10d6   :  { %v5393_v15 = vpop.eup %4499 }
0x10d7   :  { %v2568_v16 = vsel %vm511_vm6, %v5393_v15, 0.0 }
0x10d8   :  { %2569 = vadd.xlane.f32.xlu0 %v2568_v16 }
0x10da   :  { %v5397_v18 = vpop.eup %4501 }
0x10db   :  { %v2574_v23 = vsel %vm518_vm7, %v5397_v18, 0.0  ;;  %v5402_v8 = vpop.eup %4503 }
0x10dc   :  { %2575 = vadd.xlane.f32.xlu0 %v2574_v23  ;;  %v2807_v25 = vsel %vm511_vm6, %v5402_v8, 0.0 }
0x10f1   :  { %2808 = vadd.xlane.f32.xlu1 %v2807_v25 }
0x10f2   :  { %4388 = vrot.lane.b32.xlu0 %v5256_v5, %s4660_s21 }
0x1102   :  { %2686 = vrot.lane.b32.xlu1 %v5244_v4, %s4662_s23 }
0x111c   :  { %v2076_v27 = vpop.xlane.xlu0 %2075 }
0x111d   :  { %4505 = vrcp.f32 %v2076_v27 }
0x1120   :  { %v2079_v29 = vpop.xlane.xlu1 %2078 }
0x1121   :  { %4507 = vrcp.f32 %v2079_v29 }
0x1124   :  { %v2082_v30 = vpop.xlane.xlu0 %2081 }
0x1125   :  { %4509 = vrcp.f32 %v2082_v30 }
0x1127   :  { %v4506_v41 = vpop.eup %4505 }
0x1128   :  { %v2086_v56 = vmul.f32 %v4506_v41, %v5353_v37 }
0x112a   :  { %3977 = vmatmul.mubr.msk.f32.vlgmr.msra.gmra.mrb[38].mxu0 %vm511_vm6, %v2086_v56 }
0x112b   :  { %v4508_v5 = vpop.eup %4507  ;;  %4251 = vmatpush3.bf16.msra.mxu0 %v4250_v32  ;;  %3979 = vmatprep.mubr.msk.f32.mxu0 %vm4657_vm0, %v4658_v1 }
0x112c   :  { %v2315_v4 = vpop.xlane.xlu1 %2314  ;;  %4004 = vmatprep.subr.mxu0 %v4658_v1  ;;  %v2087_v2 = vmul.f32 %v4508_v5, %v5357_v52 }
0x112d   :  { %4511 = vrcp.f32 %v2315_v4 }
0x112e   :  { %3980 = vmatmul.mubr.msk.f32.gmra.mrb[40].mxu0 %vm511_vm6, %v2087_v2 }
0x112f   :  { %v4510_v26 = vpop.eup %4509  ;;  %4005 = vmatpush3.msk.msra.mxu0 %vm563_vm9, %v2333_v22  ;;  %3982 = vmatprep.mubr.msk.f32.mxu0 %vm4657_vm0, %v4658_v1 }
0x1130   :  { %v2318_v34 = vpop.xlane.xlu0 %2317  ;;  %v2088_v37 = vmul.f32 %v4510_v26, %v5361_v42  ;;  %4256 = vmatprep.subr.bf16.mxu0 %v4656_v0 }
0x1131   :  { %4513 = vrcp.f32 %v2318_v34 }
0x1132   :  { %3983 = vmatmul.mubr.msk.f32.gmra.mrb[42].mxu0 %vm511_vm6, %v2088_v37 }
0x1133   :  { %4006 = vmatprep.mubr.msk.f32.mxu0 %vm4657_vm0, %v4658_v1 }
0x1134   :  { %v2321_v36 = vpop.xlane.xlu0 %2320 }
0x1135   :  { %4515 = vrcp.f32 %v2321_v36 }
0x1137   :  { %v4512_v38 = vpop.eup %4511 }
0x1138   :  { %v2325_v62 = vmul.f32 %v4512_v38, %v5367_v50 }
0x113a   :  { %4007 = vmatmul.mubr.msk.f32.vlgmr.msra.gmra.mrb[44].mxu0 %vm511_vm6, %v2325_v62 }
0x113b   :  { %v4514_v52 = vpop.eup %4513  ;;  %4009 = vmatprep.mubr.msk.f32.mxu0 %vm4657_vm0, %v4658_v1 }
0x113c   :  { %v2326_v7 = vmul.f32 %v4514_v52, %v5371_v55 }
0x113d   :  { %v2573_v39 = vpop.xlane.xlu1 %2572 }
0x113e   :  { %4010 = vmatmul.mubr.msk.f32.gmra.mrb[46].mxu0 %vm511_vm6, %v2326_v7 }
0x113f   :  { %v4516_v40 = vpop.eup %4515  ;;  %4012 = vmatprep.mubr.msk.f32.mxu0 %vm4657_vm0, %v4658_v1 }
0x1140   :  { %v2327_v44 = vmul.f32 %v4516_v40, %v5375_v59 }
0x1141   :  { %v2588_v42 = vpop.permute.xlu1 %2587 }
0x1142   :  { %4013 = vmatmul.mubr.msk.f32.gmra.mrb[48].mxu0 %vm511_vm6, %v2327_v44 }
0x1143   :  { %4036 = vmatprep.mubr.msk.f32.mxu0 %vm4657_vm0, %v4658_v1 }
0x1145   :  { %v4394_v31 = vpop.permute.xlu1 %4393 }
0x1146   :  { %v4396_v55 = vunpack.i.h.bf16 %v4394_v31  ;;  %v4395_v57 = vunpack.i.l.bf16 %v4394_v31 }
0x1148   :  { %v4264_v60 = vpack.c.bf16 %v4396_v55, %v4395_v57 }
0x1149   :  { %v2827_v43 = vpop.permute.xlu1 %2826 }
0x114d   :  { %v2685_v45 = vpop.permute.xlu1 %2684 }
0x114e   :  { %4055 = vmatmul.mubr.msk.f32.gmra.mrb[80].mxu1 %vm415_vm4, %v2685_v45 }
0x114f   :  { %4057 = vmatprep.mubr.msk.f32.mxu1 %vm4657_vm0, %v4658_v1 }
0x1165   :  { %v2570_v47 = vpop.xlane.xlu0 %2569 }
0x1166   :  { %4517 = vrcp.f32 %v2570_v47 }
0x1167   :  { %4519 = vrcp.f32 %v2573_v39 }
0x1169   :  { %v2576_v48 = vpop.xlane.xlu0 %2575 }
0x116a   :  { %4521 = vrcp.f32 %v2576_v48 }
0x116d   :  { %v4389_v49 = vpop.permute.xlu0 %4388 }
0x116e   :  { %v4391_v50 = vunpack.i.h.bf16 %v4389_v49  ;;  %v4390_v51 = vunpack.i.l.bf16 %v4389_v49 }
0x1170   :  { %v4257_v53 = vpack.c.bf16 %v4391_v50, %v4390_v51  ;;  %v4518_v54 = vpop.eup %4517 }
0x1171   :  { %v2580_v58 = vmul.f32 %v4518_v54, %v5393_v15  ;;  %v4520_v59 = vpop.eup %4519 }
0x1172   :  { %4258 = vmatpush3.bf16.msra.mxu0 %v4257_v53  ;;  %v2581_v63 = vmul.f32 %v4520_v59, %v5379_v61 }
0x1173   :  { %4034 = vmatprep.subr.mxu0 %v4658_v1 }
0x1174   :  { %v4522_v3 = vpop.eup %4521 }
0x1175   :  { %v2582_v6 = vmul.f32 %v4522_v3, %v5397_v18 }
0x1176   :  { %4035 = vmatpush3.msk.msra.mxu0 %vm563_vm9, %v2588_v42 }
0x1177   :  { %4037 = vmatmul.mubr.msk.f32.vlgmr.msra.gmra.mrb[50].mxu0 %vm511_vm6, %v2580_v58  ;;  %4263 = vmatprep.subr.bf16.mxu0 %v4656_v0 }
0x1178   :  { %4265 = vmatpush3.bf16.msra.mxu0 %v4264_v60  ;;  %4039 = vmatprep.mubr.msk.f32.mxu0 %vm4657_vm0, %v4658_v1 }
0x1179   :  { %4064 = vmatprep.subr.mxu0 %v4658_v1 }
0x117b   :  { %4040 = vmatmul.mubr.msk.f32.gmra.mrb[52].mxu0 %vm511_vm6, %v2581_v63 }
0x117c   :  { %4065 = vmatpush3.msk.msra.mxu0 %vm563_vm9, %v2827_v43  ;;  %4042 = vmatprep.mubr.msk.f32.mxu0 %vm4657_vm0, %v4658_v1 }
0x117d   :  { %4272 = vmatprep.subr.bf16.mxu0 %v4656_v0 }
0x117e   :  { %v2809_v9 = vpop.xlane.xlu1 %2808 }
0x117f   :  { %4523 = vrcp.f32 %v2809_v9  ;;  %4043 = vmatmul.mubr.msk.f32.gmra.mrb[54].mxu0 %vm511_vm6, %v2582_v6 }
0x1180   :  { %4066 = vmatprep.mubr.msk.f32.mxu0 %vm4657_vm0, %v4658_v1 }
0x1182   :  { %v2687_v61 = vpop.permute.xlu1 %2686 }
0x1183   :  { %4058 = vmatmul.mubr.msk.f32.gmra.mrb[82].mxu1 %vm415_vm4, %v2687_v61 }
0x1184   :  { %4083 = vmatprep.mubr.msk.f32.mxu1 %vm4657_vm0, %v4658_v1 }
0x1189   :  { %v4524_v10 = vpop.eup %4523 }
0x118a   :  { %v2819_v11 = vmul.f32 %v4524_v10, %v5402_v8 }
0x118c   :  { %4067 = vmatmul.mubr.msk.f32.vlgmr.msra.gmra.mrb[56].mxu0 %vm511_vm6, %v2819_v11 }
0x118d   :  { %4069 = vmatprep.mubr.msk.f32.mxu0 %vm4657_vm0, %v4658_v1 }
0x11fd   :  { %v2174_v12 = vpop.f32.mrb[38].mxu0 }
0x11fe   :  { %v3978_v15 = vpop.f32.mrb[39].mxu0 }
0x1201   :  { %v2179_v16 = vpop.f32.mrb[40].mxu0 }
0x1202   :  { %v3981_v17 = vpop.f32.mrb[41].mxu0 }
0x1205   :  { %v2184_v18 = vpop.f32.mrb[42].mxu0 }
0x1206   :  { %v3984_v20 = vpop.f32.mrb[43].mxu0 }
0x1207   :  { %v1739_v20 = vld [vmem:[#allocation7 + $0xf8] sm:$0xff] }
0x120d   :  { %v2413_v23 = vpop.f32.mrb[44].mxu0 }
0x120e   :  { %2430 = vrot.lane.b32.xlu0 %v2413_v23, %s4664_s25  ;;  %v4008_v13 = vpop.f32.mrb[45].mxu0 }
0x120f   :  { %v1740_v13 = vld [vmem:[#allocation7 + $0x100] sm:$0xff] }
0x1211   :  { %v2418_v25 = vpop.f32.mrb[46].mxu0 }
0x1212   :  { %2432 = vrot.lane.b32.xlu1 %v2418_v25, %s4664_s25  ;;  %v4011_v46 = vpop.f32.mrb[47].mxu0  ;;  %v1741_v25 = vld [vmem:[#allocation7 + $0x108] sm:$0xff] }
0x1213   :  { %v4270_v46 = vpack.c.bf16 %v1741_v25, %v1740_v13  ;;  %v1755_v25 = vld [vmem:[#allocation7 + $0x170] sm:$0xff] }
0x1215   :  { %v2423_v8 = vpop.f32.mrb[48].mxu0 }
0x1216   :  { %2434 = vrot.lane.b32.xlu1 %v2423_v8, %s4664_s25  ;;  %v4014_v22 = vpop.f32.mrb[49].mxu0 }
0x1221   :  { %v2777_v27 = vpop.f32.mrb[80].mxu1 }
0x1222   :  { %v4056_v29 = vpop.f32.mrb[81].mxu1  ;;  %v2787_v36 = vmul.f32 0.25, %v2777_v27 }
0x1224   :  { %v2792_v38 = vsel %vm511_vm6, %v2787_v36, -inf }
0x124a   :  { %v2668_v30 = vpop.f32.mrb[50].mxu0 }
0x124b   :  { %v4038_v33 = vpop.f32.mrb[51].mxu0 }
0x124e   :  { %v5468_v21 = vpop.f32.mrb[52].mxu0 }
0x124f   :  { %v4041_v41 = vpop.f32.mrb[53].mxu0 }
0x1252   :  { %v5470_v56 = vpop.f32.mrb[54].mxu0 }
0x1253   :  { %v4044_v32 = vpop.f32.mrb[55].mxu0 }
0x1256   :  { %v2782_v5 = vpop.f32.mrb[82].mxu1 }
0x1257   :  { %v2788_v4 = vmul.f32 0.25, %v2782_v5  ;;  %v4059_v2 = vpop.f32.mrb[83].mxu1 }
0x1259   :  { %v2795_v26 = vsel %vm518_vm7, %v2788_v4, -inf }
0x125a   :  { %2796 = vmax.xlane.f32.xlu1 %v2795_v26 }
0x125f   :  { %v2907_v34 = vpop.f32.mrb[56].mxu0 }
0x1260   :  { %2924 = vrot.lane.b32.xlu0 %v2907_v34, %s4664_s25  ;;  %v4068_v37 = vpop.f32.mrb[57].mxu0 }
0x127f   :  { %2793 = vmax.xlane.f32.xlu0 %v2792_v38 }
0x1280   :  { %v2431_v62 = vpop.permute.xlu0 %2430 }
0x1281   :  { %v2439_v52 = vsel %vm415_vm4, %v2174_v12, %v2431_v62 }
0x1282   :  { %v5477_v7 = vadd.f32 %v2439_v52, %v5180_v14 }
0x1284   :  { %v2433_v39 = vpop.permute.xlu1 %2432  ;;  %v2953_v40 = vsel %vm211_vm2, %v5477_v7, 0.0 }
0x1285   :  { %v2440_v44 = vsel %vm415_vm4, %v2179_v16, %v2433_v39  ;;  %2954 = vadd.xlane.f32.xlu0 %v2953_v40 }
0x1286   :  { %v2949_v42 = vadd.f32 %v2440_v44, %v5185_v19 }
0x1288   :  { %v2956_v31 = vsel %vm211_vm2, %v2949_v42, 0.0  ;;  %v2435_v43 = vpop.permute.xlu1 %2434 }
0x1289   :  { %2957 = vadd.xlane.f32.xlu0 %v2956_v31  ;;  %v2441_v48 = vsel %vm415_vm4, %v2184_v18, %v2435_v43  ;;  %v1738_v18 = vld [vmem:[#allocation7 + $0xf0] sm:$0xff]  ;;  %v5515_v43 = vld [vmem:[#allocation7 + $0xce] ss:$0 sm:$0xff] }
0x128a   :  { %v4267_v23 = vpack.c.bf16 %v1739_v20, %v1738_v18  ;;  %v1753_v20 = vld [vmem:[#allocation7 + $0x160] sm:$0xff] }
0x128c   :  { %4268 = vmatpush3.bf16.msra.mxu1 %v4267_v23  ;;  %v1754_v23 = vld [vmem:[#allocation7 + $0x168] sm:$0xff] }
0x128d   :  { %4269 = vmatprep.subr.bf16.mxu1 %v4656_v0  ;;  %v4288_v13 = vpack.c.bf16 %v1754_v23, %v1753_v20 }
0x1290   :  { %4271 = vmatpush3.bf16.msra.mxu1 %v4270_v46  ;;  %v1756_v46 = vld [vmem:[#allocation7 + $0x178] sm:$0xff] }
0x1291   :  { %4296 = vmatprep.subr.bf16.mxu1 %v4656_v0 }
0x12d2   :  { %v2925_v45 = vpop.permute.xlu0 %2924 }
0x12d3   :  { %v5485_v47 = vsel %vm415_vm4, %v2668_v30, %v2925_v45 }
0x12d4   :  { %v2939_v14 = vrot.slane %v5485_v47, 7 }
0x12d6   :  { %v2947_v49 = vsel %vm563_vm9, %v2441_v48, %v2939_v14 }
0x12d7   :  { %v5493_v50 = vadd.f32 %v2947_v49, %v5190_v24 }
0x12d9   :  { %v2959_v19 = vsel %vm211_vm2, %v5493_v50, 0.0 }
0x12da   :  { %2960 = vadd.xlane.f32.xlu0 %v2959_v19 }
0x12e7   :  { %v2797_v51 = vpop.xlane.xlu1 %2796 }
0x12e8   :  { %v2800_v53 = vsub.f32 %v2788_v4, %v2797_v51 }
0x12ea   :  { %v2805_v54 = vmul.f32 1.442695, %v2800_v53 }
0x12ec   :  { %4525 = vpow2.f32 %v2805_v54  ;;  %v1743_v54 = vld [vmem:[#allocation7 + $0x110] sm:$0xff] }
0x12f6   :  { %v4526_v55 = vpop.eup %4525 }
0x12f7   :  { %v2813_v57 = vsel %vm518_vm7, %v4526_v55, 0.0 }
0x12f8   :  { %2814 = vadd.xlane.f32.xlu0 %v2813_v57 }
0x130c   :  { %v2794_v58 = vpop.xlane.xlu0 %2793 }
0x130d   :  { %v2799_v59 = vsub.f32 %v2787_v36, %v2794_v58 }
0x130f   :  { %v2803_v60 = vmul.f32 1.442695, %v2799_v59 }
0x1311   :  { %4527 = vpow2.f32 %v2803_v60 }
0x1312   :  { %v2955_v63 = vpop.xlane.xlu0 %2954 }
0x1313   :  { %v2968_v3 = vmul.f32 0.03125, %v2955_v63  ;;  %v1745_v63 = vld [vmem:[#allocation7 + $0x120] sm:$0xff] }
0x1315   :  { %v2973_v9 = vsub.f32 %v5477_v7, %v2968_v3  ;;  %v1746_v3 = vld [vmem:[#allocation7 + $0x128] sm:$0xff] }
0x1316   :  { %v2958_v24 = vpop.xlane.xlu0 %2957 }
0x1317   :  { %v2969_v6 = vmul.f32 0.03125, %v2958_v24  ;;  %v2978_v15 = vmul.f32 %v2973_v9, %v2973_v9  ;;  %v4276_v24 = vpack.c.bf16 %v1746_v3, %v1745_v63 }
0x1319   :  { %v2974_v61 = vsub.f32 %v2949_v42, %v2969_v6  ;;  %v2983_v17 = vsel %vm211_vm2, %v2978_v15, 0.0  ;;  %v5512_v42 = vld [vmem:[#allocation7 + $0xcd] ss:$0 sm:$0xff] }
0x131b   :  { %v4528_v10 = vpop.eup %4527  ;;  %v2979_v11 = vmul.f32 %v2974_v61, %v2974_v61 }
0x131c   :  { %v2810_v12 = vsel %vm511_vm6, %v4528_v10, 0.0 }
0x131d   :  { %2811 = vadd.xlane.f32.xlu1 %v2810_v12  ;;  %v2986_v16 = vsel %vm211_vm2, %v2979_v11, 0.0  ;;  %v1749_v11 = vld [vmem:[#allocation7 + $0x140] sm:$0xff]  ;;  %v1750_v12 = vld [vmem:[#allocation7 + $0x148] sm:$0xff] }
0x131e   :  { %2987 = vadd.xlane.f32.xlu0 %v2986_v16  ;;  %v4282_v15 = vpack.c.bf16 %v1750_v12, %v1749_v11  ;;  %v1751_v16 = vld [vmem:[#allocation7 + $0x150] sm:$0xff] }
0x1321   :  { %2984 = vadd.xlane.f32.xlu1 %v2983_v17  ;;  %v1752_v17 = vld [vmem:[#allocation7 + $0x158] sm:$0xff] }
0x1322   :  { %v4285_v18 = vpack.c.bf16 %v1752_v17, %v1751_v16 }
0x1367   :  { %v2961_v8 = vpop.xlane.xlu0 %2960 }
0x1368   :  { %v2970_v22 = vmul.f32 0.03125, %v2961_v8  ;;  %v4291_v8 = vpack.c.bf16 %v1756_v46, %v1755_v25 }
0x136a   :  { %v2975_v27 = vsub.f32 %v5493_v50, %v2970_v22  ;;  %v1757_v22 = vld [vmem:[#allocation7 + $0x180] sm:$0xff] }
0x136c   :  { %v2980_v29 = vmul.f32 %v2975_v27, %v2975_v27 }
0x136e   :  { %v2989_v30 = vsel %vm211_vm2, %v2980_v29, 0.0 }
0x136f   :  { %2990 = vadd.xlane.f32.xlu1 %v2989_v30 }
0x1385   :  { %v2815_v33 = vpop.xlane.xlu0 %2814 }
0x13aa   :  { %v2812_v41 = vpop.xlane.xlu1 %2811 }
0x13ab   :  { %4529 = vrcp.f32 %v2812_v41  ;;  %v2988_v32 = vpop.xlane.xlu0 %2987 }
0x13ac   :  { %v2999_v5 = vmul.f32 0.03125, %v2988_v32  ;;  %4531 = vrcp.f32 %v2815_v33 }
0x13ae   :  { %v3004_v4 = vadd.f32 1e-05, %v2999_v5  ;;  %v2985_v2 = vpop.xlane.xlu1 %2984  ;;  %v5540_v5 = vld [vmem:[#allocation7 + $0xcb] ss:$0 sm:$0xff] }
0x13af   :  { %v2998_v26 = vmul.f32 0.03125, %v2985_v2 }
0x13b0   :  { %4533 = vrsqrt.f32 %v3004_v4 }
0x13b1   :  { %v3003_v34 = vadd.f32 1e-05, %v2998_v26 }
0x13b3   :  { %4535 = vrsqrt.f32 %v3003_v34 }
0x13b5   :  { %v4530_v37 = vpop.eup %4529 }
0x13b6   :  { %v2820_v36 = vmul.f32 %v4530_v37, %v4528_v10  ;;  %v4532_v38 = vpop.eup %4531 }
0x13b7   :  { %v2821_v62 = vmul.f32 %v4532_v38, %v4526_v55  ;;  %v1744_v55 = vld [vmem:[#allocation7 + $0x118] sm:$0xff] }
0x13b8   :  { %4070 = vmatmul.mubr.msk.f32.gmra.mrb[58].mxu0 %vm511_vm6, %v2820_v36  ;;  %v4273_v58 = vpack.c.bf16 %v1744_v55, %v1743_v54 }
0x13b9   :  { %4072 = vmatprep.mubr.msk.f32.mxu0 %vm4657_vm0, %v4658_v1 }
0x13ba   :  { %v4534_v52 = vpop.eup %4533  ;;  %4274 = vmatpush3.bf16.msra.mxu0 %v4273_v58 }
0x13bb   :  { %v3014_v44 = vmul.f32 %v4534_v52, %v2974_v61  ;;  %4275 = vmatprep.subr.bf16.mxu0 %v4656_v0  ;;  %v1748_v61 = vld [vmem:[#allocation7 + $0x138] sm:$0xff] }
0x13bc   :  { %4073 = vmatmul.mubr.msk.f32.gmra.mrb[60].mxu0 %vm511_vm6, %v2821_v62 }
0x13bd   :  { %v4536_v39 = vpop.eup %4535  ;;  %4130 = vmatprep.mubr.msk.f32.mxu0 %vm4657_vm0, %v4658_v1  ;;  %v3023_v48 = vmul.f32 %v5512_v42, %v3014_v44 }
0x13be   :  { %v3013_v40 = vmul.f32 %v4536_v39, %v2973_v9  ;;  %v1747_v9 = vld [vmem:[#allocation7 + $0x130] sm:$0xff]  ;;  %4277 = vmatpush3.bf16.msra.mxu0 %v4276_v24 }
0x13bf   :  { %v3032_v49 = vadd.f32 %v5515_v43, %v3023_v48  ;;  %v4279_v10 = vpack.c.bf16 %v1748_v61, %v1747_v9  ;;  %4278 = vmatprep.subr.bf16.mxu0 %v4656_v0 }
0x13c0   :  { %v3022_v31 = vmul.f32 %v5512_v42, %v3013_v40 }
0x13c2   :  { %v3031_v45 = vadd.f32 %v5515_v43, %v3022_v31  ;;  %4280 = vmatpush3.bf16.msra.mxu0 %v4279_v10 }
0x13c3   :  { %4281 = vmatprep.subr.bf16.mxu0 %v4656_v0 }
0x13c4   :  { %4084 = vmatmul.mubr.msk.f32.vlgmr.msra.gmra.mrb[84].mxu1 %vm211_vm2, %v3031_v45 }
0x13c5   :  { %4086 = vmatprep.mubr.msk.f32.mxu1 %vm4657_vm0, %v4658_v1 }
0x13c6   :  { %4283 = vmatpush3.bf16.msra.mxu0 %v4282_v15 }
0x13c7   :  { %4284 = vmatprep.subr.bf16.mxu0 %v4656_v0 }
0x13c8   :  { %4087 = vmatmul.mubr.msk.f32.gmra.mrb[86].mxu1 %vm211_vm2, %v3032_v49 }
0x13c9   :  { %4089 = vmatprep.mubr.msk.f32.mxu1 %vm4657_vm0, %v4658_v1 }
0x13ca   :  { %4286 = vmatpush3.bf16.msra.mxu0 %v4285_v18 }
0x13cb   :  { %4287 = vmatprep.subr.bf16.mxu0 %v4656_v0 }
0x13ce   :  { %4289 = vmatpush3.bf16.msra.mxu0 %v4288_v13 }
0x13cf   :  { %4290 = vmatprep.subr.bf16.mxu0 %v4656_v0 }
0x13d2   :  { %4292 = vmatpush3.bf16.msra.mxu0 %v4291_v8 }
0x13d3   :  { %4293 = vmatprep.subr.bf16.mxu0 %v4656_v0 }
0x13fc   :  { %v2991_v19 = vpop.xlane.xlu1 %2990 }
0x13fd   :  { %v3000_v51 = vmul.f32 0.03125, %v2991_v19 }
0x13ff   :  { %v3005_v53 = vadd.f32 1e-05, %v3000_v51 }
0x1401   :  { %4537 = vrsqrt.f32 %v3005_v53 }
0x140b   :  { %v4538_v57 = vpop.eup %4537 }
0x140c   :  { %v3015_v59 = vmul.f32 %v4538_v57, %v2975_v27  ;;  %v1758_v27 = vld [vmem:[#allocation7 + $0x188] sm:$0xff] }
0x140d   :  { %v4294_v29 = vpack.c.bf16 %v1758_v27, %v1757_v22  ;;  %v3263_v22 = vld [vmem:[#allocation5 + $0x68] sm:$0xff]  ;;  %v3264_v27 = vld [vmem:[#allocation5 + $0x70] sm:$0xff] }
0x140e   :  { %v3024_v60 = vmul.f32 %v5512_v42, %v3015_v59 }
0x140f   :  { %4295 = vmatpush3.bf16.msra.mxu0 %v4294_v29  ;;  %v4297_v29 = vpack.c.bf16 %v3264_v27, %v3263_v22 }
0x1410   :  { %v3033_v6 = vadd.f32 %v5515_v43, %v3024_v60 }
0x1411   :  { %4298 = vmatpush3.bf16.msra.mxu1 %v4297_v29 }
0x1412   :  { %4090 = vmatmul.mubr.msk.f32.gmra.mrb[88].mxu1 %vm211_vm2, %v3033_v6  ;;  %4299 = vmatprep.subr.bf16.mxu1 %v4656_v0 }
0x1413   :  { %4092 = vmatprep.mubr.msk.f32.mxu1 %vm4657_vm0, %v4658_v1 }
0x148b   :  { %v2912_v30 = vpop.f32.mrb[58].mxu0 }
0x148c   :  { %2926 = vrot.lane.b32.xlu0 %v2912_v30, %s4664_s25  ;;  %v4071_v33 = vpop.f32.mrb[59].mxu0  ;;  %v3265_v30 = vld [vmem:[#allocation5 + $0x78] sm:$0xff] }
0x148d   :  { %v3266_v33 = vld [vmem:[#allocation5 + $0x80] sm:$0xff] }
0x148f   :  { %v2917_v41 = vpop.f32.mrb[60].mxu0 }
0x1490   :  { %2928 = vrot.lane.b32.xlu1 %v2917_v41, %s4664_s25  ;;  %v4074_v32 = vpop.f32.mrb[61].mxu0  ;;  %v4300_v41 = vpack.c.bf16 %v3266_v33, %v3265_v30 }
0x1491   :  { %v3493_v32 = vld [vmem:[#allocation7 + $0xcc] ss:$0 sm:$0xff] }
0x1492   :  { %4301 = vmatpush3.bf16.msra.mxu1 %v4300_v41 }
0x1497   :  { %v3121_v4 = vpop.f32.mrb[84].mxu1 }
0x1498   :  { %v3122_v2 = vadd.f32 %v5540_v5, %v3121_v4  ;;  %v4085_v26 = vpop.f32.mrb[85].mxu1 }
0x149a   :  { %v3150_v34 = vmul.f32 0.70710677, %v3122_v2  ;;  %v3145_v39 = vmul.f32 0.5, %v3122_v2 }
0x149b   :  { %v3126_v37 = vpop.f32.mrb[86].mxu1 }
0x149c   :  { %4539 = verf.f32 %v3150_v34  ;;  %v3127_v36 = vadd.f32 %v5540_v5, %v3126_v37  ;;  %v4088_v38 = vpop.f32.mrb[87].mxu1 }
0x149e   :  { %v3151_v62 = vmul.f32 0.70710677, %v3127_v36  ;;  %v3146_v45 = vmul.f32 0.5, %v3127_v36 }
0x14a0   :  { %4541 = verf.f32 %v3151_v62 }
0x14a6   :  { %v4540_v52 = vpop.eup %4539 }
0x14a7   :  { %v3160_v40 = vadd.f32 1.0, %v4540_v52 }
0x14a9   :  { %v3165_v44 = vmul.f32 %v3160_v40, %v3145_v39 }
0x14aa   :  { %v4542_v31 = vpop.eup %4541 }
0x14ab   :  { %v3161_v48 = vadd.f32 1.0, %v4542_v31  ;;  %4131 = vmatmul.mubr.f32.vlgmr.msra.gmra.mrb[62].mxu0 %v3165_v44 }
0x14ac   :  { %4133 = vmatprep.mubr.msk.f32.mxu0 %vm4657_vm0, %v4658_v1 }
0x14ad   :  { %v3166_v49 = vmul.f32 %v3161_v48, %v3146_v45 }
0x14af   :  { %4134 = vmatmul.mubr.f32.gmra.mrb[64].mxu0 %v3166_v49 }
0x14b0   :  { %4136 = vmatprep.mubr.msk.f32.mxu0 %vm4657_vm0, %v4658_v1 }
0x14e5   :  { %v3131_v19 = vpop.f32.mrb[88].mxu1 }
0x14e6   :  { %v3132_v51 = vadd.f32 %v5540_v5, %v3131_v19  ;;  %v4091_v53 = vpop.f32.mrb[89].mxu1 }
0x14e8   :  { %v3152_v54 = vmul.f32 0.70710677, %v3132_v51  ;;  %v3147_v57 = vmul.f32 0.5, %v3132_v51 }
0x14ea   :  { %4543 = verf.f32 %v3152_v54 }
0x14f4   :  { %v4544_v55 = vpop.eup %4543 }
0x14f5   :  { %v3162_v58 = vadd.f32 1.0, %v4544_v55 }
0x14f7   :  { %v3167_v59 = vmul.f32 %v3162_v58, %v3147_v57 }
0x14f9   :  { %4137 = vmatmul.mubr.f32.gmra.mrb[66].mxu0 %v3167_v59 }
0x14fa   :  { %4139 = vmatprep.mubr.msk.f32.mxu0 %vm4657_vm0, %v4658_v1 }
0x14fe   :  { %v2927_v60 = vpop.permute.xlu0 %2926 }
0x14ff   :  { %v2934_v63 = vsel %vm415_vm4, %v5468_v21, %v2927_v60  ;;  %v3494_v60 = vld [vmem:[#allocation5 + $0x88] ss:$0 sm:$0xff] }
0x1500   :  { %v2940_v3 = vrot.slane %v2934_v63, 7 }
0x1502   :  { %v2929_v24 = vpop.permute.xlu1 %2928  ;;  %v2941_v6 = vsel %vm563_vm9, %v2939_v14, %v2940_v3 }
0x1503   :  { %v2935_v9 = vsel %vm415_vm4, %v5470_v56, %v2929_v24  ;;  %v2951_v61 = vadd.f32 %v2941_v6, %v5195_v28 }
0x1504   :  { %v2942_v10 = vrot.slane %v2935_v9, 7 }
0x1505   :  { %v2962_v11 = vsel %vm211_vm2, %v2951_v61, 0.0 }
0x1506   :  { %2963 = vadd.xlane.f32.xlu1 %v2962_v11  ;;  %v2943_v12 = vsel %vm563_vm9, %v2940_v3, %v2942_v10 }
0x1507   :  { %v2952_v15 = vadd.f32 %v2943_v12, %v5200_v35 }
0x1509   :  { %v2965_v21 = vsel %vm224_vm3, %v2952_v15, 0.0 }
0x150a   :  { %2966 = vadd.xlane.f32.xlu0 %v2965_v21 }
0x157e   :  { %v3240_v16 = vpop.f32.mrb[62].mxu0 }
0x157f   :  { %v4132_v47 = vpop.f32.mrb[63].mxu0  ;;  %v3241_v4 = vadd.f32 %v3493_v32, %v3240_v16 }
0x1581   :  { %v3261_v37 = vadd.f32 %v3241_v4, %v5477_v7 }
0x1582   :  { %v3245_v17 = vpop.f32.mrb[64].mxu0 }
0x1583   :  { %v4135_v14 = vpop.f32.mrb[65].mxu0 }
0x1593   :  { %v2964_v18 = vpop.xlane.xlu1 %2963 }
0x1594   :  { %v2971_v20 = vmul.f32 0.03125, %v2964_v18 }
0x1596   :  { %v2976_v56 = vsub.f32 %v2951_v61, %v2971_v20 }
0x1597   :  { %v2967_v23 = vpop.xlane.xlu0 %2966 }
0x1598   :  { %v2972_v28 = vmul.f32 0.03125, %v2967_v23  ;;  %v2981_v13 = vmul.f32 %v2976_v56, %v2976_v56 }
0x159a   :  { %v2977_v25 = vsub.f32 %v2952_v15, %v2972_v28  ;;  %v2992_v46 = vsel %vm211_vm2, %v2981_v13, 0.0 }
0x159b   :  { %2993 = vadd.xlane.f32.xlu0 %v2992_v46 }
0x159c   :  { %v2982_v8 = vmul.f32 %v2977_v25, %v2977_v25 }
0x159e   :  { %v2995_v35 = vsel %vm224_vm3, %v2982_v8, 0.0 }
0x159f   :  { %2996 = vadd.xlane.f32.xlu1 %v2995_v35 }
0x15cc   :  { %v3249_v2 = vpop.f32.mrb[66].mxu0 }
0x15cd   :  { %v3250_v26 = vadd.f32 %v3493_v32, %v3249_v2  ;;  %v4138_v34 = vpop.f32.mrb[67].mxu0 }
0x15cf   :  { %v3262_v36 = vadd.f32 %v3250_v26, %v5493_v50 }
0x15d1   :  { %v3268_v38 = vsel %vm563_vm9, %v3261_v37, %v3262_v36 }
0x1628   :  { %v2994_v62 = vpop.xlane.xlu0 %2993 }
0x1629   :  { %v3001_v52 = vmul.f32 0.03125, %v2994_v62 }
0x162b   :  { %v3006_v39 = vadd.f32 1e-05, %v3001_v52 }
0x162c   :  { %v2997_v40 = vpop.xlane.xlu1 %2996 }
0x162d   :  { %4545 = vrsqrt.f32 %v3006_v39  ;;  %v3002_v0 = vmul.f32 0.03125, %v2997_v40 }
0x162f   :  { %v3007_v44 = vadd.f32 1e-05, %v3002_v0 }
0x1631   :  { %4547 = vrsqrt.f32 %v3007_v44 }
0x1637   :  { %v4546_v31 = vpop.eup %4545 }
0x1638   :  { %v3016_v45 = vmul.f32 %v4546_v31, %v2976_v56 }
0x163a   :  { %v3025_v48 = vmul.f32 %v5512_v42, %v3016_v45 }
0x163b   :  { %v4548_v49 = vpop.eup %4547 }
0x163c   :  { %v3034_v19 = vadd.f32 %v5515_v43, %v3025_v48  ;;  %v3017_v7 = vmul.f32 %v4548_v49, %v2977_v25 }
0x163e   :  { %4093 = vmatmul.mubr.msk.f32.gmra.mrb[90].mxu1 %vm211_vm2, %v3034_v19  ;;  %v3026_v50 = vmul.f32 %v5512_v42, %v3017_v7 }
0x163f   :  { %4095 = vmatprep.mubr.msk.f32.mxu1 %vm4657_vm0, %v4658_v1 }
0x1640   :  { %v3035_v51 = vadd.f32 %v5515_v43, %v3026_v50 }
0x1642   :  { %4096 = vmatmul.mubr.msk.f32.gmra.mrb[92].mxu1 %vm211_vm2, %v3035_v51 }
0x1643   :  { %4153 = vmatprep.mubr.msk.f32.mxu1 %vm4657_vm0, %v4658_v1 }
0x1646   :  { %4154 = vmatmul.mubr.msk.f32.vlgmr.msra.gmra.mrb[94].mxu1 %vm211_vm2, %v3268_v38 }
0x1711   :  { %v3136_v53 = vpop.f32.mrb[90].mxu1 }
0x1712   :  { %v3137_v54 = vadd.f32 %v5540_v5, %v3136_v53  ;;  %v4094_v55 = vpop.f32.mrb[91].mxu1 }
0x1714   :  { %v3153_v57 = vmul.f32 0.70710677, %v3137_v54  ;;  %v3148_v61 = vmul.f32 0.5, %v3137_v54 }
0x1715   :  { %v3141_v58 = vpop.f32.mrb[92].mxu1 }
0x1716   :  { %4549 = verf.f32 %v3153_v57  ;;  %v3142_v42 = vadd.f32 %v5540_v5, %v3141_v58  ;;  %v4097_v59 = vpop.f32.mrb[93].mxu1 }
0x1718   :  { %v3154_v63 = vmul.f32 0.70710677, %v3142_v42  ;;  %v3149_v15 = vmul.f32 0.5, %v3142_v42 }
0x1719   :  { %v3342_v43 = vpop.f32.mrb[94].mxu1 }
0x171a   :  { %4551 = verf.f32 %v3154_v63  ;;  %v3343_v3 = vadd.f32 %v3494_v60, %v3342_v43  ;;  %v4155_v24 = vpop.f32.mrb[95].mxu1 }
0x171c   :  { %v3347_v6 = vsel %vm3346_vm10, %v3343_v3, -inf }
0x171d   :  { %3348 = vmax.xlane.f32.xlu0 %v3347_v6 }
0x1720   :  { %v4550_v9 = vpop.eup %4549 }
0x1721   :  { %v3163_v10 = vadd.f32 1.0, %v4550_v9 }
0x1723   :  { %v3168_v11 = vmul.f32 %v3163_v10, %v3148_v61 }
0x1724   :  { %v4552_v12 = vpop.eup %4551 }
0x1725   :  { %v3164_v21 = vadd.f32 1.0, %v4552_v12  ;;  %4140 = vmatmul.mubr.f32.gmra.mrb[68].mxu0 %v3168_v11 }
0x1726   :  { %4142 = vmatprep.mubr.msk.f32.mxu0 %vm4657_vm0, %v4658_v1 }
0x1727   :  { %v3169_v5 = vmul.f32 %v3164_v21, %v3149_v15 }
0x1729   :  { %4143 = vmatmul.mubr.f32.gmra.mrb[70].mxu0 %v3169_v5 }
0x17aa   :  { %v3349_v16 = vpop.xlane.xlu0 %3348 }
0x17ab   :  { %v3350_v47 = vsub.f32 %v3343_v3, %v3349_v16 }
0x17ad   :  { %v3351_v17 = vmul.f32 1.442695, %v3350_v47 }
0x17af   :  { %4553 = vpow2.f32 %v3351_v17 }
0x17b9   :  { %v4554_v14 = vpop.eup %4553 }
0x17ba   :  { %v3353_v18 = vsel %vm3346_vm10, %v4554_v14, 0.0 }
0x17bb   :  { %3354 = vadd.xlane.f32.xlu1 %v3353_v18 }
0x17f8   :  { %v3254_v20 = vpop.f32.mrb[68].mxu0 }
0x17f9   :  { %v4141_v56 = vpop.f32.mrb[69].mxu0 }
0x17fc   :  { %v3258_v23 = vpop.f32.mrb[70].mxu0 }
0x17fd   :  { %v4144_v28 = vpop.f32.mrb[71].mxu0 }
0x1848   :  { %v3355_v13 = vpop.xlane.xlu1 %3354 }
0x1849   :  { %4555 = vrcp.f32 %v3355_v13 }
0x1853   :  { %v4556_v25 = vpop.eup %4555 }
0x1854   :  { %v3357_v1 = vmul.f32 %v4556_v25, %v4554_v14 }
0x1856   :  { %3358 = vst.msk [vmem:[#allocation8] sm:$0x3] %vm3346_vm10, %v3357_v1 }
0x1857   :  { %4634 = shalt.err (!%p4631_p0)
}
0x1858   :  { %s4635_s4 = scalar_lea.hbm %s5602_s3, 32 }
0x1859   :  { %p4636_p1 = scmp.ne.s32.totalorder %s5602_s3, %s4635_s4  ;;  %p4639_p2 = scmp.lt.u32.totalorder %s4635_s4, %s5602_s3 }
0x185b   :  { %p4641_p3 = pnand %p4639_p2, %p4636_p1 }
0x185d   :  { %4644 = shalt.err (!%p4641_p3)
}
0x185e   :  { %3368 = dma.vmem_to_hbm [thread:$0]  %s3366_s27, 32, %s5602_s3, [#allocation4]  }
0x185f   :  { %4649 = dma.done.wait [#allocation4], 32  }
0x1860   :  { %4650 = vsyncadd [#allocation4], 4294967264 }
0x1861   :  { %3372 = vsyncpa [#allocation3], 1 }
0x1862   :  { %3373 = vsyncpa [#allocation6], 1 }
0x1863   :  { %3374 = vsyncpa [#allocation4], 1 }

</bundles_post_ra>
